<compile_context>
chip_gen: v7x
topology: tpu7x:2x2x1
jax: 0.10.0
libtpu: 0.0.40
codegen_flags: <defaults>
</compile_context>

<pallas_src>
import functools
import numpy as np
import jax
import jax.numpy as jnp
from jax import lax
from jax.experimental import pallas as pl
from jax.experimental.pallas import tpu as pltpu


# -----------------------------------------------------------------------------
# Fused SPPF block kernel (one batch element per grid step, NHWC, spatial flattened).
#   x_ref   : (1, H*W, Cin)         input block
#   w1_ref  : (Cin, Chid)  bf16     pw1 weight, BN scale folded in
#   b1_ref  : (1, Chid)    f32      pw1 folded BN bias
#   w2_ref  : (4, Chid, Cout) bf16  pw2 weight split per concat branch, BN scale folded in
#   b2_ref  : (1, Cout)    f32      pw2 folded BN bias
#   o_ref   : (1, H*W, Cout)        output block
#   hpad_ref: (H+2p, W, Chid) f32   VMEM scratch for the H pooling pass (-inf borders)
#   acc_ref : (H*W, Cout)  f32      VMEM accumulator for the 4 partial pw2 matmuls
# -----------------------------------------------------------------------------
def _sppf_fused_kernel(x_ref, w1_ref, b1_ref, w2_ref, b2_ref, o_ref,
                       hpad_ref, acc_ref, *, H, W, pool):
    Cin = x_ref.shape[-1]
    Chid = w1_ref.shape[-1]
    Cout = o_ref.shape[-1]
    HW = H * W
    p = pool // 2
    neg_inf = jnp.float32(-jnp.inf)

    # -inf borders of the H-pass scratch, written once per grid step (unconditionally:
    # with dimension_semantics=('parallel',) a core may never execute grid step 0,
    # so gating this on program_id would be unsafe).
    hpad_ref[0:p, :, :] = jnp.full((p, W, Chid), neg_inf, jnp.float32)
    hpad_ref[H + p:H + 2 * p, :, :] = jnp.full((p, W, Chid), neg_inf, jnp.float32)

    # Right-pad width for the in-register W pass: >= pool-1 so wrapped columns from
    # either roll direction land in -inf; rounded up to 8 to keep sublane tiles aligned.
    wpad = 8 * pl.cdiv(pool - 1, 8)
    Wp = W + wpad

    def pool_same(a):
        """5x5 max pool, stride 1, 'same' (-inf) padding. a: (H, W, Chid) f32."""
        # ---- W pass: in-register via XLU rolls (no scratch stores / unaligned loads) --
        ap = jnp.concatenate(
            [a, jnp.full((H, wpad, Chid), neg_inf, jnp.float32)], axis=1)
        cm = a
        for d in range(1, p + 1):
            r_a = pltpu.roll(ap, shift=d, axis=1)[:, :W, :]
            r_b = pltpu.roll(ap, shift=Wp - d, axis=1)[:, :W, :]
            cm = jnp.maximum(cm, jnp.maximum(r_a, r_b))
        # ---- H pass: through the -inf-bordered scratch; leading-dim slices are just
        #      address offsets (borders were initialized once above). ------------------
        hpad_ref[p:p + H, :, :] = cm
        out = hpad_ref[0:H, :, :]
        for dy in range(1, pool):
            out = jnp.maximum(out, hpad_ref[dy:dy + H, :, :])
        return out

    # ---- pw1: 1x1 conv (BN scale pre-folded into w1), bf16 MXU operands, f32 acc ----
    x2 = x_ref[...].reshape(HW, Cin).astype(jnp.bfloat16)
    h2 = jnp.dot(x2, w1_ref[...], preferred_element_type=jnp.float32)
    h2 = h2 + b1_ref[...]
    h2 = h2 * jax.nn.sigmoid(h2)                      # SiLU, (HW, Chid) f32

    # ---- SPPF + pw2: concat eliminated; partial matmuls accumulated in VMEM f32 ----
    acc_ref[...] = jnp.dot(h2.astype(jnp.bfloat16), w2_ref[0],
                           preferred_element_type=jnp.float32)      # h branch
    cur = h2.reshape(H, W, Chid)
    for i in range(1, 4):   # static trip count; acc lives in VMEM, only `cur` is live
        cur = pool_same(cur)                                        # o1, o2, o3
        acc_ref[...] += jnp.dot(cur.reshape(HW, Chid).astype(jnp.bfloat16),
                                w2_ref[i], preferred_element_type=jnp.float32)

    y = acc_ref[...] + b2_ref[...]
    y = y * jax.nn.sigmoid(y)                         # SiLU, f32
    o_ref[...] = y.reshape(1, HW, Cout).astype(o_ref.dtype)


# -----------------------------------------------------------------------------
# Primary entry point: NHWC in / NHWC out (no layout transposes).
# -----------------------------------------------------------------------------
def sppf_block_forward_nhwc(x_nhwc, params, pool_size=5):
    N, H, W, Cin = x_nhwc.shape
    Chid = params["w1"].shape[1]
    Cout = params["w2"].shape[1]
    p = pool_size // 2
    HW = H * W
    assert W % 8 == 0, "W must be a multiple of 8 so (H*W,C)<->(H,W,C) is a pure retile"

    # Fold BN scale into the conv weights: (x @ w) * s + b == x @ (w * s) + b.
    # Weights are fed to the MXU as bf16 (f32 accumulation happens in-kernel).
    w1f = (params["w1"] * params["s1"][None, :]).astype(jnp.bfloat16)
    w2f = (params["w2"] * params["s2"][None, :]).astype(jnp.bfloat16)
    w2f = w2f.reshape(4, Chid, Cout)                  # one slab per concat branch
    b1 = params["b1"].reshape(1, Chid).astype(jnp.float32)
    b2 = params["b2"].reshape(1, Cout).astype(jnp.float32)

    x_flat = x_nhwc.reshape(N, HW, Cin)               # free: NHWC is contiguous

    # Scoped-VMEM budget: double-buffered in/out blocks + weights + scratches + live
    # f32 intermediates, with ~50% headroom (defaults are only 16/32 MiB).
    itm = x_nhwc.dtype.itemsize
    est = (2 * HW * (Cin + Cout) * itm
           + 2 * ((Cin * Chid + 4 * Chid * Cout) * 2 + (Chid + Cout) * 4)
           + ((H + 2 * p) * W * Chid + HW * Cout) * 4
           + 8 * HW * max(Chid, Cout) * 4)
    vmem_limit = int(min(max(int(1.5 * est), 32 << 20), 112 << 20))

    kernel = functools.partial(_sppf_fused_kernel, H=H, W=W, pool=pool_size)
    y_flat = pl.pallas_call(
        kernel,
        out_shape=jax.ShapeDtypeStruct((N, HW, Cout), x_nhwc.dtype),
        grid_spec=pltpu.PrefetchScalarGridSpec(
            num_scalar_prefetch=0,
            grid=(N,),
            in_specs=[
                pl.BlockSpec((1, HW, Cin), lambda n: (n, 0, 0)),
                pl.BlockSpec((Cin, Chid), lambda n: (0, 0)),
                pl.BlockSpec((1, Chid), lambda n: (0, 0)),
                pl.BlockSpec((4, Chid, Cout), lambda n: (0, 0, 0)),
                pl.BlockSpec((1, Cout), lambda n: (0, 0)),
            ],
            out_specs=pl.BlockSpec((1, HW, Cout), lambda n: (n, 0, 0)),
            scratch_shapes=[
                pltpu.VMEM((H + 2 * p, W, Chid), jnp.float32),   # H-pass pool scratch
                pltpu.VMEM((HW, Cout), jnp.float32),             # pw2 f32 accumulator
            ],
        ),
        compiler_params=pltpu.CompilerParams(
            dimension_semantics=("parallel",),
            vmem_limit_bytes=vmem_limit),
    )(x_flat, w1f, b1, w2f, b2)
    return y_flat.reshape(N, H, W, Cout)


# -----------------------------------------------------------------------------
# PyTorch-interface adapter (NCHW in/out). In an NHWC network call the NHWC entry
# directly — these two transposes add 2x(x+y) HBM traffic on a memory-bound op.
# -----------------------------------------------------------------------------
def sppf_block_forward(x_nchw, params, pool_size=5):
    x = jnp.transpose(x_nchw, (0, 2, 3, 1))           # NCHW -> NHWC
    y = sppf_block_forward_nhwc(x, params, pool_size)
    return jnp.transpose(y, (0, 3, 1, 2))             # NHWC -> NCHW


# -----------------------------------------------------------------------------
# Pure-JAX f32 reference (original, unfused semantics) for validation.
# -----------------------------------------------------------------------------
def _ref_forward(x_nchw, params, pool_size=5):
    def pw(x, w, s, b):
        y = jnp.einsum("nhwc,cd->nhwd", x, w) * s + b
        return y * jax.nn.sigmoid(y)

    def mp(x):
        p = pool_size // 2
        return lax.reduce_window(x, -jnp.inf, lax.max,
                                 (1, pool_size, pool_size, 1), (1, 1, 1, 1),
                                 ((0, 0), (p, p), (p, p), (0, 0)))

    x = jnp.transpose(x_nchw, (0, 2, 3, 1))
    h = pw(x, params["w1"], params["s1"], params["b1"])
    o1 = mp(h); o2 = mp(o1); o3 = mp(o2)
    y = pw(jnp.concatenate([h, o1, o2, o3], axis=-1),
           params["w2"], params["s2"], params["b2"])
    return jnp.transpose(y, (0, 3, 1, 2))


if __name__ == "__main__":
    # Small shapes consistent with the module: in_channels=4 -> hidden=2, out_channels=8
    N, Cin, H, W = 2, 4, 16, 16
    Cout = 8
    Chid = Cin // 2
    pool_size = 5

    key = jax.random.PRNGKey(0)
    k1, k2, kx = jax.random.split(key, 3)

    # Deterministic synthetic parameters (Conv weights + folded BN scale/bias).
    params = {
        "w1": (jax.random.normal(k1, (Cin, Chid), jnp.float32) * 0.5),
        "s1": 1.0 + 0.1 * jnp.arange(Chid, dtype=jnp.float32),
        "b1": 0.05 * jnp.arange(Chid, dtype=jnp.float32) - 0.02,
        "w2": (jax.random.normal(k2, (4 * Chid, Cout), jnp.float32) * 0.5),
        "s2": 1.0 + 0.05 * jnp.arange(Cout, dtype=jnp.float32),
        "b2": 0.03 * jnp.arange(Cout, dtype=jnp.float32) - 0.1,
    }

    x = jax.random.normal(kx, (N, Cin, H, W), jnp.float32)

    out = jax.block_until_ready(sppf_block_forward(x, params, pool_size))
    ref = jax.block_until_ready(_ref_forward(x, params, pool_size))

    assert out.shape == (N, Cout, H, W), out.shape
    # Relaxed tolerance: the kernel feeds the MXU bf16 operands (per the perf review) and
    # splits pw2 into 4 partial matmuls, while the reference is unfused f32. Structural
    # bugs (wrong pooling / weights) would produce O(1) errors and still be caught.
    np.testing.assert_allclose(np.asarray(out), np.asarray(ref), rtol=5e-2, atol=1.5e-1)

    print("KERNEL_OK")
</pallas_src>

<mosaic_0001>
module attributes {stable_mosaic.version = 11 : i64} {
  func.func @_sppf_fused_kernel(%arg0: i32, %arg1: memref<1x256x4xf32, #tpu.memory_space<vmem>>, %arg2: memref<4x2xbf16, #tpu.memory_space<vmem>>, %arg3: memref<1x2xf32, #tpu.memory_space<vmem>>, %arg4: memref<4x2x8xbf16, #tpu.memory_space<vmem>>, %arg5: memref<1x8xf32, #tpu.memory_space<vmem>>, %arg6: memref<1x256x8xf32, #tpu.memory_space<vmem>>, %arg7: memref<20x16x2xf32, #tpu.memory_space<vmem>>, %arg8: memref<256x8xf32, #tpu.memory_space<vmem>>) attributes {dimension_semantics = [#tpu.dimension_semantics<parallel>], iteration_bounds = array<i64: 2>, scalar_prefetch = 0 : i64, scratch_operands = 2 : i64, tpu.core_type = #tpu.core_type<tc>, window_params = [{transform_indices = @transform_0, window_bounds = array<i64: 1, 256, 4>}, {pipeline_mode = #tpu.pipeline_mode<synchronous>, transform_indices = @transform_1, window_bounds = array<i64: 4, 2>}, {pipeline_mode = #tpu.pipeline_mode<synchronous>, transform_indices = @transform_2, window_bounds = array<i64: 1, 2>}, {pipeline_mode = #tpu.pipeline_mode<synchronous>, transform_indices = @transform_3, window_bounds = array<i64: 4, 2, 8>}, {pipeline_mode = #tpu.pipeline_mode<synchronous>, transform_indices = @transform_4, window_bounds = array<i64: 1, 8>}, {transform_indices = @transform_5, window_bounds = array<i64: 1, 256, 8>}]} {
    %cst = arith.constant 0xFF800000 : f32
    %0 = vector.broadcast %cst : f32 to vector<2x16x2xf32>
    %c0 = arith.constant 0 : index
    %c0_0 = arith.constant 0 : index
    %c0_1 = arith.constant 0 : index
    %1 = vector.load %arg7[%c0, %c0_0, %c0_1] : memref<20x16x2xf32, #tpu.memory_space<vmem>>, vector<2x16x2xf32>
    tpu.vector_store %arg7[%c0, %c0_0, %c0_1], %0 {strides = array<i32>} : memref<20x16x2xf32, #tpu.memory_space<vmem>>, vector<2x16x2xf32>,
    %cst_2 = arith.constant 0xFF800000 : f32
    %2 = vector.broadcast %cst_2 : f32 to vector<2x16x2xf32>
    %c18 = arith.constant 18 : index
    %c0_3 = arith.constant 0 : index
    %c0_4 = arith.constant 0 : index
    %3 = vector.load %arg7[%c18, %c0_3, %c0_4] : memref<20x16x2xf32, #tpu.memory_space<vmem>>, vector<2x16x2xf32>
    tpu.vector_store %arg7[%c18, %c0_3, %c0_4], %2 {strides = array<i32>} : memref<20x16x2xf32, #tpu.memory_space<vmem>>, vector<2x16x2xf32>,
    %c0_5 = arith.constant 0 : index
    %c0_6 = arith.constant 0 : index
    %c0_7 = arith.constant 0 : index
    %4 = vector.load %arg1[%c0_5, %c0_6, %c0_7] : memref<1x256x4xf32, #tpu.memory_space<vmem>>, vector<1x256x4xf32>
    %5 = vector.shape_cast %4 : vector<1x256x4xf32> to vector<256x4xf32>
    %6 = arith.truncf %5 : vector<256x4xf32> to vector<256x4xbf16>
    %c0_8 = arith.constant 0 : index
    %c0_9 = arith.constant 0 : index
    %7 = vector.load %arg2[%c0_8, %c0_9] : memref<4x2xbf16, #tpu.memory_space<vmem>>, vector<4x2xbf16>
    %cst_10 = arith.constant dense<0.000000e+00> : vector<256x2xf32>
    %8 = tpu.matmul %6, %7, %cst_10 {dimension_numbers = #tpu.dot_dimension_numbers<[1], [0], [0], [1], [0, 0, 1, 1], [], []>} : vector<256x4xbf16>, vector<4x2xbf16>, vector<256x2xf32> -> vector<256x2xf32>
    %c0_11 = arith.constant 0 : index
    %c0_12 = arith.constant 0 : index
    %9 = vector.load %arg3[%c0_11, %c0_12] : memref<1x2xf32, #tpu.memory_space<vmem>>, vector<1x2xf32>
    %10 = vector.broadcast %9 : vector<1x2xf32> to vector<256x2xf32>
    %11 = arith.addf %8, %10 : vector<256x2xf32>
    %12 = arith.negf %11 : vector<256x2xf32>
    %13 = math.exp %12 : vector<256x2xf32>
    %cst_13 = arith.constant 1.000000e+00 : f32
    %14 = vector.broadcast %cst_13 : f32 to vector<256x2xf32>
    %15 = arith.addf %14, %13 : vector<256x2xf32>
    %16 = arith.divf %14, %15 : vector<256x2xf32>
    %17 = arith.mulf %11, %16 : vector<256x2xf32>
    %18 = arith.truncf %17 : vector<256x2xf32> to vector<256x2xbf16>
    %c0_14 = arith.constant 0 : index
    %c0_15 = arith.constant 0 : index
    %c0_16 = arith.constant 0 : index
    %19 = vector.load %arg4[%c0_14, %c0_15, %c0_16] : memref<4x2x8xbf16, #tpu.memory_space<vmem>>, vector<1x2x8xbf16>
    %20 = vector.shape_cast %19 : vector<1x2x8xbf16> to vector<2x8xbf16>
    %cst_17 = arith.constant dense<0.000000e+00> : vector<256x8xf32>
    %21 = tpu.matmul %18, %20, %cst_17 {dimension_numbers = #tpu.dot_dimension_numbers<[1], [0], [0], [1], [0, 0, 1, 1], [], []>} : vector<256x2xbf16>, vector<2x8xbf16>, vector<256x8xf32> -> vector<256x8xf32>
    %c0_18 = arith.constant 0 : index
    %c0_19 = arith.constant 0 : index
    %22 = vector.load %arg8[%c0_18, %c0_19] : memref<256x8xf32, #tpu.memory_space<vmem>>, vector<256x8xf32>
    tpu.vector_store %arg8[%c0_18, %c0_19], %21 {strides = array<i32>} : memref<256x8xf32, #tpu.memory_space<vmem>>, vector<256x8xf32>,
    %23 = vector.shape_cast %17 : vector<256x2xf32> to vector<16x16x2xf32>
    %cst_20 = arith.constant 0xFF800000 : f32
    %24 = vector.broadcast %cst_20 : f32 to vector<16x8x2xf32>
    %25 = tpu.concatenate %23, %24 in 1 : vector<16x16x2xf32>, vector<16x8x2xf32> -> vector<16x24x2xf32>
    %c1_i32 = arith.constant 1 : i32
    %26 = tpu.dynamic_rotate %25 by %c1_i32 dim 1 : vector<16x24x2xf32>, i32 -> vector<16x24x2xf32>
    %27 = vector.extract_strided_slice %26 {offsets = [0, 0, 0], sizes = [16, 16, 2], strides = [1, 1, 1]} : vector<16x24x2xf32> to vector<16x16x2xf32>
    %c23_i32 = arith.constant 23 : i32
    %28 = tpu.dynamic_rotate %25 by %c23_i32 dim 1 : vector<16x24x2xf32>, i32 -> vector<16x24x2xf32>
    %29 = vector.extract_strided_slice %28 {offsets = [0, 0, 0], sizes = [16, 16, 2], strides = [1, 1, 1]} : vector<16x24x2xf32> to vector<16x16x2xf32>
    %30 = arith.maximumf %27, %29 : vector<16x16x2xf32>
    %31 = arith.maximumf %23, %30 : vector<16x16x2xf32>
    %c2_i32 = arith.constant 2 : i32
    %32 = tpu.dynamic_rotate %25 by %c2_i32 dim 1 : vector<16x24x2xf32>, i32 -> vector<16x24x2xf32>
    %33 = vector.extract_strided_slice %32 {offsets = [0, 0, 0], sizes = [16, 16, 2], strides = [1, 1, 1]} : vector<16x24x2xf32> to vector<16x16x2xf32>
    %c22_i32 = arith.constant 22 : i32
    %34 = tpu.dynamic_rotate %25 by %c22_i32 dim 1 : vector<16x24x2xf32>, i32 -> vector<16x24x2xf32>
    %35 = vector.extract_strided_slice %34 {offsets = [0, 0, 0], sizes = [16, 16, 2], strides = [1, 1, 1]} : vector<16x24x2xf32> to vector<16x16x2xf32>
    %36 = arith.maximumf %33, %35 : vector<16x16x2xf32>
    %37 = arith.maximumf %31, %36 : vector<16x16x2xf32>
    %c2 = arith.constant 2 : index
    %c0_21 = arith.constant 0 : index
    %c0_22 = arith.constant 0 : index
    %38 = vector.load %arg7[%c2, %c0_21, %c0_22] : memref<20x16x2xf32, #tpu.memory_space<vmem>>, vector<16x16x2xf32>
    tpu.vector_store %arg7[%c2, %c0_21, %c0_22], %37 {strides = array<i32>} : memref<20x16x2xf32, #tpu.memory_space<vmem>>, vector<16x16x2xf32>,
    %c0_23 = arith.constant 0 : index
    %c0_24 = arith.constant 0 : index
    %c0_25 = arith.constant 0 : index
    %39 = vector.load %arg7[%c0_23, %c0_24, %c0_25] : memref<20x16x2xf32, #tpu.memory_space<vmem>>, vector<16x16x2xf32>
    %c1 = arith.constant 1 : index
    %c0_26 = arith.constant 0 : index
    %c0_27 = arith.constant 0 : index
    %40 = vector.load %arg7[%c1, %c0_26, %c0_27] : memref<20x16x2xf32, #tpu.memory_space<vmem>>, vector<16x16x2xf32>
    %41 = arith.maximumf %39, %40 : vector<16x16x2xf32>
    %c2_28 = arith.constant 2 : index
    %c0_29 = arith.constant 0 : index
    %c0_30 = arith.constant 0 : index
    %42 = vector.load %arg7[%c2_28, %c0_29, %c0_30] : memref<20x16x2xf32, #tpu.memory_space<vmem>>, vector<16x16x2xf32>
    %43 = arith.maximumf %41, %42 : vector<16x16x2xf32>
    %c3 = arith.constant 3 : index
    %c0_31 = arith.constant 0 : index
    %c0_32 = arith.constant 0 : index
    %44 = vector.load %arg7[%c3, %c0_31, %c0_32] : memref<20x16x2xf32, #tpu.memory_space<vmem>>, vector<16x16x2xf32>
    %45 = arith.maximumf %43, %44 : vector<16x16x2xf32>
    %c4 = arith.constant 4 : index
    %c0_33 = arith.constant 0 : index
    %c0_34 = arith.constant 0 : index
    %46 = vector.load %arg7[%c4, %c0_33, %c0_34] : memref<20x16x2xf32, #tpu.memory_space<vmem>>, vector<16x16x2xf32>
    %47 = arith.maximumf %45, %46 : vector<16x16x2xf32>
    %c0_35 = arith.constant 0 : index
    %c0_36 = arith.constant 0 : index
    %48 = vector.load %arg8[%c0_35, %c0_36] : memref<256x8xf32, #tpu.memory_space<vmem>>, vector<256x8xf32>
    %49 = vector.shape_cast %47 : vector<16x16x2xf32> to vector<256x2xf32>
    %50 = arith.truncf %49 : vector<256x2xf32> to vector<256x2xbf16>
    %c1_37 = arith.constant 1 : index
    %c0_38 = arith.constant 0 : index
    %c0_39 = arith.constant 0 : index
    %51 = vector.load %arg4[%c1_37, %c0_38, %c0_39] : memref<4x2x8xbf16, #tpu.memory_space<vmem>>, vector<1x2x8xbf16>
    %52 = vector.shape_cast %51 : vector<1x2x8xbf16> to vector<2x8xbf16>
    %cst_40 = arith.constant dense<0.000000e+00> : vector<256x8xf32>
    %53 = tpu.matmul %50, %52, %cst_40 {dimension_numbers = #tpu.dot_dimension_numbers<[1], [0], [0], [1], [0, 0, 1, 1], [], []>} : vector<256x2xbf16>, vector<2x8xbf16>, vector<256x8xf32> -> vector<256x8xf32>
    %54 = arith.addf %48, %53 : vector<256x8xf32>
    %c0_41 = arith.constant 0 : index
    %c0_42 = arith.constant 0 : index
    %55 = vector.load %arg8[%c0_41, %c0_42] : memref<256x8xf32, #tpu.memory_space<vmem>>, vector<256x8xf32>
    tpu.vector_store %arg8[%c0_41, %c0_42], %54 {strides = array<i32>} : memref<256x8xf32, #tpu.memory_space<vmem>>, vector<256x8xf32>,
    %cst_43 = arith.constant 0xFF800000 : f32
    %56 = vector.broadcast %cst_43 : f32 to vector<16x8x2xf32>
    %57 = tpu.concatenate %47, %56 in 1 : vector<16x16x2xf32>, vector<16x8x2xf32> -> vector<16x24x2xf32>
    %c1_i32_44 = arith.constant 1 : i32
    %58 = tpu.dynamic_rotate %57 by %c1_i32_44 dim 1 : vector<16x24x2xf32>, i32 -> vector<16x24x2xf32>
    %59 = vector.extract_strided_slice %58 {offsets = [0, 0, 0], sizes = [16, 16, 2], strides = [1, 1, 1]} : vector<16x24x2xf32> to vector<16x16x2xf32>
    %c23_i32_45 = arith.constant 23 : i32
    %60 = tpu.dynamic_rotate %57 by %c23_i32_45 dim 1 : vector<16x24x2xf32>, i32 -> vector<16x24x2xf32>
    %61 = vector.extract_strided_slice %60 {offsets = [0, 0, 0], sizes = [16, 16, 2], strides = [1, 1, 1]} : vector<16x24x2xf32> to vector<16x16x2xf32>
    %62 = arith.maximumf %59, %61 : vector<16x16x2xf32>
    %63 = arith.maximumf %47, %62 : vector<16x16x2xf32>
    %c2_i32_46 = arith.constant 2 : i32
    %64 = tpu.dynamic_rotate %57 by %c2_i32_46 dim 1 : vector<16x24x2xf32>, i32 -> vector<16x24x2xf32>
    %65 = vector.extract_strided_slice %64 {offsets = [0, 0, 0], sizes = [16, 16, 2], strides = [1, 1, 1]} : vector<16x24x2xf32> to vector<16x16x2xf32>
    %c22_i32_47 = arith.constant 22 : i32
    %66 = tpu.dynamic_rotate %57 by %c22_i32_47 dim 1 : vector<16x24x2xf32>, i32 -> vector<16x24x2xf32>
    %67 = vector.extract_strided_slice %66 {offsets = [0, 0, 0], sizes = [16, 16, 2], strides = [1, 1, 1]} : vector<16x24x2xf32> to vector<16x16x2xf32>
    %68 = arith.maximumf %65, %67 : vector<16x16x2xf32>
    %69 = arith.maximumf %63, %68 : vector<16x16x2xf32>
    %c2_48 = arith.constant 2 : index
    %c0_49 = arith.constant 0 : index
    %c0_50 = arith.constant 0 : index
    %70 = vector.load %arg7[%c2_48, %c0_49, %c0_50] : memref<20x16x2xf32, #tpu.memory_space<vmem>>, vector<16x16x2xf32>
    tpu.vector_store %arg7[%c2_48, %c0_49, %c0_50], %69 {strides = array<i32>} : memref<20x16x2xf32, #tpu.memory_space<vmem>>, vector<16x16x2xf32>,
    %c0_51 = arith.constant 0 : index
    %c0_52 = arith.constant 0 : index
    %c0_53 = arith.constant 0 : index
    %71 = vector.load %arg7[%c0_51, %c0_52, %c0_53] : memref<20x16x2xf32, #tpu.memory_space<vmem>>, vector<16x16x2xf32>
    %c1_54 = arith.constant 1 : index
    %c0_55 = arith.constant 0 : index
    %c0_56 = arith.constant 0 : index
    %72 = vector.load %arg7[%c1_54, %c0_55, %c0_56] : memref<20x16x2xf32, #tpu.memory_space<vmem>>, vector<16x16x2xf32>
    %73 = arith.maximumf %71, %72 : vector<16x16x2xf32>
    %c2_57 = arith.constant 2 : index
    %c0_58 = arith.constant 0 : index
    %c0_59 = arith.constant 0 : index
    %74 = vector.load %arg7[%c2_57, %c0_58, %c0_59] : memref<20x16x2xf32, #tpu.memory_space<vmem>>, vector<16x16x2xf32>
    %75 = arith.maximumf %73, %74 : vector<16x16x2xf32>
    %c3_60 = arith.constant 3 : index
    %c0_61 = arith.constant 0 : index
    %c0_62 = arith.constant 0 : index
    %76 = vector.load %arg7[%c3_60, %c0_61, %c0_62] : memref<20x16x2xf32, #tpu.memory_space<vmem>>, vector<16x16x2xf32>
    %77 = arith.maximumf %75, %76 : vector<16x16x2xf32>
    %c4_63 = arith.constant 4 : index
    %c0_64 = arith.constant 0 : index
    %c0_65 = arith.constant 0 : index
    %78 = vector.load %arg7[%c4_63, %c0_64, %c0_65] : memref<20x16x2xf32, #tpu.memory_space<vmem>>, vector<16x16x2xf32>
    %79 = arith.maximumf %77, %78 : vector<16x16x2xf32>
    %c0_66 = arith.constant 0 : index
    %c0_67 = arith.constant 0 : index
    %80 = vector.load %arg8[%c0_66, %c0_67] : memref<256x8xf32, #tpu.memory_space<vmem>>, vector<256x8xf32>
    %81 = vector.shape_cast %79 : vector<16x16x2xf32> to vector<256x2xf32>
    %82 = arith.truncf %81 : vector<256x2xf32> to vector<256x2xbf16>
    %c2_68 = arith.constant 2 : index
    %c0_69 = arith.constant 0 : index
    %c0_70 = arith.constant 0 : index
    %83 = vector.load %arg4[%c2_68, %c0_69, %c0_70] : memref<4x2x8xbf16, #tpu.memory_space<vmem>>, vector<1x2x8xbf16>
    %84 = vector.shape_cast %83 : vector<1x2x8xbf16> to vector<2x8xbf16>
    %cst_71 = arith.constant dense<0.000000e+00> : vector<256x8xf32>
    %85 = tpu.matmul %82, %84, %cst_71 {dimension_numbers = #tpu.dot_dimension_numbers<[1], [0], [0], [1], [0, 0, 1, 1], [], []>} : vector<256x2xbf16>, vector<2x8xbf16>, vector<256x8xf32> -> vector<256x8xf32>
    %86 = arith.addf %80, %85 : vector<256x8xf32>
    %c0_72 = arith.constant 0 : index
    %c0_73 = arith.constant 0 : index
    %87 = vector.load %arg8[%c0_72, %c0_73] : memref<256x8xf32, #tpu.memory_space<vmem>>, vector<256x8xf32>
    tpu.vector_store %arg8[%c0_72, %c0_73], %86 {strides = array<i32>} : memref<256x8xf32, #tpu.memory_space<vmem>>, vector<256x8xf32>,
    %cst_74 = arith.constant 0xFF800000 : f32
    %88 = vector.broadcast %cst_74 : f32 to vector<16x8x2xf32>
    %89 = tpu.concatenate %79, %88 in 1 : vector<16x16x2xf32>, vector<16x8x2xf32> -> vector<16x24x2xf32>
    %c1_i32_75 = arith.constant 1 : i32
    %90 = tpu.dynamic_rotate %89 by %c1_i32_75 dim 1 : vector<16x24x2xf32>, i32 -> vector<16x24x2xf32>
    %91 = vector.extract_strided_slice %90 {offsets = [0, 0, 0], sizes = [16, 16, 2], strides = [1, 1, 1]} : vector<16x24x2xf32> to vector<16x16x2xf32>
    %c23_i32_76 = arith.constant 23 : i32
    %92 = tpu.dynamic_rotate %89 by %c23_i32_76 dim 1 : vector<16x24x2xf32>, i32 -> vector<16x24x2xf32>
    %93 = vector.extract_strided_slice %92 {offsets = [0, 0, 0], sizes = [16, 16, 2], strides = [1, 1, 1]} : vector<16x24x2xf32> to vector<16x16x2xf32>
    %94 = arith.maximumf %91, %93 : vector<16x16x2xf32>
    %95 = arith.maximumf %79, %94 : vector<16x16x2xf32>
    %c2_i32_77 = arith.constant 2 : i32
    %96 = tpu.dynamic_rotate %89 by %c2_i32_77 dim 1 : vector<16x24x2xf32>, i32 -> vector<16x24x2xf32>
    %97 = vector.extract_strided_slice %96 {offsets = [0, 0, 0], sizes = [16, 16, 2], strides = [1, 1, 1]} : vector<16x24x2xf32> to vector<16x16x2xf32>
    %c22_i32_78 = arith.constant 22 : i32
    %98 = tpu.dynamic_rotate %89 by %c22_i32_78 dim 1 : vector<16x24x2xf32>, i32 -> vector<16x24x2xf32>
    %99 = vector.extract_strided_slice %98 {offsets = [0, 0, 0], sizes = [16, 16, 2], strides = [1, 1, 1]} : vector<16x24x2xf32> to vector<16x16x2xf32>
    %100 = arith.maximumf %97, %99 : vector<16x16x2xf32>
    %101 = arith.maximumf %95, %100 : vector<16x16x2xf32>
    %c2_79 = arith.constant 2 : index
    %c0_80 = arith.constant 0 : index
    %c0_81 = arith.constant 0 : index
    %102 = vector.load %arg7[%c2_79, %c0_80, %c0_81] : memref<20x16x2xf32, #tpu.memory_space<vmem>>, vector<16x16x2xf32>
    tpu.vector_store %arg7[%c2_79, %c0_80, %c0_81], %101 {strides = array<i32>} : memref<20x16x2xf32, #tpu.memory_space<vmem>>, vector<16x16x2xf32>,
    %c0_82 = arith.constant 0 : index
    %c0_83 = arith.constant 0 : index
    %c0_84 = arith.constant 0 : index
    %103 = vector.load %arg7[%c0_82, %c0_83, %c0_84] : memref<20x16x2xf32, #tpu.memory_space<vmem>>, vector<16x16x2xf32>
    %c1_85 = arith.constant 1 : index
    %c0_86 = arith.constant 0 : index
    %c0_87 = arith.constant 0 : index
    %104 = vector.load %arg7[%c1_85, %c0_86, %c0_87] : memref<20x16x2xf32, #tpu.memory_space<vmem>>, vector<16x16x2xf32>
    %105 = arith.maximumf %103, %104 : vector<16x16x2xf32>
    %c2_88 = arith.constant 2 : index
    %c0_89 = arith.constant 0 : index
    %c0_90 = arith.constant 0 : index
    %106 = vector.load %arg7[%c2_88, %c0_89, %c0_90] : memref<20x16x2xf32, #tpu.memory_space<vmem>>, vector<16x16x2xf32>
    %107 = arith.maximumf %105, %106 : vector<16x16x2xf32>
    %c3_91 = arith.constant 3 : index
    %c0_92 = arith.constant 0 : index
    %c0_93 = arith.constant 0 : index
    %108 = vector.load %arg7[%c3_91, %c0_92, %c0_93] : memref<20x16x2xf32, #tpu.memory_space<vmem>>, vector<16x16x2xf32>
    %109 = arith.maximumf %107, %108 : vector<16x16x2xf32>
    %c4_94 = arith.constant 4 : index
    %c0_95 = arith.constant 0 : index
    %c0_96 = arith.constant 0 : index
    %110 = vector.load %arg7[%c4_94, %c0_95, %c0_96] : memref<20x16x2xf32, #tpu.memory_space<vmem>>, vector<16x16x2xf32>
    %111 = arith.maximumf %109, %110 : vector<16x16x2xf32>
    %c0_97 = arith.constant 0 : index
    %c0_98 = arith.constant 0 : index
    %112 = vector.load %arg8[%c0_97, %c0_98] : memref<256x8xf32, #tpu.memory_space<vmem>>, vector<256x8xf32>
    %113 = vector.shape_cast %111 : vector<16x16x2xf32> to vector<256x2xf32>
    %114 = arith.truncf %113 : vector<256x2xf32> to vector<256x2xbf16>
    %c3_99 = arith.constant 3 : index
    %c0_100 = arith.constant 0 : index
    %c0_101 = arith.constant 0 : index
    %115 = vector.load %arg4[%c3_99, %c0_100, %c0_101] : memref<4x2x8xbf16, #tpu.memory_space<vmem>>, vector<1x2x8xbf16>
    %116 = vector.shape_cast %115 : vector<1x2x8xbf16> to vector<2x8xbf16>
    %cst_102 = arith.constant dense<0.000000e+00> : vector<256x8xf32>
    %117 = tpu.matmul %114, %116, %cst_102 {dimension_numbers = #tpu.dot_dimension_numbers<[1], [0], [0], [1], [0, 0, 1, 1], [], []>} : vector<256x2xbf16>, vector<2x8xbf16>, vector<256x8xf32> -> vector<256x8xf32>
    %118 = arith.addf %112, %117 : vector<256x8xf32>
    %c0_103 = arith.constant 0 : index
    %c0_104 = arith.constant 0 : index
    %119 = vector.load %arg8[%c0_103, %c0_104] : memref<256x8xf32, #tpu.memory_space<vmem>>, vector<256x8xf32>
    tpu.vector_store %arg8[%c0_103, %c0_104], %118 {strides = array<i32>} : memref<256x8xf32, #tpu.memory_space<vmem>>, vector<256x8xf32>,
    %c0_105 = arith.constant 0 : index
    %c0_106 = arith.constant 0 : index
    %120 = vector.load %arg8[%c0_105, %c0_106] : memref<256x8xf32, #tpu.memory_space<vmem>>, vector<256x8xf32>
    %c0_107 = arith.constant 0 : index
    %c0_108 = arith.constant 0 : index
    %121 = vector.load %arg5[%c0_107, %c0_108] : memref<1x8xf32, #tpu.memory_space<vmem>>, vector<1x8xf32>
    %122 = vector.broadcast %121 : vector<1x8xf32> to vector<256x8xf32>
    %123 = arith.addf %120, %122 : vector<256x8xf32>
    %124 = arith.negf %123 : vector<256x8xf32>
    %125 = math.exp %124 : vector<256x8xf32>
    %cst_109 = arith.constant 1.000000e+00 : f32
    %126 = vector.broadcast %cst_109 : f32 to vector<256x8xf32>
    %127 = arith.addf %126, %125 : vector<256x8xf32>
    %128 = arith.divf %126, %127 : vector<256x8xf32>
    %129 = arith.mulf %123, %128 : vector<256x8xf32>
    %130 = vector.shape_cast %129 : vector<256x8xf32> to vector<1x256x8xf32>
    %c0_110 = arith.constant 0 : index
    %c0_111 = arith.constant 0 : index
    %c0_112 = arith.constant 0 : index
    %131 = vector.load %arg6[%c0_110, %c0_111, %c0_112] : memref<1x256x8xf32, #tpu.memory_space<vmem>>, vector<1x256x8xf32>
    tpu.vector_store %arg6[%c0_110, %c0_111, %c0_112], %130 {strides = array<i32>} : memref<1x256x8xf32, #tpu.memory_space<vmem>>, vector<1x256x8xf32>,
    return
  }
  func.func @transform_0(%arg0: i32) -> (i32, i32, i32) {
    %c0_i32 = arith.constant 0 : i32
    %c0_i32_0 = arith.constant 0 : i32
    %c0_i32_1 = arith.constant 0 : i32
    return %arg0, %c0_i32, %c0_i32_0 : i32, i32, i32
  }
  func.func @transform_1(%arg0: i32) -> (i32, i32) {
    %c0_i32 = arith.constant 0 : i32
    %c0_i32_0 = arith.constant 0 : i32
    %c0_i32_1 = arith.constant 0 : i32
    return %c0_i32, %c0_i32_0 : i32, i32
  }
  func.func @transform_2(%arg0: i32) -> (i32, i32) {
    %c0_i32 = arith.constant 0 : i32
    %c0_i32_0 = arith.constant 0 : i32
    %c0_i32_1 = arith.constant 0 : i32
    return %c0_i32, %c0_i32_0 : i32, i32
  }
  func.func @transform_3(%arg0: i32) -> (i32, i32, i32) {
    %c0_i32 = arith.constant 0 : i32
    %c0_i32_0 = arith.constant 0 : i32
    %c0_i32_1 = arith.constant 0 : i32
    %c0_i32_2 = arith.constant 0 : i32
    return %c0_i32, %c0_i32_0, %c0_i32_1 : i32, i32, i32
  }
  func.func @transform_4(%arg0: i32) -> (i32, i32) {
    %c0_i32 = arith.constant 0 : i32
    %c0_i32_0 = arith.constant 0 : i32
    %c0_i32_1 = arith.constant 0 : i32
    return %c0_i32, %c0_i32_0 : i32, i32
  }
  func.func @transform_5(%arg0: i32) -> (i32, i32, i32) {
    %c0_i32 = arith.constant 0 : i32
    %c0_i32_0 = arith.constant 0 : i32
    %c0_i32_1 = arith.constant 0 : i32
    return %arg0, %c0_i32, %c0_i32_0 : i32, i32, i32
  }
}

</mosaic_0001>

<bundles_post_ra>
// kernel: tpu_custom_call.1
= control target key start
LH: loop header
LB: loop body
LE: loop exit
PB: predicated region body
PF: predicated region fallthrough
CT: control target
= control target key end

     0   :  { %s5204_s18 = smov 0   ;;  %s8269_s0 = inlined_call_operand.vmem [shape: f32[2,256,4], index: 0, kind: input, shape index: {}]   ;;  %s8270_s1 = inlined_call_operand.vmem [shape: bf16[4,2], index: 1, kind: input, shape index: {}]   ;;  %s8271_s2 = inlined_call_operand.vmem [shape: f32[1,2], index: 2, kind: input, shape index: {}]   ;;  %s8272_s3 = inlined_call_operand.vmem [shape: bf16[4,2,8], index: 3, kind: input, shape index: {}]   ;;  %s8273_s4 = inlined_call_operand.vmem [shape: f32[1,8], index: 4, kind: input, shape index: {}]   ;;  %s8274_s5 = inlined_call_operand.vmem [shape: f32[2,256,8], index: 5, kind: output, shape index: {}]  }
   0x1 LB: > { %s4475_s19 = sadd.s32 4294967295, %s5171_s18   ;;  %p4479_p0 = scmp.ge.s32.totalorder %s5171_s18, 1  ;;  %s5171_s18 = sphi %s5204_s18, %s15_s18  }
   0x2   : > { %p187_p1 = scmp.lt.s32.totalorder %s5171_s18, 3 }
   0x4   : > { %p188_p2 = pnand %p4479_p0, %p187_p1 }
   0x6   : > { %191 = sbr.rel (%p188_p2) target bundleno = 977 (0x3d1), region = 40 }
   0xd   : > { %v284_v0 = vld [vmem:[%s8270_s1] sm:$0x3]  ;;  %vm341_vm0 = vcmask 1041408   ;;  %p215_p3 = scmp.lt.s32.totalorder %s4475_s19, 1  ;;  %vm292_vm1 = vcmask 31744   ;;  %vm795_vm2 = vcmask 1040384  }
   0xe   : > { %4894 = vmatprep.subr.msk.bf16.mxu0 %vm341_vm0, %v284_v0  ;;  %4895 = vmatprep.subr.msk.bf16.mxu1 %vm341_vm0, %v284_v0  ;;  %v343_v1 = vsel %vm341_vm0, %v284_v0, 0  ;;  %v746_v50 = vld [vmem:[%s8272_s3] sm:$0x1]  ;;  %vm226_vm7 = vcmask 15360   ;;  %vm960_vm8 = vcmask 64512  }
   0xf   : > { %4723 = vmatpush3.bf16.msra.mxu0 %v343_v1  ;;  %4893 = vmatpush3.bf16.msra.mxu1 %v343_v1  ;;  %s8447_s19 = smov (!%p215_p3, %s4475_s19), 1  ;;  %v797_v51 = vsel %vm795_vm2, %v746_v50, 0  ;;  %v5281_v52 = vld [vmem:[%s8271_s2] ss:$0 sm:$0xff] }
  0x10   : > { %s4635_s22 = sshll.u32 %s8447_s19, 8  ;;  %4896 = vmatprep.subr.msk.bf16.mxu1 %vm795_vm2, %v746_v50 }
  0x11   : > { %s5223_s25 = scalar_lea.vmem %s8269_s0, %s4635_s22  ;;  %s8040_s15 = scalar_lea.vmem %s8274_s5, %s4635_s22 }
  0x12   : > { %v236_v2 = vld [vmem:[%s5223_s25] sm:$0xff]  ;;  %v237_v3 = vld [vmem:[%s5223_s25 + $0x8] sm:$0xff]  ;;  %v238_v7 = vld [vmem:[%s5223_s25 + $0x10] sm:$0xff] }
  0x13   : > { %v252_v4 = vld [vmem:[%s5223_s25 + $0x80] sm:$0xff]  ;;  %v268_v5 = vpack.c.bf16 %v237_v3, %v236_v2  ;;  %v253_v6 = vld [vmem:[%s5223_s25 + $0x88] sm:$0xff]  ;;  %v239_v8 = vld [vmem:[%s5223_s25 + $0x18] sm:$0xff] }
  0x14   : > { %v276_v9 = vpack.c.bf16 %v253_v6, %v252_v4  ;;  %v269_v10 = vpack.c.bf16 %v239_v8, %v238_v7  ;;  %v254_v11 = vld [vmem:[%s5223_s25 + $0x90] sm:$0xff]  ;;  %v255_v12 = vld [vmem:[%s5223_s25 + $0x98] sm:$0xff]  ;;  %v240_v13 = vld [vmem:[%s5223_s25 + $0x20] sm:$0xff] }
  0x15   : > { %4724 = vmatprep.mubr.msk.bf16.mxu0 %vm292_vm1, %v268_v5  ;;  %v277_v14 = vpack.c.bf16 %v255_v12, %v254_v11  ;;  %v241_v15 = vld [vmem:[%s5223_s25 + $0x28] sm:$0xff]  ;;  %v256_v16 = vld [vmem:[%s5223_s25 + $0xa0] sm:$0xff]  ;;  %v242_v20 = vld [vmem:[%s5223_s25 + $0x30] sm:$0xff] }
  0x16   : > { %v257_v17 = vld [vmem:[%s5223_s25 + $0xa8] sm:$0xff]  ;;  %4740 = vmatprep.mubr.msk.bf16.mxu1 %vm292_vm1, %v276_v9  ;;  %4725 = vmatmul.mubr.msk.bf16.vlgmr.msra.gmra.mrb[0].mxu0 %vm292_vm1, %v269_v10  ;;  %v270_v18 = vpack.c.bf16 %v241_v15, %v240_v13  ;;  %v243_v21 = vld [vmem:[%s5223_s25 + $0x38] sm:$0xff]  ;;  %v258_v22 = vld [vmem:[%s5223_s25 + $0xb0] sm:$0xff] }
  0x17   : > { %v278_v19 = vpack.c.bf16 %v257_v17, %v256_v16  ;;  %4741 = vmatmul.mubr.msk.bf16.vlgmr.msra.gmra.mrb[0].mxu1 %vm292_vm1, %v277_v14  ;;  %v259_v23 = vld [vmem:[%s5223_s25 + $0xb8] sm:$0xff]  ;;  %v244_v24 = vld [vmem:[%s5223_s25 + $0x40] sm:$0xff]  ;;  %v245_v25 = vld [vmem:[%s5223_s25 + $0x48] sm:$0xff]  ;;  %v271_v28 = vpack.c.bf16 %v243_v21, %v242_v20 }
  0x18   : > { %4728 = vmatprep.mubr.msk.bf16.mxu0 %vm292_vm1, %v270_v18  ;;  %v260_v26 = vld [vmem:[%s5223_s25 + $0xc0] sm:$0xff]  ;;  %v261_v27 = vld [vmem:[%s5223_s25 + $0xc8] sm:$0xff]  ;;  %v279_v29 = vpack.c.bf16 %v259_v23, %v258_v22  ;;  %v272_v30 = vpack.c.bf16 %v245_v25, %v244_v24  ;;  %v246_v32 = vld [vmem:[%s5223_s25 + $0x50] sm:$0xff]  ;;  %4757 = vmatpush3.bf16.msra.mxu1 %v797_v51 }
  0x19   : > { %4744 = vmatprep.mubr.msk.bf16.mxu1 %vm292_vm1, %v278_v19  ;;  %v280_v31 = vpack.c.bf16 %v261_v27, %v260_v26  ;;  %v247_v33 = vld [vmem:[%s5223_s25 + $0x58] sm:$0xff]  ;;  %v262_v34 = vld [vmem:[%s5223_s25 + $0xd0] sm:$0xff]  ;;  %v248_v36 = vld [vmem:[%s5223_s25 + $0x60] sm:$0xff] }
  0x1a   : > { %v263_v35 = vld [vmem:[%s5223_s25 + $0xd8] sm:$0xff]  ;;  %v249_v37 = vld [vmem:[%s5223_s25 + $0x68] sm:$0xff]  ;;  %v264_v38 = vld [vmem:[%s5223_s25 + $0xe0] sm:$0xff]  ;;  %v273_v40 = vpack.c.bf16 %v247_v33, %v246_v32 }
  0x1b   : > { %v265_v39 = vld [vmem:[%s5223_s25 + $0xe8] sm:$0xff]  ;;  %v281_v41 = vpack.c.bf16 %v263_v35, %v262_v34  ;;  %v274_v42 = vpack.c.bf16 %v249_v37, %v248_v36  ;;  %v250_v44 = vld [vmem:[%s5223_s25 + $0x70] sm:$0xff]  ;;  %v251_v45 = vld [vmem:[%s5223_s25 + $0x78] sm:$0xff]  ;;  %v1025_v36 = vlaneseq }
  0x1c   : > { %v282_v43 = vpack.c.bf16 %v265_v39, %v264_v38  ;;  %v266_v46 = vld [vmem:[%s5223_s25 + $0xf0] sm:$0xff]  ;;  %v267_v47 = vld [vmem:[%s5223_s25 + $0xf8] sm:$0xff]  ;;  %v275_v48 = vpack.c.bf16 %v251_v45, %v250_v44 }
  0x1d   : > { %v283_v49 = vpack.c.bf16 %v267_v47, %v266_v46 }
  0x1e   : > { %4729 = vmatmul.mubr.msk.bf16.gmra.mrb[4].mxu0 %vm292_vm1, %v271_v28 }
  0x1f   : > { %4745 = vmatmul.mubr.msk.bf16.gmra.mrb[4].mxu1 %vm292_vm1, %v279_v29  ;;  %4732 = vmatprep.mubr.msk.bf16.mxu0 %vm292_vm1, %v272_v30 }
  0x20   : > { %4748 = vmatprep.mubr.msk.bf16.mxu1 %vm292_vm1, %v280_v31 }
  0x26   : > { %4733 = vmatmul.mubr.msk.bf16.gmra.mrb[8].mxu0 %vm292_vm1, %v273_v40 }
  0x27   : > { %4749 = vmatmul.mubr.msk.bf16.gmra.mrb[8].mxu1 %vm292_vm1, %v281_v41  ;;  %4736 = vmatprep.mubr.msk.bf16.mxu0 %vm292_vm1, %v274_v42 }
  0x28   : > { %4752 = vmatprep.mubr.msk.bf16.mxu1 %vm292_vm1, %v282_v43 }
  0x2e   : > { %4737 = vmatmul.mubr.msk.bf16.gmra.mrb[12].mxu0 %vm292_vm1, %v275_v48 }
  0x2f   : > { %4753 = vmatmul.mubr.msk.bf16.gmra.mrb[12].mxu1 %vm292_vm1, %v283_v49 }
  0xe9   : > { %v4726_v53 = vpop.f32.mrb[0].mxu0 }
  0xea   : > { %v5284_v54 = vadd.f32 %v4726_v53, %v5281_v52  ;;  %v4742_v55 = vpop.f32.mrb[0].mxu1  ;;  %v379_v56 = vpop.f32.mrb[1].mxu0 }
  0xeb   : > { %v5287_v57 = vadd.f32 %v4742_v55, %v5281_v52  ;;  %v5290_v58 = vadd.f32 %v5281_v52, %v379_v56  ;;  %v443_v59 = vpop.f32.mrb[1].mxu1  ;;  %v4727_v60 = vpop.f32.mrb[2].mxu0  ;;  %v5338_v55 = vshrl.u32 %v1025_v36, 7 }
  0xec   : > { %v4503_v61 = vmul.f32 -1.442695, %v5284_v54  ;;  %v5294_v62 = vadd.f32 %v5281_v52, %v443_v59  ;;  %v5297_v63 = vadd.f32 %v4727_v60, %v5281_v52  ;;  %v4743_v0 = vpop.f32.mrb[2].mxu1  ;;  %v382_v1 = vpop.f32.mrb[3].mxu0 }
  0xed   : > { %v4519_v2 = vmul.f32 -1.442695, %v5287_v57  ;;  %v4501_v3 = vmul.f32 -1.442695, %v5290_v58  ;;  %v5302_v4 = vadd.f32 %v4743_v0, %v5281_v52  ;;  %v5305_v5 = vadd.f32 %v5281_v52, %v382_v1  ;;  %v446_v6 = vpop.f32.mrb[3].mxu1 }
  0xee   : > { %4909 = vpow2.f32 %v4503_v61  ;;  %v4517_v7 = vmul.f32 -1.442695, %v5294_v62  ;;  %v4504_v8 = vmul.f32 -1.442695, %v5297_v63  ;;  %v5310_v9 = vadd.f32 %v5281_v52, %v446_v6 }
  0xef   : > { %4911 = vpow2.f32 %v4519_v2  ;;  %v4520_v10 = vmul.f32 -1.442695, %v5302_v4  ;;  %v4502_v11 = vmul.f32 -1.442695, %v5305_v5  ;;  %vm1027_vm3 = vcmp.lt.s32.totalorder %v5338_v55, 1 }
  0xf0   : > { %4913 = vpow2.f32 %v4501_v3  ;;  %v4518_v12 = vmul.f32 -1.442695, %v5310_v9  ;;  %vm1221_vm4 = vcmp.lt.s32.totalorder %v5338_v55, 2  ;;  %vm1092_vm5 = vcmp.lt.s32.totalorder %v5338_v55, 7 }
  0xf1   : > { %4915 = vpow2.f32 %v4517_v7  ;;  %v4730_v13 = vpop.f32.mrb[4].mxu0  ;;  %vm1286_vm6 = vcmp.lt.s32.totalorder %v5338_v55, 6 }
  0xf2   : > { %4917 = vpow2.f32 %v4504_v8  ;;  %v5316_v14 = vadd.f32 %v4730_v13, %v5281_v52  ;;  %v4746_v15 = vpop.f32.mrb[4].mxu1  ;;  %v395_v16 = vpop.f32.mrb[5].mxu0 }
  0xf3   : > { %4919 = vpow2.f32 %v4520_v10  ;;  %v5319_v17 = vadd.f32 %v4746_v15, %v5281_v52  ;;  %v5322_v18 = vadd.f32 %v5281_v52, %v395_v16  ;;  %v459_v19 = vpop.f32.mrb[5].mxu1  ;;  %v4731_v20 = vpop.f32.mrb[6].mxu0 }
  0xf4   : > { %4921 = vpow2.f32 %v4502_v11  ;;  %v4507_v21 = vmul.f32 -1.442695, %v5316_v14  ;;  %v5326_v22 = vadd.f32 %v5281_v52, %v459_v19  ;;  %v5329_v23 = vadd.f32 %v4731_v20, %v5281_v52  ;;  %v4747_v24 = vpop.f32.mrb[6].mxu1  ;;  %v398_v25 = vpop.f32.mrb[7].mxu0 }
  0xf5   : > { %8309 = vst [vmem:[#allocation4_spill] sm:$0xff] %v5322_v18  ;;  %4923 = vpow2.f32 %v4518_v12  ;;  %v4523_v26 = vmul.f32 -1.442695, %v5319_v17  ;;  %v4505_v27 = vmul.f32 -1.442695, %v5322_v18  ;;  %v462_v28 = vpop.f32.mrb[7].mxu1  ;;  %v5336_v50 = vadd.f32 %v4747_v24, %v5281_v52 }
  0xf6   : > { %8310 = vst [vmem:[#allocation5_spill] sm:$0xff] %v5326_v22  ;;  %4925 = vpow2.f32 %v4507_v21  ;;  %v4521_v29 = vmul.f32 -1.442695, %v5326_v22  ;;  %v4508_v30 = vmul.f32 -1.442695, %v5329_v23  ;;  %v5341_v59 = vadd.f32 %v5281_v52, %v398_v25 }
  0xf7   : > { %4927 = vpow2.f32 %v4523_v26  ;;  %8311 = vst [vmem:[#allocation6_spill] sm:$0xff] %v5336_v50  ;;  %v5344_v0 = vadd.f32 %v5281_v52, %v462_v28  ;;  %v5350_v8 = vmul.f32 -1.442695, %v5336_v50 }
  0xf8   : > { %v4910_v31 = vpop.eup %4909  ;;  %4929 = vpow2.f32 %v4505_v27  ;;  %8312 = vst [vmem:[#allocation7_spill] sm:$0xff] %v5341_v59  ;;  %v5356_v13 = vmul.f32 -1.442695, %v5341_v59 }
  0xf9   : > { %v4912_v32 = vpop.eup %4911  ;;  %v604_v33 = vadd.f32 1.0, %v4910_v31  ;;  %4931 = vpow2.f32 %v4521_v29  ;;  %v4734_v34 = vpop.f32.mrb[8].mxu0  ;;  %8313 = vst [vmem:[#allocation8_spill] sm:$0xff] %v5344_v0  ;;  %v5364_v21 = vmul.f32 -1.442695, %v5344_v0 }
  0xfa   : > { %v4914_v35 = vpop.eup %4913  ;;  %v620_v37 = vadd.f32 1.0, %v4912_v32  ;;  %4933 = vpow2.f32 %v4508_v30  ;;  %v4750_v38 = vpop.f32.mrb[8].mxu1  ;;  %v5347_v3 = vadd.f32 %v4734_v34, %v5281_v52 }
  0xfb   : > { %v411_v39 = vpop.f32.mrb[9].mxu0  ;;  %v4916_v40 = vpop.eup %4915  ;;  %4935 = vrcp.f32 %v604_v33  ;;  %v602_v41 = vadd.f32 1.0, %v4914_v35  ;;  %8315 = vst [vmem:[#allocation10_spill] sm:$0xff] %v5364_v21  ;;  %v5374_v28 = vadd.f32 %v4750_v38, %v5281_v52 }
  0xfc   : > { %v475_v42 = vpop.f32.mrb[9].mxu1  ;;  %v4735_v43 = vpop.f32.mrb[10].mxu0  ;;  %4937 = vrcp.f32 %v620_v37  ;;  %v618_v45 = vadd.f32 1.0, %v4916_v40  ;;  %8314 = vst [vmem:[#allocation9_spill] sm:$0xff] %v5347_v3  ;;  %v5371_v27 = vmul.f32 -1.442695, %v5347_v3  ;;  %v5377_v29 = vadd.f32 %v5281_v52, %v411_v39 }
  0xfd   : > { %v4918_v44 = vpop.eup %4917  ;;  %v4751_v46 = vpop.f32.mrb[10].mxu1  ;;  %4939 = vrcp.f32 %v602_v41  ;;  %v5385_v34 = vadd.f32 %v5281_v52, %v475_v42  ;;  %v5388_v35 = vadd.f32 %v4735_v43, %v5281_v52 }
  0xfe   : > { %v414_v47 = vpop.f32.mrb[11].mxu0  ;;  %v4920_v48 = vpop.eup %4919  ;;  %v605_v49 = vadd.f32 1.0, %v4918_v44  ;;  %4941 = vrcp.f32 %v618_v45  ;;  %8316 = vst [vmem:[#allocation11_spill] sm:$0xff] %v5371_v27  ;;  %v5397_v39 = vadd.f32 %v4751_v46, %v5281_v52 }
  0xff   : > { %v478_v51 = vpop.f32.mrb[11].mxu1  ;;  %v4922_v53 = vpop.eup %4921  ;;  %v621_v56 = vadd.f32 1.0, %v4920_v48  ;;  %v5400_v40 = vadd.f32 %v5281_v52, %v414_v47 }
 0x100   : > { %v4924_v60 = vpop.eup %4923  ;;  %4943 = vrcp.f32 %v605_v49  ;;  %v603_v61 = vadd.f32 1.0, %v4922_v53  ;;  %v5408_v44 = vadd.f32 %v5281_v52, %v478_v51 }
 0x101   : > { %v4926_v1 = vpop.eup %4925  ;;  %4945 = vrcp.f32 %v621_v56  ;;  %v619_v2 = vadd.f32 1.0, %v4924_v60  ;;  %v5352_v10 = vpop.f32.mrb[12].mxu0 }
 0x102   : > { %v4928_v6 = vpop.eup %4927  ;;  %v608_v7 = vadd.f32 1.0, %v4926_v1  ;;  %v5358_v15 = vpop.f32.mrb[12].mxu1  ;;  %4947 = vrcp.f32 %v603_v61 }
 0x103   : > { %v4930_v11 = vpop.eup %4929  ;;  %v624_v12 = vadd.f32 1.0, %v4928_v6  ;;  %v5360_v16 = vpop.f32.mrb[13].mxu0  ;;  %4949 = vrcp.f32 %v619_v2 }
 0x104   : > { %v4932_v19 = vpop.eup %4931  ;;  %v606_v20 = vadd.f32 1.0, %v4930_v11  ;;  %v5366_v24 = vpop.f32.mrb[13].mxu1  ;;  %4951 = vrcp.f32 %v608_v7 }
 0x105   : > { %v5368_v25 = vpop.f32.mrb[14].mxu0  ;;  %v4934_v26 = vpop.eup %4933  ;;  %4953 = vrcp.f32 %v624_v12  ;;  %v5405_v43 = vadd.f32 1.0, %v4932_v19 }
 0x106   : > { %v5379_v30 = vpop.f32.mrb[14].mxu1  ;;  %v5381_v31 = vpop.f32.mrb[15].mxu0  ;;  %v609_v33 = vadd.f32 1.0, %v4934_v26  ;;  %4955 = vrcp.f32 %v606_v20 }
 0x107   : > { %v4936_v32 = vpop.eup %4935  ;;  %v5390_v36 = vpop.f32.mrb[15].mxu1 }
 0x108   : > { %8317 = vst [vmem:[#allocation12_spill] sm:$0xff] %v5390_v36  ;;  %v4938_v37 = vpop.eup %4937  ;;  %v5393_v38 = vmul.f32 %v4936_v32, %v5284_v54  ;;  %4957 = vrcp.f32 %v609_v33 }
 0x109   : > { %v4940_v41 = vpop.eup %4939  ;;  %v5403_v42 = vmul.f32 %v4938_v37, %v5287_v57  ;;  %4959 = vrcp.f32 %v5405_v43  ;;  %v4527_v43 = vmul.f32 -1.442695, %v5374_v28 }
 0x10a   : > { %v4942_v54 = vpop.eup %4941  ;;  %v994_v45 = vrot.slane %v5393_v38, 7  ;;  %v1061_v48 = vrot.slane %v5393_v38, 1  ;;  %v1190_v46 = vrot.slane %v5393_v38, 6  ;;  %v1255_v49 = vrot.slane %v5393_v38, 2 }
 0x10b   : > { %8318 = vst [vmem:[#allocation13_spill] sm:$0xff] %v5403_v42  ;;  %v4944_v47 = vpop.eup %4943  ;;  %v1002_v57 = vrot.slane %v5403_v42, 7  ;;  %v1069_v53 = vrot.slane %v5403_v42, 1  ;;  %v1198_v56 = vrot.slane %v5403_v42, 6  ;;  %v1263_v61 = vrot.slane %v5403_v42, 2 }
 0x10c   : > { %v4946_v60 = vpop.eup %4945  ;;  %v1045_v51 = vsel %vm1027_vm3, -inf, %v994_v45  ;;  %v5421_v1 = vmul.f32 %v4940_v41, %v5290_v58  ;;  %v5424_v2 = vmul.f32 %v4942_v54, %v5294_v62  ;;  %v1239_v6 = vsel %vm1221_vm4, -inf, %v1190_v46 }
 0x10d   : > { %v1053_v7 = vsel %vm1027_vm3, -inf, %v1002_v57  ;;  %v5432_v11 = vsel %vm1221_vm4, -inf, %v1198_v56  ;;  %v5435_v12 = vmul.f32 %v4944_v47, %v5297_v63  ;;  %v5441_v20 = vmul.f32 %v4946_v60, %v5302_v4  ;;  %v4948_v26 = vpop.eup %4947 }
 0x10e   : > { %8319 = vst [vmem:[#allocation14_spill] sm:$0xff] %v5424_v2  ;;  %v993_v19 = vrot.slane %v5421_v1, 7  ;;  %v8278_v62 = vrot.slane %v5421_v1, 6  ;;  %v8280_v33 = vrot.slane %v5424_v2, 7  ;;  %v4950_v63 = vpop.eup %4949  ;;  %4961 = vpow2.f32 %v5350_v8 }
 0x10f   : > { %8320 = vst [vmem:[#allocation15_spill] sm:$0xff] %v5441_v20  ;;  %v1010_v4 = vrot.slane %v5435_v12, 7  ;;  %v1077_v60 = vrot.slane %v5435_v12, 1  ;;  %v5454_v58 = vpop.eup %4951  ;;  %v1206_v47 = vrot.slane %v5435_v12, 6  ;;  %v1271_v41 = vrot.slane %v5435_v12, 2 }
 0x110   : > { %v5449_v54 = vsel %vm1027_vm3, -inf, %v993_v19  ;;  %v5460_v37 = vsel %vm1221_vm4, -inf, %v8278_v62  ;;  %v5466_v32 = vsel %vm1027_vm3, -inf, %v8280_v33  ;;  %v5470_v3 = vpop.eup %4953  ;;  %v1018_v50 = vrot.slane %v5441_v20, 7 }
 0x111   : > { %v1029_v0 = vsel %vm1027_vm3, %v994_v45, %v1010_v4  ;;  %v1094_v59 = vsel %vm1092_vm5, %v1077_v60, -inf  ;;  %v1110_v62 = vsel %vm1092_vm5, %v1061_v48, %v1077_v60  ;;  %v5479_v36 = vpop.eup %4955  ;;  %v1223_v18 = vsel %vm1221_vm4, %v1190_v46, %v1206_v47 }
 0x112   : > { %v1127_v33 = vmax.f32 %v1045_v51, %v1110_v62  ;;  %v1128_v22 = vmax.f32 %v1029_v0, %v1094_v59  ;;  %v1288_v27 = vsel %vm1286_vm6, %v1271_v41, -inf  ;;  %v5485_v21 = vpop.eup %4957  ;;  %v1304_v45 = vsel %vm1286_vm6, %v1255_v49, %v1271_v41 }
 0x113   : > { %v1322_v4 = vmax.f32 %v1223_v18, %v1288_v27  ;;  %v1037_v48 = vsel %vm1027_vm3, %v1002_v57, %v1018_v50  ;;  %v1085_v60 = vrot.slane %v5441_v20, 1  ;;  %v1321_v0 = vmax.f32 %v1239_v6, %v1304_v45 }
 0x114   : > { %v1159_v51 = vmax.f32 %v5393_v38, %v1127_v33  ;;  %v1160_v59 = vmax.f32 %v5435_v12, %v1128_v22  ;;  %v1214_v46 = vrot.slane %v5441_v20, 6  ;;  %v1279_v18 = vrot.slane %v5441_v20, 2 }
 0x115   : > { %v1102_v62 = vsel %vm1092_vm5, %v1085_v60, -inf  ;;  %v1118_v47 = vsel %vm1092_vm5, %v1069_v53, %v1085_v60  ;;  %v5501_v27 = vmul.f32 %v4948_v26, %v5305_v5  ;;  %v8321_v60 = vrot.slane %v5424_v2, 6 }
 0x116   : > { %v1353_v50 = vmax.f32 %v1159_v51, %v1321_v0  ;;  %v1354_v49 = vmax.f32 %v1160_v59, %v1322_v4  ;;  %v1143_v57 = vmax.f32 %v1053_v7, %v1118_v47  ;;  %v1144_v33 = vmax.f32 %v1037_v48, %v1102_v62 }
 0x117   : > { %v1231_v22 = vsel %vm1221_vm4, %v1198_v56, %v1214_v46  ;;  %v1296_v6 = vsel %vm1286_vm6, %v1279_v18, -inf  ;;  %v1312_v41 = vsel %vm1286_vm6, %v1263_v61, %v1279_v18  ;;  %v1009_v53 = vrot.slane %v5501_v27, 7 }
 0x118   : > { %1386 = vst.msk [vmem:[#allocation2 + $0x30] sm:$0xff] %vm226_vm7, %v1353_v50  ;;  %1387 = vst.msk [vmem:[#allocation2 + $0x38] sm:$0xff] %vm226_vm7, %v1354_v49  ;;  %v1175_v5 = vmax.f32 %v5403_v42, %v1143_v57  ;;  %v1176_v7 = vmax.f32 %v5441_v20, %v1144_v33  ;;  %v1337_v26 = vmax.f32 %v5432_v11, %v1312_v41  ;;  %v1076_v4 = vrot.slane %v5501_v27, 1 }
 0x119   : > { %v1338_v45 = vmax.f32 %v1231_v22, %v1296_v6  ;;  %v1028_v56 = vsel %vm1027_vm3, %v993_v19, %v1009_v53  ;;  %v1205_v61 = vrot.slane %v5501_v27, 6  ;;  %v1270_v48 = vrot.slane %v5501_v27, 2 }
 0x11a   : > { %v1246_v51 = vsel %vm1221_vm4, -inf, %v8321_v60  ;;  %v1369_v59 = vmax.f32 %v1175_v5, %v1337_v26  ;;  %v5525_v46 = vmul.f32 %v4950_v63, %v5310_v9  ;;  %v1093_v11 = vsel %vm1092_vm5, %v1076_v4, -inf  ;;  %v5542_v9 = vld [vmem:[%s8272_s3 + $0x1] sm:$0x1] }
 0x11b   : > { %v1370_v0 = vmax.f32 %v1176_v7, %v1338_v45  ;;  %v8323_v19 = vrot.slane %v5421_v1, 1  ;;  %v8324_v47 = vrot.slane %v5421_v1, 6  ;;  %v1287_v50 = vsel %vm1286_vm6, %v1270_v48, -inf  ;;  %4897 = vmatprep.subr.msk.bf16.mxu0 %vm795_vm2, %v5542_v9 }
 0x11c   : > { %8322 = vst [vmem:[#allocation16_spill] sm:$0xff] %v5525_v46  ;;  %1402 = vst.msk [vmem:[#allocation2 + $0xb0] sm:$0xff] %vm226_vm7, %v1369_v59  ;;  %v1126_v49 = vmax.f32 %v1028_v56, %v1093_v11  ;;  %v8325_v57 = vrot.slane %v5421_v1, 2  ;;  %v1017_v41 = vrot.slane %v5525_v46, 7  ;;  %v1084_v53 = vrot.slane %v5525_v46, 1 }
 0x11d   : > { %v1109_v62 = vsel %vm1092_vm5, %v8323_v19, %v1076_v4  ;;  %v1222_v18 = vsel %vm1221_vm4, %v8324_v47, %v1205_v61  ;;  %1403 = vst.msk [vmem:[#allocation2 + $0xb8] sm:$0xff] %vm226_vm7, %v1370_v0  ;;  %v1213_v5 = vrot.slane %v5525_v46, 6  ;;  %v1278_v26 = vrot.slane %v5525_v46, 2 }
 0x11e   : > { %v1125_v63 = vmax.f32 %v5449_v54, %v1109_v62  ;;  %v1303_v33 = vsel %vm1286_vm6, %v8325_v57, %v1270_v48  ;;  %v1320_v22 = vmax.f32 %v1222_v18, %v1287_v50  ;;  %v1158_v7 = vmax.f32 %v5501_v27, %v1126_v49  ;;  %v5597_v57 = vld [vmem:[%s8272_s3 + $0x2] sm:$0x1] }
 0x11f   : > { %v1319_v6 = vmax.f32 %v5460_v37, %v1303_v33  ;;  %v5562_v45 = vmul.f32 %v5454_v58, %v5316_v14  ;;  %v8326_v56 = vrot.slane %v5424_v2, 7  ;;  %v1101_v4 = vsel %vm1092_vm5, %v1084_v53, -inf  ;;  %4898 = vmatprep.subr.msk.bf16.mxu1 %vm795_vm2, %v5597_v57 }
 0x120   : > { %v1157_v54 = vmax.f32 %v5421_v1, %v1125_v63  ;;  %v8327_v61 = vrot.slane %v5424_v2, 1  ;;  %v1230_v59 = vsel %vm1221_vm4, %v8321_v60, %v1213_v5  ;;  %v1352_v58 = vmax.f32 %v1158_v7, %v1320_v22 }
 0x121   : > { %v1036_v37 = vsel %vm1027_vm3, %v8326_v56, %v1017_v41  ;;  %v1295_v19 = vsel %vm1286_vm6, %v1278_v26, -inf  ;;  %v8328_v62 = vrot.slane %v5424_v2, 2  ;;  %v5588_v18 = vadd.f32 %v5352_v10, %v5281_v52 }
 0x122   : > { %v1117_v48 = vsel %vm1092_vm5, %v8327_v61, %v1084_v53  ;;  %v1351_v14 = vmax.f32 %v1157_v54, %v1319_v6  ;;  %v1142_v11 = vmax.f32 %v1036_v37, %v1101_v4  ;;  %1385 = vst.msk [vmem:[#allocation2 + $0x28] sm:$0xff] %vm226_vm7, %v1352_v58  ;;  %v1336_v49 = vmax.f32 %v1230_v59, %v1295_v19 }
 0x123   : > { %v1141_v0 = vmax.f32 %v5466_v32, %v1117_v48  ;;  %v1311_v47 = vsel %vm1286_vm6, %v8328_v62, %v1278_v26  ;;  %v5602_v10 = vadd.f32 %v5358_v15, %v5281_v52  ;;  %v5606_v33 = vadd.f32 %v5281_v52, %v5360_v16 }
 0x124   : > { %1384 = vst.msk [vmem:[#allocation2 + $0x20] sm:$0xff] %vm226_vm7, %v1351_v14  ;;  %v1174_v50 = vmax.f32 %v5525_v46, %v1142_v11  ;;  %v1335_v63 = vmax.f32 %v1246_v51, %v1311_v47  ;;  %v5610_v22 = vadd.f32 %v5281_v52, %v5366_v24  ;;  %v996_v41 = vrot.slane %v5562_v45, 7 }
 0x125   : > { %v1173_v32 = vmax.f32 %v5424_v2, %v1141_v0  ;;  %8329 = vst [vmem:[#allocation17_spill] sm:$0xff] %v5602_v10  ;;  %8330 = vst [vmem:[#allocation18_spill] sm:$0xff] %v5606_v33  ;;  %v4509_v53 = vmul.f32 -1.442695, %v5377_v29  ;;  %v5618_v15 = vmul.f32 %v5485_v21, %v5329_v23  ;;  %v4525_v16 = vmul.f32 -1.442695, %v5385_v34 }
 0x126   : > { %8331 = vst [vmem:[#allocation19_spill] sm:$0xff] %v5610_v22  ;;  %v1368_v6 = vmax.f32 %v1174_v50, %v1336_v49  ;;  %v4512_v5 = vmul.f32 -1.442695, %v5388_v35  ;;  %v4528_v24 = vmul.f32 -1.442695, %v5397_v39  ;;  %v5645_v37 = vadd.f32 %v5368_v25, %v5281_v52 }
 0x127   : > { %v1367_v51 = vmax.f32 %v1173_v32, %v1335_v63  ;;  %v5626_v54 = vmul.f32 -1.442695, %v5400_v40  ;;  %v5629_v7 = vmul.f32 -1.442695, %v5408_v44  ;;  %v5632_v26 = vmul.f32 -1.442695, %v5588_v18 }
 0x128   : > { %1401 = vst.msk [vmem:[#allocation2 + $0xa8] sm:$0xff] %vm226_vm7, %v1368_v6  ;;  %v5635_v23 = vmul.f32 -1.442695, %v5602_v10  ;;  %v5638_v21 = vmul.f32 -1.442695, %v5606_v33  ;;  %8332 = vst [vmem:[#allocation20_spill] sm:$0xff] %v5645_v37  ;;  %v5652_v48 = vadd.f32 %v5379_v30, %v5281_v52  ;;  %v5656_v60 = vadd.f32 %v5281_v52, %v5381_v31  ;;  %v4960_v31 = vpop.eup %4959 }
 0x129   : > { %1400 = vst.msk [vmem:[#allocation2 + $0xa0] sm:$0xff] %vm226_vm7, %v1367_v51  ;;  %v5641_v56 = vmul.f32 -1.442695, %v5610_v22  ;;  %v1047_v4 = vsel %vm1027_vm3, -inf, %v996_v41  ;;  %v1063_v61 = vrot.slane %v5562_v45, 1  ;;  %v1192_v59 = vrot.slane %v5562_v45, 6 }
 0x12a   : > { %8333 = vst [vmem:[#allocation21_spill] sm:$0xff] %v5652_v48  ;;  %8334 = vst [vmem:[#allocation22_spill] sm:$0xff] %v5656_v60  ;;  %v1257_v14 = vrot.slane %v5562_v45, 2  ;;  %v1012_v25 = vrot.slane %v5618_v15, 7  ;;  %v1079_v58 = vrot.slane %v5618_v15, 1  ;;  %v5664_v0 = vmul.f32 %v5470_v3, %v5319_v17  ;;  %v8336_v51 = vld [vmem:[#allocation10_spill] sm:$0xff] }
 0x12b   : > { %v1208_v11 = vrot.slane %v5618_v15, 6  ;;  %v1273_v30 = vrot.slane %v5618_v15, 2  ;;  %4963 = vpow2.f32 %v5356_v13  ;;  %v1241_v50 = vsel %vm1221_vm4, -inf, %v1192_v59 }
 0x12c   : > { %8335 = vst [vmem:[#allocation23_spill] sm:$0xff] %v5664_v0  ;;  %v1031_v19 = vsel %vm1027_vm3, %v996_v41, %v1012_v25  ;;  %v1096_v62 = vsel %vm1092_vm5, %v1079_v58, -inf  ;;  %v1112_v47 = vsel %vm1092_vm5, %v1063_v61, %v1079_v58  ;;  %4965 = vpow2.f32 %v8336_v51  ;;  %v8338_v25 = vld [vmem:[#allocation4_spill] sm:$0xff] }
 0x12d   : > { %v1131_v17 = vmax.f32 %v1047_v4, %v1112_v47  ;;  %v1132_v3 = vmax.f32 %v1031_v19, %v1096_v62  ;;  %v1225_v32 = vsel %vm1221_vm4, %v1192_v59, %v1208_v11  ;;  %v1290_v8 = vsel %vm1286_vm6, %v1273_v30, -inf  ;;  %v8337_v4 = vld [vmem:[#allocation11_spill] sm:$0xff]  ;;  %v8339_v59 = vld [vmem:[#allocation5_spill] sm:$0xff] }
 0x12e   : > { %v1306_v63 = vsel %vm1286_vm6, %v1257_v14, %v1273_v30  ;;  %v1326_v49 = vmax.f32 %v1225_v32, %v1290_v8  ;;  %4967 = vpow2.f32 %v8337_v4  ;;  %v1004_v61 = vrot.slane %v5664_v0, 7  ;;  %v5699_v14 = vld [vmem:[%s8272_s3 + $0x3] sm:$0x1] }
 0x12f   : > { %v1163_v6 = vmax.f32 %v5562_v45, %v1131_v17  ;;  %v1164_v13 = vmax.f32 %v5618_v15, %v1132_v3  ;;  %v1325_v41 = vmax.f32 %v1241_v50, %v1306_v63  ;;  %v5691_v58 = vmul.f32 %v5479_v36, %v8338_v25 }
 0x130   : > { %v5694_v11 = vmul.f32 %v4960_v31, %v8339_v59  ;;  %4969 = vpow2.f32 %v4527_v43  ;;  %v1806_v62 = vsel %vm795_vm2, %v5542_v9, 0  ;;  %v8287_v47 = vrot.slane %v5664_v0, 6 }
 0x131   : > { %v1357_v30 = vmax.f32 %v1163_v6, %v1325_v41  ;;  %v1358_v19 = vmax.f32 %v1164_v13, %v1326_v49  ;;  %4971 = vpow2.f32 %v4509_v53  ;;  %4791 = vmatpush3.bf16.msra.mxu0 %v1806_v62  ;;  %v730_v36 = vpack.c.bf16 %v5501_v27, %v5421_v1 }
 0x132   : > { %4973 = vpow2.f32 %v4525_v16  ;;  %v731_v43 = vpack.c.bf16 %v5435_v12, %v5393_v38  ;;  %v2836_v9 = vsel %vm795_vm2, %v5597_v57, 0  ;;  %4899 = vmatprep.subr.msk.bf16.mxu0 %vm795_vm2, %v5699_v14  ;;  %v8286_v1 = vrot.slane %v5691_v58, 7  ;;  %v4962_v12 = vpop.eup %4961 }
 0x133   : > { %1390 = vst.msk [vmem:[#allocation2 + $0x50] sm:$0xff] %vm226_vm7, %v1357_v30  ;;  %1391 = vst.msk [vmem:[#allocation2 + $0x58] sm:$0xff] %vm226_vm7, %v1358_v19  ;;  %4975 = vpow2.f32 %v4512_v5  ;;  %4758 = vmatprep.mubr.msk.bf16.mxu1 %vm226_vm7, %v730_v36  ;;  %v8285_v57 = vrot.slane %v5691_v58, 6  ;;  %v5173_v31 = vmov -inf   ;;  %v8284_v17 = vrot.slane %v5694_v11, 7 }
 0x134   : > { %4977 = vpow2.f32 %v4528_v24  ;;  %4759 = vmatmul.mubr.msk.bf16.vlgmr.msra.gmra.mrb[16].mxu1 %vm226_vm7, %v731_v43  ;;  %227 = vst.msk [vmem:[#allocation2] sm:$0xff] %vm226_vm7, %v5173_v31  ;;  %228 = vst.msk [vmem:[#allocation2 + $0x8] sm:$0xff] %vm226_vm7, %v5173_v31  ;;  %v625_v3 = vadd.f32 1.0, %v4962_v12  ;;  %v5742_v32 = vsel %vm1027_vm3, -inf, %v1004_v61  ;;  %v8283_v8 = vrot.slane %v5694_v11, 6  ;;  %v5785_v12 = vld [vmem:[#allocation2 + $0x28] sm:$0xff] }
 0x135   : > { %4979 = vpow2.f32 %v5626_v54  ;;  %229 = vst.msk [vmem:[#allocation2 + $0x10] sm:$0xff] %vm226_vm7, %v5173_v31  ;;  %230 = vst.msk [vmem:[#allocation2 + $0x18] sm:$0xff] %vm226_vm7, %v5173_v31  ;;  %v4964_v24 = vpop.eup %4963  ;;  %4825 = vmatpush3.bf16.msra.mxu1 %v2836_v9  ;;  %v5750_v49 = vsel %vm1221_vm4, -inf, %v8287_v47  ;;  %v5770_v25 = vsel %vm1027_vm3, -inf, %v8284_v17  ;;  %v5781_v43 = vmul.f32 -1.442695, %v5645_v37 }
 0x136   : > { %232 = vst.msk [vmem:[#allocation2 + $0x120] sm:$0xff] %vm226_vm7, %v5173_v31  ;;  %233 = vst.msk [vmem:[#allocation2 + $0x128] sm:$0xff] %vm226_vm7, %v5173_v31  ;;  %4981 = vpow2.f32 %v5629_v7  ;;  %v607_v50 = vadd.f32 1.0, %v4964_v24  ;;  %v4966_v63 = vpop.eup %4965  ;;  %v5756_v7 = vsel %vm1027_vm3, -inf, %v8286_v1  ;;  %v5778_v62 = vsel %vm1221_vm4, -inf, %v8283_v8  ;;  %v5783_v9 = vld [vmem:[#allocation2 + $0x20] sm:$0xff] }
 0x137   : > { %234 = vst.msk [vmem:[#allocation2 + $0x130] sm:$0xff] %vm226_vm7, %v5173_v31  ;;  %235 = vst.msk [vmem:[#allocation2 + $0x138] sm:$0xff] %vm226_vm7, %v5173_v31  ;;  %4983 = vpow2.f32 %v5632_v26  ;;  %v5763_v26 = vsel %vm1221_vm4, -inf, %v8285_v57  ;;  %v623_v41 = vadd.f32 1.0, %v4966_v63  ;;  %v8346_v1 = vld [vmem:[#allocation6_spill] sm:$0xff]  ;;  %v8350_v20 = vrot.slane %v5664_v0, 6 }
 0x138   : > { %4985 = vrcp.f32 %v625_v3  ;;  %v4968_v6 = vpop.eup %4967  ;;  %v8352_v22 = vrot.slane %v5691_v58, 7 }
 0x139   : > { %4987 = vrcp.f32 %v607_v50  ;;  %v612_v30 = vadd.f32 1.0, %v4968_v6 }
 0x13a   : > { %v4970_v4 = vpop.eup %4969  ;;  %4989 = vpow2.f32 %v5635_v23  ;;  %v5788_v23 = vmul.f32 -1.442695, %v5652_v48 }
 0x13b   : > { %v4972_v19 = vpop.eup %4971  ;;  %4991 = vrcp.f32 %v623_v41  ;;  %v628_v36 = vadd.f32 1.0, %v4970_v4  ;;  %v1416_v3 = vld [vmem:[#allocation2] sm:$0xff]  ;;  %v1417_v50 = vld [vmem:[#allocation2 + $0x8] sm:$0xff] }
 0x13c   : > { %v4974_v31 = vpop.eup %4973  ;;  %4993 = vrcp.f32 %v612_v30  ;;  %v610_v24 = vadd.f32 1.0, %v4972_v19  ;;  %v1449_v63 = vld [vmem:[#allocation2 + $0x10] sm:$0xff]  ;;  %v8340_v4 = vld [vmem:[#allocation12_spill] sm:$0xff]  ;;  %v1450_v16 = vld [vmem:[#allocation2 + $0x18] sm:$0xff]  ;;  %v5797_v19 = vmul.f32 -1.442695, %v5656_v60 }
 0x13d   : > { %v4976_v6 = vpop.eup %4975  ;;  %4995 = vrcp.f32 %v628_v36  ;;  %v626_v41 = vadd.f32 1.0, %v4974_v31  ;;  %v5792_v38 = vadd.f32 %v5281_v52, %v8340_v4  ;;  %v5794_v53 = vmax.f32 %v1416_v3, %v1449_v63  ;;  %v5801_v36 = vld [vmem:[#allocation2 + $0x30] sm:$0xff]  ;;  %v5803_v31 = vld [vmem:[#allocation2 + $0x38] sm:$0xff] }
 0x13e   : > { %v4978_v59 = vpop.eup %4977  ;;  %4997 = vrcp.f32 %v610_v24  ;;  %v613_v30 = vadd.f32 1.0, %v4976_v6  ;;  %v5799_v8 = vmax.f32 %v1417_v50, %v1450_v16  ;;  %8344 = vst [vmem:[#allocation5_spill] sm:$0xff] %v5803_v31  ;;  %v1483_v52 = vmax.f32 %v1449_v63, %v5783_v9 }
 0x13f   : > { %8341 = vst [vmem:[#allocation10_spill] sm:$0xff] %v5792_v38  ;;  %8342 = vst [vmem:[#allocation11_spill] sm:$0xff] %v5794_v53  ;;  %v4980_v13 = vpop.eup %4979  ;;  %4999 = vrcp.f32 %v626_v41  ;;  %v629_v17 = vadd.f32 1.0, %v4978_v59  ;;  %v1484_v3 = vmax.f32 %v1450_v16, %v5785_v12  ;;  %v1545_v6 = vmax.f32 %v5794_v53, %v5783_v9 }
 0x140   : > { %8343 = vst [vmem:[#allocation4_spill] sm:$0xff] %v5799_v8  ;;  %v4982_v4 = vpop.eup %4981  ;;  %5001 = vrcp.f32 %v613_v30  ;;  %v611_v24 = vadd.f32 1.0, %v4980_v13  ;;  %v1546_v50 = vmax.f32 %v5799_v8, %v5785_v12  ;;  %v5812_v41 = vmul.f32 -1.442695, %v5792_v38 }
 0x141   : > { %v4984_v51 = vpop.eup %4983  ;;  %5003 = vrcp.f32 %v629_v17  ;;  %v627_v59 = vadd.f32 1.0, %v4982_v4  ;;  %v5816_v63 = vsel %vm795_vm2, %v5699_v14, 0  ;;  %v5826_v4 = vmax.f32 %v1483_v52, %v5801_v36 }
 0x142   : > { %8345 = vst [vmem:[#allocation12_spill] sm:$0xff] %v5816_v63  ;;  %v4986_v16 = vpop.eup %4985  ;;  %5005 = vrcp.f32 %v611_v24  ;;  %v616_v30 = vadd.f32 1.0, %v4984_v51  ;;  %v5829_v14 = vmax.f32 %v1484_v3, %v5803_v31  ;;  %v8348_v51 = vld [vmem:[#allocation7_spill] sm:$0xff]  ;;  %v5837_v13 = vmax.f32 %v1545_v6, %v5801_v36 }
 0x143   : > { %v4988_v54 = vpop.eup %4987  ;;  %v5823_v17 = vmul.f32 %v4986_v16, %v8346_v1  ;;  %5007 = vrcp.f32 %v627_v59  ;;  %v5840_v57 = vmax.f32 %v1546_v50, %v5803_v31  ;;  %v8349_v53 = vrot.slane %v5664_v0, 1 }
 0x144   : > { %v5831_v5 = vpop.eup %4989  ;;  %v5834_v24 = vmul.f32 %v4988_v54, %v8348_v51  ;;  %5009 = vrcp.f32 %v616_v30 }
 0x145   : > { %8347 = vst [vmem:[#allocation6_spill] sm:$0xff] %v5823_v17  ;;  %v4992_v1 = vpop.eup %4991  ;;  %v1020_v59 = vrot.slane %v5823_v17, 7  ;;  %v1087_v52 = vrot.slane %v5823_v17, 1  ;;  %v1216_v3 = vrot.slane %v5823_v17, 6  ;;  %v1281_v16 = vrot.slane %v5823_v17, 2 }
 0x146   : > { %v4994_v47 = vpop.eup %4993  ;;  %v1011_v54 = vrot.slane %v5834_v24, 7  ;;  %v1078_v30 = vrot.slane %v5834_v24, 1  ;;  %v1207_v6 = vrot.slane %v5834_v24, 6  ;;  %v1272_v51 = vrot.slane %v5834_v24, 2 }
 0x147   : > { %v4996_v50 = vpop.eup %4995  ;;  %v1039_v27 = vsel %vm1027_vm3, %v1004_v61, %v1020_v59  ;;  %v1104_v8 = vsel %vm1092_vm5, %v1087_v52, -inf  ;;  %v1120_v42 = vsel %vm1092_vm5, %v8349_v53, %v1087_v52  ;;  %v1233_v2 = vsel %vm1221_vm4, %v8350_v20, %v1216_v3 }
 0x148   : > { %v4998_v46 = vpop.eup %4997  ;;  %v1147_v38 = vmax.f32 %v5742_v32, %v1120_v42  ;;  %v1148_v60 = vmax.f32 %v1039_v27, %v1104_v8  ;;  %v1298_v61 = vsel %vm1286_vm6, %v1281_v16, -inf  ;;  %v8351_v59 = vrot.slane %v5664_v0, 2 }
 0x149   : > { %v5000_v37 = vpop.eup %4999  ;;  %v1342_v52 = vmax.f32 %v1233_v2, %v1298_v61  ;;  %v1030_v20 = vsel %vm1027_vm3, %v8352_v22, %v1011_v54  ;;  %v1095_v42 = vsel %vm1092_vm5, %v1078_v30, -inf  ;;  %v8353_v3 = vrot.slane %v5691_v58, 1 }
 0x14a   : > { %v1314_v48 = vsel %vm1286_vm6, %v8351_v59, %v1281_v16  ;;  %v5002_v27 = vpop.eup %5001  ;;  %v1179_v32 = vmax.f32 %v5664_v0, %v1147_v38  ;;  %v1180_v8 = vmax.f32 %v5823_v17, %v1148_v60  ;;  %v8354_v22 = vrot.slane %v5691_v58, 6  ;;  %v8357_v0 = vld [vmem:[#allocation9_spill] sm:$0xff] }
 0x14b   : > { %v1341_v53 = vmax.f32 %v5750_v49, %v1314_v48  ;;  %v1111_v16 = vsel %vm1092_vm5, %v8353_v3, %v1078_v30  ;;  %v1130_v48 = vmax.f32 %v1030_v20, %v1095_v42  ;;  %v5884_v2 = vpop.eup %5003  ;;  %v1289_v38 = vsel %vm1286_vm6, %v1272_v51, -inf }
 0x14c   : > { %v1129_v49 = vmax.f32 %v5756_v7, %v1111_v16  ;;  %v1224_v54 = vsel %vm1221_vm4, %v8354_v22, %v1207_v6  ;;  %v8355_v60 = vrot.slane %v5691_v58, 2  ;;  %v5897_v59 = vpop.eup %5005  ;;  %v1374_v20 = vmax.f32 %v1180_v8, %v1342_v52  ;;  %v8356_v22 = vld [vmem:[#allocation8_spill] sm:$0xff] }
 0x14d   : > { %v1373_v30 = vmax.f32 %v1179_v32, %v1341_v53  ;;  %v1162_v42 = vmax.f32 %v5834_v24, %v1130_v48  ;;  %v5901_v3 = vpop.eup %5007  ;;  %v1324_v16 = vmax.f32 %v1224_v54, %v1289_v38  ;;  %v5905_v17 = vmul.f32 %v4992_v1, %v8356_v22 }
 0x14e   : > { %v1305_v61 = vsel %vm1286_vm6, %v8355_v60, %v1272_v51  ;;  %v1161_v6 = vmax.f32 %v5691_v58, %v1129_v49  ;;  %v5908_v33 = vmul.f32 %v4994_v47, %v8357_v0  ;;  %v5910_v51 = vpop.eup %5009  ;;  %1407 = vst.msk [vmem:[#allocation2 + $0xd8] sm:$0xff] %vm226_vm7, %v1374_v20  ;;  %v5915_v53 = vmul.f32 %v4996_v50, %v5374_v28 }
 0x14f   : > { %v1323_v7 = vmax.f32 %v5763_v26, %v1305_v61  ;;  %1406 = vst.msk [vmem:[#allocation2 + $0xd0] sm:$0xff] %vm226_vm7, %v1373_v30  ;;  %v5918_v26 = vmul.f32 %v4998_v46, %v5377_v29  ;;  %v5921_v52 = vmul.f32 %v5000_v37, %v5385_v34  ;;  %v5924_v1 = vmul.f32 %v5002_v27, %v5388_v35 }
 0x150   : > { %v1356_v47 = vmax.f32 %v1162_v42, %v1324_v16  ;;  %v1019_v32 = vrot.slane %v5905_v17, 7  ;;  %v1086_v8 = vrot.slane %v5905_v17, 1  ;;  %v1215_v48 = vrot.slane %v5905_v17, 6 }
 0x151   : > { %v1355_v0 = vmax.f32 %v1161_v6, %v1323_v7  ;;  %v1280_v28 = vrot.slane %v5905_v17, 2  ;;  %v998_v50 = vrot.slane %v5908_v33, 7  ;;  %v1065_v29 = vrot.slane %v5908_v33, 1 }
 0x152   : > { %1389 = vst.msk [vmem:[#allocation2 + $0x48] sm:$0xff] %vm226_vm7, %v1356_v47  ;;  %v8358_v34 = vrot.slane %v5694_v11, 7  ;;  %v1103_v46 = vsel %vm1092_vm5, %v1086_v8, -inf  ;;  %v8359_v37 = vrot.slane %v5694_v11, 1  ;;  %v1194_v49 = vrot.slane %v5908_v33, 6 }
 0x153   : > { %1388 = vst.msk [vmem:[#allocation2 + $0x40] sm:$0xff] %vm226_vm7, %v1355_v0  ;;  %v8360_v60 = vrot.slane %v5694_v11, 6  ;;  %v1297_v30 = vsel %vm1286_vm6, %v1280_v28, -inf  ;;  %v8361_v20 = vrot.slane %v5694_v11, 2  ;;  %v1049_v6 = vsel %vm1027_vm3, -inf, %v998_v50 }
 0x154   : > { %v1038_v35 = vsel %vm1027_vm3, %v8358_v34, %v1019_v32  ;;  %v1119_v27 = vsel %vm1092_vm5, %v8359_v37, %v1086_v8  ;;  %v1259_v47 = vrot.slane %v5908_v33, 2  ;;  %v1006_v32 = vrot.slane %v5915_v53, 7 }
 0x155   : > { %v1145_v54 = vmax.f32 %v5770_v25, %v1119_v27  ;;  %v1146_v38 = vmax.f32 %v1038_v35, %v1103_v46  ;;  %v1232_v61 = vsel %vm1221_vm4, %v8360_v60, %v1215_v48  ;;  %v1313_v42 = vsel %vm1286_vm6, %v8361_v20, %v1280_v28 }
 0x156   : > { %v1340_v7 = vmax.f32 %v1232_v61, %v1297_v30  ;;  %v1243_v25 = vsel %vm1221_vm4, -inf, %v1194_v49  ;;  %v1339_v0 = vmax.f32 %v5778_v62, %v1313_v42  ;;  %v1073_v8 = vrot.slane %v5915_v53, 1 }
 0x157   : > { %v1177_v16 = vmax.f32 %v5694_v11, %v1145_v54  ;;  %v1178_v22 = vmax.f32 %v5905_v17, %v1146_v38  ;;  %v1202_v48 = vrot.slane %v5915_v53, 6  ;;  %v1267_v28 = vrot.slane %v5915_v53, 2 }
 0x158   : > { %v8304_v46 = vrot.slane %v5918_v26, 7  ;;  %v1057_v27 = vsel %vm1027_vm3, -inf, %v1006_v32  ;;  %v1193_v54 = vrot.slane %v5918_v26, 6  ;;  %v8303_v61 = vrot.slane %v5921_v52, 7 }
 0x159   : > { %v1371_v34 = vmax.f32 %v1177_v16, %v1339_v0  ;;  %v1372_v35 = vmax.f32 %v1178_v22, %v1340_v7  ;;  %v1251_v62 = vsel %vm1221_vm4, -inf, %v1202_v48  ;;  %v8305_v20 = vrot.slane %v5921_v52, 6 }
 0x15a   : > { %v5982_v60 = vsel %vm1027_vm3, -inf, %v8304_v46  ;;  %v5989_v42 = vsel %vm1221_vm4, -inf, %v1193_v54  ;;  %v1014_v16 = vrot.slane %v5924_v1, 7  ;;  %v1081_v22 = vrot.slane %v5924_v1, 1 }
 0x15b   : > { %1404 = vst.msk [vmem:[#allocation2 + $0xc0] sm:$0xff] %vm226_vm7, %v1371_v34  ;;  %1405 = vst.msk [vmem:[#allocation2 + $0xc8] sm:$0xff] %vm226_vm7, %v1372_v35  ;;  %v5998_v0 = vsel %vm1027_vm3, -inf, %v8303_v61  ;;  %v6004_v34 = vsel %vm1221_vm4, -inf, %v8305_v20  ;;  %v1210_v35 = vrot.slane %v5924_v1, 6  ;;  %v1275_v7 = vrot.slane %v5924_v1, 2 }
 0x15c   : > { %v1033_v30 = vsel %vm1027_vm3, %v998_v50, %v1014_v16  ;;  %v1098_v38 = vsel %vm1092_vm5, %v1081_v22, -inf  ;;  %v1114_v61 = vsel %vm1092_vm5, %v1065_v29, %v1081_v22  ;;  %v6016_v37 = vmul.f32 %v5884_v2, %v5397_v39 }
 0x15d   : > { %v1135_v46 = vmax.f32 %v1049_v6, %v1114_v61  ;;  %v1136_v20 = vmax.f32 %v1033_v30, %v1098_v38  ;;  %v1227_v63 = vsel %vm1221_vm4, %v1194_v49, %v1210_v35  ;;  %v1292_v10 = vsel %vm1286_vm6, %v1275_v7, -inf }
 0x15e   : > { %v1308_v50 = vsel %vm1286_vm6, %v1259_v47, %v1275_v7  ;;  %v1330_v16 = vmax.f32 %v1227_v63, %v1292_v10  ;;  %v1022_v31 = vrot.slane %v6016_v37, 7  ;;  %v1089_v29 = vrot.slane %v6016_v37, 1 }
 0x15f   : > { %v1167_v22 = vmax.f32 %v5908_v33, %v1135_v46  ;;  %v1168_v39 = vmax.f32 %v5924_v1, %v1136_v20  ;;  %v1329_v2 = vmax.f32 %v1243_v25, %v1308_v50  ;;  %v1218_v6 = vrot.slane %v6016_v37, 6 }
 0x160   : > { %v1041_v49 = vsel %vm1027_vm3, %v1006_v32, %v1022_v31  ;;  %v1106_v38 = vsel %vm1092_vm5, %v1089_v29, -inf  ;;  %v1122_v10 = vsel %vm1092_vm5, %v1073_v8, %v1089_v29  ;;  %v1283_v63 = vrot.slane %v6016_v37, 2 }
 0x161   : > { %v1361_v47 = vmax.f32 %v1167_v22, %v1329_v2  ;;  %v1362_v61 = vmax.f32 %v1168_v39, %v1330_v16  ;;  %v1151_v30 = vmax.f32 %v1057_v27, %v1122_v10  ;;  %v1152_v46 = vmax.f32 %v1041_v49, %v1106_v38 }
 0x162   : > { %v1235_v25 = vsel %vm1221_vm4, %v1202_v48, %v1218_v6  ;;  %v1300_v20 = vsel %vm1286_vm6, %v1283_v63, -inf  ;;  %v1316_v31 = vsel %vm1286_vm6, %v1267_v28, %v1283_v63  ;;  %v6044_v32 = vmul.f32 %v5897_v59, %v5400_v40 }
 0x163   : > { %1394 = vst.msk [vmem:[#allocation2 + $0x70] sm:$0xff] %vm226_vm7, %v1361_v47  ;;  %1395 = vst.msk [vmem:[#allocation2 + $0x78] sm:$0xff] %vm226_vm7, %v1362_v61  ;;  %v1183_v8 = vmax.f32 %v5915_v53, %v1151_v30  ;;  %v1184_v27 = vmax.f32 %v6016_v37, %v1152_v46  ;;  %v1345_v7 = vmax.f32 %v1251_v62, %v1316_v31  ;;  %v8362_v62 = vrot.slane %v5918_v26, 7 }
 0x164   : > { %v1346_v48 = vmax.f32 %v1235_v25, %v1300_v20  ;;  %v1013_v35 = vrot.slane %v6044_v32, 7  ;;  %v1080_v50 = vrot.slane %v6044_v32, 1  ;;  %v1209_v28 = vrot.slane %v6044_v32, 6 }
 0x165   : > { %v1274_v16 = vrot.slane %v6044_v32, 2  ;;  %v1377_v40 = vmax.f32 %v1183_v8, %v1345_v7  ;;  %v6056_v29 = vmul.f32 %v5901_v3, %v5408_v44  ;;  %v6060_v22 = vmul.f32 %v5910_v51, %v5588_v18 }
 0x166   : > { %v1378_v59 = vmax.f32 %v1184_v27, %v1346_v48  ;;  %v1032_v39 = vsel %vm1027_vm3, %v8362_v62, %v1013_v35  ;;  %v1097_v2 = vsel %vm1092_vm5, %v1080_v50, -inf  ;;  %v8363_v6 = vrot.slane %v5918_v26, 1 }
 0x167   : > { %v1226_v44 = vsel %vm1221_vm4, %v1193_v54, %v1209_v28  ;;  %1410 = vst.msk [vmem:[#allocation2 + $0xf0] sm:$0xff] %vm226_vm7, %v1377_v40  ;;  %v1134_v3 = vmax.f32 %v1032_v39, %v1097_v2  ;;  %v1291_v51 = vsel %vm1286_vm6, %v1274_v16, -inf  ;;  %v8364_v38 = vrot.slane %v5918_v26, 2 }
 0x168   : > { %v1113_v49 = vsel %vm1092_vm5, %v8363_v6, %v1080_v50  ;;  %1411 = vst.msk [vmem:[#allocation2 + $0xf8] sm:$0xff] %vm226_vm7, %v1378_v59  ;;  %v1328_v47 = vmax.f32 %v1226_v44, %v1291_v51  ;;  %v1021_v54 = vrot.slane %v6056_v29, 7  ;;  %v1088_v61 = vrot.slane %v6056_v29, 1 }
 0x169   : > { %v1133_v18 = vmax.f32 %v5982_v60, %v1113_v49  ;;  %v1307_v10 = vsel %vm1286_vm6, %v8364_v38, %v1274_v16  ;;  %v1166_v60 = vmax.f32 %v6044_v32, %v1134_v3  ;;  %v1217_v46 = vrot.slane %v6056_v29, 6 }
 0x16a   : > { %v1327_v63 = vmax.f32 %v5989_v42, %v1307_v10  ;;  %v1282_v25 = vrot.slane %v6056_v29, 2  ;;  %v8365_v20 = vrot.slane %v5921_v52, 7  ;;  %v1105_v42 = vsel %vm1092_vm5, %v1088_v61, -inf  ;;  %v6127_v10 = vld [vmem:[#allocation2 + $0x40] sm:$0xff] }
 0x16b   : > { %v1165_v30 = vmax.f32 %v5918_v26, %v1133_v18  ;;  %v8366_v8 = vrot.slane %v5921_v52, 1  ;;  %v1000_v7 = vrot.slane %v6060_v22, 7  ;;  %v1360_v35 = vmax.f32 %v1166_v60, %v1328_v47 }
 0x16c   : > { %v1040_v31 = vsel %vm1027_vm3, %v8365_v20, %v1021_v54  ;;  %v8367_v16 = vrot.slane %v5921_v52, 6  ;;  %v1299_v59 = vsel %vm1286_vm6, %v1282_v25, -inf  ;;  %v8368_v62 = vrot.slane %v5921_v52, 2 }
 0x16d   : > { %v1121_v27 = vsel %vm1092_vm5, %v8366_v8, %v1088_v61  ;;  %v1359_v48 = vmax.f32 %v1165_v30, %v1327_v63  ;;  %v1150_v28 = vmax.f32 %v1040_v31, %v1105_v42  ;;  %v6116_v2 = vsel %vm1027_vm3, -inf, %v1000_v7  ;;  %1393 = vst.msk [vmem:[#allocation2 + $0x68] sm:$0xff] %vm226_vm7, %v1360_v35  ;;  %v6129_v63 = vld [vmem:[#allocation2 + $0x48] sm:$0xff]  ;;  %v6186_v8 = vld [vmem:[#allocation2 + $0x50] sm:$0xff] }
 0x16e   : > { %v1149_v50 = vmax.f32 %v5998_v0, %v1121_v27  ;;  %v1234_v40 = vsel %vm1221_vm4, %v8367_v16, %v1217_v46  ;;  %v1315_v39 = vsel %vm1286_vm6, %v8368_v62, %v1282_v25  ;;  %v1067_v18 = vrot.slane %v6060_v22, 1  ;;  %v6188_v27 = vld [vmem:[#allocation2 + $0x58] sm:$0xff] }
 0x16f   : > { %1392 = vst.msk [vmem:[#allocation2 + $0x60] sm:$0xff] %vm226_vm7, %v1359_v48  ;;  %v1182_v6 = vmax.f32 %v6056_v29, %v1150_v28  ;;  %v1343_v49 = vmax.f32 %v6004_v34, %v1315_v39  ;;  %v1344_v44 = vmax.f32 %v1234_v40, %v1299_v59  ;;  %v1196_v3 = vrot.slane %v6060_v22, 6 }
 0x170   : > { %v1181_v0 = vmax.f32 %v5921_v52, %v1149_v50  ;;  %v1261_v51 = vrot.slane %v6060_v22, 2  ;;  %v632_v38 = vadd.f32 1.0, %v5831_v5  ;;  %5011 = vpow2.f32 %v5638_v21  ;;  %v8371_v50 = vld [vmem:[#allocation5_spill] sm:$0xff] }
 0x171   : > { %v1376_v54 = vmax.f32 %v1182_v6, %v1344_v44  ;;  %v732_v34 = vpack.c.bf16 %v5834_v24, %v5691_v58  ;;  %v6138_v61 = vsel %vm1221_vm4, -inf, %v1196_v3  ;;  %v734_v5 = vpack.c.bf16 %v6044_v32, %v5918_v26 }
 0x172   : > { %v1375_v47 = vmax.f32 %v1181_v0, %v1343_v49  ;;  %5013 = vrcp.f32 %v632_v38  ;;  %v735_v30 = vpack.c.bf16 %v5924_v1, %v5908_v33  ;;  %v1675_v21 = vmax.f32 %v5837_v13, %v6127_v10 }
 0x173   : > { %1409 = vst.msk [vmem:[#allocation2 + $0xe8] sm:$0xff] %vm226_vm7, %v1376_v54  ;;  %5015 = vpow2.f32 %v5641_v56  ;;  %4762 = vmatprep.mubr.msk.bf16.mxu1 %vm226_vm7, %v732_v34  ;;  %v1676_v58 = vmax.f32 %v5840_v57, %v6129_v63  ;;  %v1612_v24 = vmax.f32 %v5826_v4, %v6127_v10  ;;  %v8369_v33 = vpack.c.bf16 %v5618_v15, %v5562_v45  ;;  %v8373_v34 = vld [vmem:[#allocation17_spill] sm:$0xff] }
 0x174   : > { %1408 = vst.msk [vmem:[#allocation2 + $0xe0] sm:$0xff] %vm226_vm7, %v1375_v47  ;;  %5017 = vpow2.f32 %v5781_v43  ;;  %v1613_v56 = vmax.f32 %v5829_v14, %v6129_v63  ;;  %v8370_v57 = vmax.f32 %v5783_v9, %v5801_v36  ;;  %v2033_v45 = vrot.slane %v1675_v21, 7 }
 0x175   : > { %4763 = vmatmul.mubr.msk.bf16.gmra.mrb[20].mxu1 %vm226_vm7, %v8369_v33  ;;  %5019 = vpow2.f32 %v5788_v23  ;;  %v1739_v43 = vpack.c.bf16 %v1676_v58, %v1675_v21  ;;  %v2049_v15 = vrot.slane %v1676_v58, 7  ;;  %v2097_v4 = vrot.slane %v1675_v21, 1 }
 0x176   : > { %v6167_v13 = vmax.f32 %v8370_v57, %v6127_v10  ;;  %4766 = vmatprep.mubr.msk.bf16.mxu1 %vm226_vm7, %v734_v5  ;;  %5021 = vpow2.f32 %v5797_v19  ;;  %v2113_v14 = vrot.slane %v1676_v58, 1  ;;  %v2225_v1 = vrot.slane %v1675_v21, 6 }
 0x177   : > { %5023 = vpow2.f32 %v5812_v41  ;;  %4792 = vmatprep.mubr.msk.bf16.mxu0 %vm226_vm7, %v1739_v43  ;;  %v2065_v9 = vsel %vm1027_vm3, %v2033_v45, %v2049_v15  ;;  %v2081_v23 = vsel %vm1027_vm3, -inf, %v2033_v45  ;;  %v2241_v32 = vrot.slane %v1676_v58, 6 }
 0x178   : > { %v2129_v60 = vsel %vm1092_vm5, %v2113_v14, -inf  ;;  %v2145_v19 = vsel %vm1092_vm5, %v2097_v4, %v2113_v14  ;;  %v2273_v46 = vsel %vm1221_vm4, -inf, %v2225_v1  ;;  %v2289_v25 = vrot.slane %v1675_v21, 2  ;;  %v8374_v14 = vld [vmem:[#allocation12_spill] sm:$0xff] }
 0x179   : > { %v2161_v41 = vmax.f32 %v2081_v23, %v2145_v19  ;;  %v2162_v20 = vmax.f32 %v2065_v9, %v2129_v60  ;;  %v2257_v31 = vsel %vm1221_vm4, %v2225_v1, %v2241_v32  ;;  %v2305_v42 = vrot.slane %v1676_v58, 2 }
 0x17a   : > { %v6191_v48 = vmax.f32 %v1612_v24, %v6186_v8  ;;  %v6194_v35 = vmax.f32 %v1613_v56, %v6188_v27  ;;  %v8372_v28 = vmax.f32 %v5785_v12, %v8371_v50  ;;  %v1614_v40 = vmax.f32 %v6167_v13, %v6186_v8  ;;  %v5012_v59 = vpop.eup %5011 }
 0x17b   : > { %v2193_v62 = vmax.f32 %v1675_v21, %v2161_v41  ;;  %v2194_v39 = vmax.f32 %v1676_v58, %v2162_v20  ;;  %v2321_v0 = vsel %vm1286_vm6, %v2305_v42, -inf  ;;  %v2337_v6 = vsel %vm1286_vm6, %v2289_v25, %v2305_v42 }
 0x17c   : > { %v6200_v16 = vmax.f32 %v8372_v28, %v6129_v63  ;;  %v5014_v49 = vpop.eup %5013  ;;  %v614_v44 = vadd.f32 1.0, %v5012_v59  ;;  %v2353_v38 = vmax.f32 %v2273_v46, %v2337_v6  ;;  %v2354_v12 = vmax.f32 %v2257_v31, %v2321_v0 }
 0x17d   : > { %4767 = vmatmul.mubr.msk.bf16.gmra.mrb[24].mxu1 %vm226_vm7, %v735_v30  ;;  %v1740_v47 = vpack.c.bf16 %v6194_v35, %v6191_v48  ;;  %v5016_v54 = vpop.eup %5015  ;;  %v6212_v5 = vmul.f32 %v5014_v49, %v8373_v34  ;;  %v2034_v21 = vrot.slane %v6191_v48, 7  ;;  %v2050_v58 = vrot.slane %v6194_v35, 7 }
 0x17e   : > { %v2098_v24 = vrot.slane %v6191_v48, 1  ;;  %v5018_v33 = vpop.eup %5017  ;;  %5025 = vrcp.f32 %v614_v44  ;;  %v630_v56 = vadd.f32 1.0, %v5016_v54  ;;  %v2385_v57 = vmax.f32 %v2193_v62, %v2353_v38 }
 0x17f   : > { %v2386_v30 = vmax.f32 %v2194_v39, %v2354_v12  ;;  %4793 = vmatmul.mubr.msk.bf16.vlgmr.msra.gmra.mrb[16].mxu0 %vm226_vm7, %v1740_v47  ;;  %v5020_v13 = vpop.eup %5019  ;;  %v1008_v43 = vrot.slane %v6212_v5, 7  ;;  %v1075_v45 = vrot.slane %v6212_v5, 1  ;;  %v1204_v15 = vrot.slane %v6212_v5, 6  ;;  %v6246_v39 = vld [vmem:[#allocation2 + $0x60] sm:$0xff]  ;;  %v6256_v47 = vld [vmem:[#allocation2 + $0x68] sm:$0xff] }
 0x180   : > { %v1269_v4 = vrot.slane %v6212_v5, 2  ;;  %4859 = vmatpush3.bf16.msra.mxu0 %v8374_v14  ;;  %v5022_v1 = vpop.eup %5021  ;;  %5027 = vrcp.f32 %v630_v56  ;;  %v617_v9 = vadd.f32 1.0, %v5018_v33  ;;  %v633_v23 = vadd.f32 1.0, %v5020_v13  ;;  %2417 = vst.msk [vmem:[#allocation2 + $0x20] sm:$0xff] %vm226_vm7, %v2385_v57 }
 0x181   : > { %v2066_v32 = vsel %vm1027_vm3, %v2034_v21, %v2050_v58  ;;  %2418 = vst.msk [vmem:[#allocation2 + $0x28] sm:$0xff] %vm226_vm7, %v2386_v30  ;;  %v5024_v60 = vpop.eup %5023  ;;  %v6231_v19 = vsel %vm1027_vm3, -inf, %v1008_v43  ;;  %v6237_v46 = vsel %vm1221_vm4, -inf, %v1204_v15  ;;  %v615_v25 = vadd.f32 1.0, %v5022_v1 }
 0x182   : > { %v2082_v41 = vsel %vm1027_vm3, -inf, %v2034_v21  ;;  %5029 = vrcp.f32 %v617_v9  ;;  %v631_v20 = vadd.f32 1.0, %v5024_v60  ;;  %v2114_v31 = vrot.slane %v6194_v35, 1 }
 0x183   : > { %v2226_v42 = vrot.slane %v6191_v48, 6  ;;  %5031 = vrcp.f32 %v633_v23  ;;  %v2242_v28 = vrot.slane %v6194_v35, 6  ;;  %v2290_v59 = vrot.slane %v6191_v48, 2 }
 0x184   : > { %v2306_v62 = vrot.slane %v6194_v35, 2  ;;  %5033 = vrcp.f32 %v615_v25  ;;  %v2130_v0 = vsel %vm1092_vm5, %v2114_v31, -inf  ;;  %v2146_v6 = vsel %vm1092_vm5, %v2098_v24, %v2114_v31 }
 0x185   : > { %v2274_v49 = vsel %vm1221_vm4, -inf, %v2226_v42  ;;  %5035 = vrcp.f32 %v631_v20  ;;  %v2163_v44 = vmax.f32 %v2082_v41, %v2146_v6  ;;  %v2164_v38 = vmax.f32 %v2066_v32, %v2130_v0  ;;  %v8376_v0 = vld [vmem:[#allocation19_spill] sm:$0xff] }
 0x186   : > { %v2258_v12 = vsel %vm1221_vm4, %v2226_v42, %v2242_v28  ;;  %v2322_v54 = vsel %vm1286_vm6, %v2306_v62, -inf  ;;  %v2338_v34 = vsel %vm1286_vm6, %v2290_v59, %v2306_v62  ;;  %v1615_v21 = vmax.f32 %v6200_v16, %v6188_v27  ;;  %v8375_v16 = vld [vmem:[#allocation18_spill] sm:$0xff] }
 0x187   : > { %v6265_v58 = vmax.f32 %v1614_v40, %v6246_v39  ;;  %v2195_v24 = vmax.f32 %v6191_v48, %v2163_v44  ;;  %v2196_v33 = vmax.f32 %v6194_v35, %v2164_v38  ;;  %v2355_v56 = vmax.f32 %v2274_v49, %v2338_v34 }
 0x188   : > { %v2356_v57 = vmax.f32 %v2258_v12, %v2322_v54  ;;  %v5026_v30 = vpop.eup %5025  ;;  %v6270_v13 = vmax.f32 %v1615_v21, %v6256_v47  ;;  %v8377_v21 = vld [vmem:[#allocation20_spill] sm:$0xff] }
 0x189   : > { %v2035_v14 = vrot.slane %v6265_v58, 7  ;;  %v2099_v1 = vrot.slane %v6265_v58, 1  ;;  %v6276_v23 = vmul.f32 %v5026_v30, %v8375_v16  ;;  %v2387_v40 = vmax.f32 %v2195_v24, %v2355_v56 }
 0x18a   : > { %v2388_v32 = vmax.f32 %v2196_v33, %v2356_v57  ;;  %v5028_v35 = vpop.eup %5027  ;;  %v1741_v60 = vpack.c.bf16 %v6270_v13, %v6265_v58  ;;  %v2051_v25 = vrot.slane %v6270_v13, 7  ;;  %v2115_v20 = vrot.slane %v6270_v13, 1 }
 0x18b   : > { %v6284_v41 = vsel %vm1027_vm3, -inf, %v2035_v14  ;;  %v999_v31 = vrot.slane %v6276_v23, 7  ;;  %v1066_v42 = vrot.slane %v6276_v23, 1  ;;  %v1195_v28 = vrot.slane %v6276_v23, 6  ;;  %2419 = vst.msk [vmem:[#allocation2 + $0x30] sm:$0xff] %vm226_vm7, %v2387_v40 }
 0x18c   : > { %v1260_v59 = vrot.slane %v6276_v23, 2  ;;  %2420 = vst.msk [vmem:[#allocation2 + $0x38] sm:$0xff] %vm226_vm7, %v2388_v32  ;;  %v5030_v62 = vpop.eup %5029  ;;  %v6294_v6 = vmul.f32 %v5028_v35, %v8376_v0  ;;  %4796 = vmatprep.mubr.msk.bf16.mxu0 %vm226_vm7, %v1741_v60  ;;  %v6299_v49 = vsel %vm1027_vm3, %v2035_v14, %v2051_v25  ;;  %v6303_v44 = vsel %vm1092_vm5, %v2115_v20, -inf }
 0x18d   : > { %v6307_v38 = vsel %vm1092_vm5, %v2099_v1, %v2115_v20  ;;  %v5032_v12 = vpop.eup %5031  ;;  %v6311_v54 = vsel %vm1027_vm3, -inf, %v999_v31  ;;  %v6317_v34 = vsel %vm1221_vm4, -inf, %v1195_v28  ;;  %v6320_v24 = vmul.f32 %v5030_v62, %v8377_v21  ;;  %v8378_v62 = vld [vmem:[#allocation21_spill] sm:$0xff]  ;;  %v8379_v21 = vld [vmem:[#allocation22_spill] sm:$0xff] }
 0x18e   : > { %v5034_v56 = vpop.eup %5033  ;;  %v1007_v57 = vrot.slane %v6294_v6, 7  ;;  %v1074_v30 = vrot.slane %v6294_v6, 1  ;;  %v1203_v14 = vrot.slane %v6294_v6, 6  ;;  %v6345_v0 = vmul.f32 %v5032_v12, %v8378_v62 }
 0x18f   : > { %v5036_v16 = vpop.eup %5035  ;;  %v1016_v40 = vrot.slane %v6320_v24, 7  ;;  %v1083_v32 = vrot.slane %v6320_v24, 1  ;;  %v1212_v35 = vrot.slane %v6320_v24, 6  ;;  %v1277_v60 = vrot.slane %v6320_v24, 2 }
 0x190   : > { %v6336_v25 = vsel %vm1027_vm3, -inf, %v1007_v57  ;;  %v6342_v20 = vsel %vm1221_vm4, -inf, %v1203_v14  ;;  %v711_v26 = vmul.f32 %v5034_v56, %v8379_v21 }
 0x191   : > { %v1035_v48 = vsel %vm1027_vm3, %v1000_v7, %v1016_v40  ;;  %v1100_v9 = vsel %vm1092_vm5, %v1083_v32, -inf  ;;  %v1116_v33 = vsel %vm1092_vm5, %v1067_v18, %v1083_v32  ;;  %v1229_v12 = vsel %vm1221_vm4, %v1196_v3, %v1212_v35 }
 0x192   : > { %v1139_v56 = vmax.f32 %v6116_v2, %v1116_v33  ;;  %v1140_v62 = vmax.f32 %v1035_v48, %v1100_v9  ;;  %v1294_v21 = vsel %vm1286_vm6, %v1277_v60, -inf  ;;  %v1310_v7 = vsel %vm1286_vm6, %v1261_v51, %v1277_v60 }
 0x193   : > { %v1333_v40 = vmax.f32 %v6138_v61, %v1310_v7  ;;  %v1334_v1 = vmax.f32 %v1229_v12, %v1294_v21  ;;  %v1024_v18 = vrot.slane %v6345_v0, 7  ;;  %v1091_v32 = vrot.slane %v6345_v0, 1 }
 0x194   : > { %v1171_v3 = vmax.f32 %v6060_v22, %v1139_v56  ;;  %v1172_v2 = vmax.f32 %v6320_v24, %v1140_v62  ;;  %v1220_v9 = vrot.slane %v6345_v0, 6  ;;  %v1285_v48 = vrot.slane %v6345_v0, 2 }
 0x195   : > { %v1043_v51 = vsel %vm1027_vm3, %v1008_v43, %v1024_v18  ;;  %v1108_v61 = vsel %vm1092_vm5, %v1091_v32, -inf  ;;  %v1124_v33 = vsel %vm1092_vm5, %v1075_v45, %v1091_v32  ;;  %v1015_v35 = vrot.slane %v711_v26, 7 }
 0x196   : > { %v1365_v60 = vmax.f32 %v1171_v3, %v1333_v40  ;;  %v1366_v12 = vmax.f32 %v1172_v2, %v1334_v1  ;;  %v1155_v56 = vmax.f32 %v6231_v19, %v1124_v33  ;;  %v1156_v62 = vmax.f32 %v1043_v51, %v1108_v61  ;;  %v8380_v2 = vld [vmem:[#allocation10_spill] sm:$0xff] }
 0x197   : > { %v1237_v21 = vsel %vm1221_vm4, %v1204_v15, %v1220_v9  ;;  %v1302_v43 = vsel %vm1286_vm6, %v1285_v48, -inf  ;;  %v1318_v7 = vsel %vm1286_vm6, %v1269_v4, %v1285_v48  ;;  %v1034_v45 = vsel %vm1027_vm3, %v999_v31, %v1015_v35 }
 0x198   : > { %1398 = vst.msk [vmem:[#allocation2 + $0x90] sm:$0xff] %vm226_vm7, %v1365_v60  ;;  %1399 = vst.msk [vmem:[#allocation2 + $0x98] sm:$0xff] %vm226_vm7, %v1366_v12  ;;  %v1187_v19 = vmax.f32 %v6212_v5, %v1155_v56  ;;  %v1188_v1 = vmax.f32 %v6345_v0, %v1156_v62  ;;  %v1349_v15 = vmax.f32 %v6237_v46, %v1318_v7  ;;  %v1082_v18 = vrot.slane %v711_v26, 1 }
 0x199   : > { %v1350_v40 = vmax.f32 %v1237_v21, %v1302_v43  ;;  %v1211_v32 = vrot.slane %v711_v26, 6  ;;  %v1276_v3 = vrot.slane %v711_v26, 2  ;;  %v6405_v9 = vmul.f32 %v5036_v16, %v8380_v2  ;;  %v8381_v43 = vld [vmem:[#allocation16_spill] sm:$0xff] }
 0x19a   : > { %v1381_v4 = vmax.f32 %v1187_v19, %v1349_v15  ;;  %v736_v31 = vpack.c.bf16 %v711_v26, %v6276_v23  ;;  %v737_v51 = vpack.c.bf16 %v6320_v24, %v6060_v22  ;;  %v1099_v61 = vsel %vm1092_vm5, %v1082_v18, -inf }
 0x19b   : > { %v1382_v48 = vmax.f32 %v1188_v1, %v1350_v40  ;;  %v1115_v46 = vsel %vm1092_vm5, %v1066_v42, %v1082_v18  ;;  %v1228_v16 = vsel %vm1221_vm4, %v1195_v28, %v1211_v32  ;;  %v1293_v33 = vsel %vm1286_vm6, %v1276_v3, -inf }
 0x19c   : > { %1414 = vst.msk [vmem:[#allocation2 + $0x110] sm:$0xff] %vm226_vm7, %v1381_v4  ;;  %v1137_v22 = vmax.f32 %v6311_v54, %v1115_v46  ;;  %v1138_v24 = vmax.f32 %v1034_v45, %v1099_v61  ;;  %v1309_v42 = vsel %vm1286_vm6, %v1260_v59, %v1276_v3  ;;  %v1332_v35 = vmax.f32 %v1228_v16, %v1293_v33  ;;  %v8382_v59 = vld [vmem:[#allocation14_spill] sm:$0xff]  ;;  %v8387_v33 = vld [vmem:[#allocation23_spill] sm:$0xff] }
 0x19d   : > { %1415 = vst.msk [vmem:[#allocation2 + $0x118] sm:$0xff] %vm226_vm7, %v1382_v48  ;;  %4770 = vmatprep.mubr.msk.bf16.mxu1 %vm226_vm7, %v736_v31  ;;  %v1331_v28 = vmax.f32 %v6317_v34, %v1309_v42  ;;  %v1023_v60 = vrot.slane %v6405_v9, 7  ;;  %v1090_v12 = vrot.slane %v6405_v9, 1  ;;  %v1219_v56 = vrot.slane %v6405_v9, 6  ;;  %v8390_v42 = vld [vmem:[#allocation13_spill] sm:$0xff] }
 0x19e   : > { %4771 = vmatmul.mubr.msk.bf16.gmra.mrb[28].mxu1 %vm226_vm7, %v737_v51  ;;  %v1169_v54 = vmax.f32 %v6276_v23, %v1137_v22  ;;  %v1170_v62 = vmax.f32 %v711_v26, %v1138_v24  ;;  %v1284_v21 = vrot.slane %v6405_v9, 2  ;;  %v8383_v7 = vpack.c.bf16 %v8381_v43, %v8382_v59  ;;  %v8389_v24 = vld [vmem:[#allocation15_spill] sm:$0xff]  ;;  %v6511_v59 = vld [vmem:[#allocation2 + $0x70] sm:$0xff] }
 0x19f   : > { %v2166_v34 = vmax.f32 %v6299_v49, %v6303_v44  ;;  %v1042_v45 = vsel %vm1027_vm3, %v1007_v57, %v1023_v60  ;;  %v1107_v19 = vsel %vm1092_vm5, %v1090_v12, -inf  ;;  %v1123_v26 = vsel %vm1092_vm5, %v1074_v30, %v1090_v12 }
 0x1a0   : > { %4774 = vmatprep.mubr.msk.bf16.mxu1 %vm226_vm7, %v8383_v7  ;;  %v1236_v23 = vsel %vm1221_vm4, %v1203_v14, %v1219_v56  ;;  %v1363_v1 = vmax.f32 %v1169_v54, %v1331_v28  ;;  %v1364_v49 = vmax.f32 %v1170_v62, %v1332_v35  ;;  %v1153_v44 = vmax.f32 %v6336_v25, %v1123_v26  ;;  %v6513_v7 = vld [vmem:[#allocation2 + $0x78] sm:$0xff] }
 0x1a1   : > { %v1154_v15 = vmax.f32 %v1042_v45, %v1107_v19  ;;  %v1301_v57 = vsel %vm1286_vm6, %v1284_v21, -inf  ;;  %v8384_v40 = vrot.slane %v6294_v6, 2  ;;  %v8385_v30 = vmax.f32 %v6284_v41, %v6307_v38 }
 0x1a2   : > { %v2198_v14 = vmax.f32 %v6270_v13, %v2166_v34  ;;  %1396 = vst.msk [vmem:[#allocation2 + $0x80] sm:$0xff] %vm226_vm7, %v1363_v1  ;;  %1397 = vst.msk [vmem:[#allocation2 + $0x88] sm:$0xff] %vm226_vm7, %v1364_v49  ;;  %v1185_v25 = vmax.f32 %v6294_v6, %v1153_v44  ;;  %v1348_v4 = vmax.f32 %v1236_v23, %v1301_v57  ;;  %v2243_v48 = vrot.slane %v6270_v13, 6 }
 0x1a3   : > { %v1317_v18 = vsel %vm1286_vm6, %v8384_v40, %v1284_v21  ;;  %v2197_v32 = vmax.f32 %v6265_v58, %v8385_v30  ;;  %v1186_v3 = vmax.f32 %v6405_v9, %v1154_v15  ;;  %v8386_v31 = vrot.slane %v6265_v58, 6 }
 0x1a4   : > { %v1347_v2 = vmax.f32 %v6342_v20, %v1317_v18  ;;  %v2307_v38 = vrot.slane %v6270_v13, 2  ;;  %v1487_v51 = vmax.f32 %v5801_v36, %v6127_v10  ;;  %v1488_v16 = vmax.f32 %v8371_v50, %v6129_v63  ;;  %v8388_v20 = vld [vmem:[#allocation6_spill] sm:$0xff] }
 0x1a5   : > { %v2275_v41 = vsel %vm1221_vm4, -inf, %v8386_v31  ;;  %v1380_v46 = vmax.f32 %v1186_v3, %v1348_v4  ;;  %v741_v22 = vpack.c.bf16 %v8388_v20, %v8387_v33  ;;  %v8391_v35 = vpack.c.bf16 %v8389_v24, %v8390_v42 }
 0x1a6   : > { %v1379_v61 = vmax.f32 %v1185_v25, %v1347_v2  ;;  %v8392_v28 = vmov %v8386_v31  ;;  %v2323_v36 = vsel %vm1286_vm6, %v2307_v38, -inf  ;;  %v8393_v60 = vrot.slane %v6265_v58, 2 }
 0x1a7   : > { %4775 = vmatmul.mubr.msk.bf16.gmra.mrb[32].mxu1 %vm226_vm7, %v8391_v35  ;;  %v2259_v13 = vsel %vm1221_vm4, %v8392_v28, %v2243_v48  ;;  %v1551_v12 = vmax.f32 %v1487_v51, %v6186_v8  ;;  %1413 = vst.msk [vmem:[#allocation2 + $0x108] sm:$0xff] %vm226_vm7, %v1380_v46  ;;  %v8394_v56 = vpack.c.bf16 %v5905_v17, %v5694_v11 }
 0x1a8   : > { %v2339_v50 = vsel %vm1286_vm6, %v8393_v60, %v2307_v38  ;;  %1412 = vst.msk [vmem:[#allocation2 + $0x100] sm:$0xff] %vm226_vm7, %v1379_v61  ;;  %v2358_v62 = vmax.f32 %v2259_v13, %v2323_v36  ;;  %v1552_v21 = vmax.f32 %v1488_v16, %v6188_v27  ;;  %v742_v58 = vpack.c.bf16 %v6056_v29, %v5921_v52 }
 0x1a9   : > { %4778 = vmatprep.mubr.msk.bf16.mxu1 %vm226_vm7, %v8394_v56  ;;  %v2357_v54 = vmax.f32 %v2275_v41, %v2339_v50  ;;  %v1616_v43 = vmax.f32 %v1551_v12, %v6246_v39  ;;  %v1489_v34 = vmax.f32 %v6127_v10, %v6186_v8  ;;  %v1490_v11 = vmax.f32 %v6129_v63, %v6188_v27  ;;  %v6542_v48 = vld [vmem:[#allocation2 + $0x80] sm:$0xff]  ;;  %v6554_v61 = vld [vmem:[#allocation2 + $0x88] sm:$0xff] }
 0x1aa   : > { %v1491_v17 = vmax.f32 %v6186_v8, %v6246_v39  ;;  %v2390_v19 = vmax.f32 %v2198_v14, %v2358_v62  ;;  %v1617_v26 = vmax.f32 %v1552_v21, %v6256_v47  ;;  %v1492_v52 = vmax.f32 %v6188_v27, %v6256_v47  ;;  %v6565_v62 = vld [vmem:[#allocation2 + $0x90] sm:$0xff] }
 0x1ab   : > { %v2389_v45 = vmax.f32 %v2197_v32, %v2357_v54  ;;  %v1681_v29 = vmax.f32 %v1616_v43, %v6511_v59  ;;  %v1553_v23 = vmax.f32 %v1489_v34, %v6246_v39  ;;  %v1554_v1 = vmax.f32 %v1490_v11, %v6256_v47 }
 0x1ac   : > { %v1555_v10 = vmax.f32 %v1491_v17, %v6511_v59  ;;  %v1682_v63 = vmax.f32 %v1617_v26, %v6513_v7  ;;  %2422 = vst.msk [vmem:[#allocation2 + $0x48] sm:$0xff] %vm226_vm7, %v2390_v19  ;;  %v1556_v8 = vmax.f32 %v1492_v52, %v6513_v7  ;;  %v1493_v49 = vmax.f32 %v6246_v39, %v6511_v59  ;;  %v6570_v26 = vld [vmem:[#allocation2 + $0x98] sm:$0xff] }
 0x1ad   : > { %2421 = vst.msk [vmem:[#allocation2 + $0x40] sm:$0xff] %vm226_vm7, %v2389_v45  ;;  %v1494_v27 = vmax.f32 %v6256_v47, %v6513_v7  ;;  %v2036_v44 = vrot.slane %v1681_v29, 7  ;;  %v2100_v15 = vrot.slane %v1681_v29, 1  ;;  %v2228_v57 = vrot.slane %v1681_v29, 6 }
 0x1ae   : > { %v2292_v40 = vrot.slane %v1681_v29, 2  ;;  %v1742_v18 = vpack.c.bf16 %v1682_v63, %v1681_v29  ;;  %v2052_v30 = vrot.slane %v1682_v63, 7  ;;  %v2116_v32 = vrot.slane %v1682_v63, 1 }
 0x1af   : > { %v2244_v14 = vrot.slane %v1682_v63, 6  ;;  %v2084_v25 = vsel %vm1027_vm3, -inf, %v2036_v44  ;;  %v2276_v3 = vsel %vm1221_vm4, -inf, %v2228_v57  ;;  %v2308_v2 = vrot.slane %v1682_v63, 2  ;;  %4779 = vmatmul.mubr.msk.bf16.gmra.mrb[36].mxu1 %vm226_vm7, %v741_v22 }
 0x1b0   : > { %v1618_v4 = vmax.f32 %v1553_v23, %v6511_v59  ;;  %4797 = vmatmul.mubr.msk.bf16.gmra.mrb[20].mxu0 %vm226_vm7, %v1742_v18  ;;  %v2068_v31 = vsel %vm1027_vm3, %v2036_v44, %v2052_v30  ;;  %v2132_v41 = vsel %vm1092_vm5, %v2116_v32, -inf  ;;  %v2148_v38 = vsel %vm1092_vm5, %v2100_v15, %v2116_v32  ;;  %4782 = vmatprep.mubr.msk.bf16.mxu1 %vm226_vm7, %v742_v58 }
 0x1b1   : > { %v2260_v51 = vsel %vm1221_vm4, %v2228_v57, %v2244_v14  ;;  %v2167_v46 = vmax.f32 %v2084_v25, %v2148_v38  ;;  %v2168_v16 = vmax.f32 %v2068_v31, %v2132_v41  ;;  %v2324_v33 = vsel %vm1286_vm6, %v2308_v2, -inf }
 0x1b2   : > { %v2340_v20 = vsel %vm1286_vm6, %v2292_v40, %v2308_v2  ;;  %v2360_v24 = vmax.f32 %v2260_v51, %v2324_v33  ;;  %v1619_v42 = vmax.f32 %v1554_v1, %v6513_v7  ;;  %v1683_v35 = vmax.f32 %v1618_v4, %v6542_v48 }
 0x1b3   : > { %v2359_v22 = vmax.f32 %v2276_v3, %v2340_v20  ;;  %v2199_v28 = vmax.f32 %v1681_v29, %v2167_v46  ;;  %v2200_v13 = vmax.f32 %v1682_v63, %v2168_v16  ;;  %v1620_v36 = vmax.f32 %v1555_v10, %v6542_v48 }
 0x1b4   : > { %v1621_v60 = vmax.f32 %v1556_v8, %v6554_v61  ;;  %v1684_v50 = vmax.f32 %v1619_v42, %v6554_v61  ;;  %v2037_v12 = vrot.slane %v1683_v35, 7  ;;  %v2101_v56 = vrot.slane %v1683_v35, 1 }
 0x1b5   : > { %v2229_v54 = vrot.slane %v1683_v35, 6  ;;  %v2391_v21 = vmax.f32 %v2199_v28, %v2359_v22  ;;  %v2392_v58 = vmax.f32 %v2200_v13, %v2360_v24  ;;  %v2293_v43 = vrot.slane %v1683_v35, 2 }
 0x1b6   : > { %v1685_v34 = vmax.f32 %v1620_v36, %v6565_v62  ;;  %v1743_v11 = vpack.c.bf16 %v1684_v50, %v1683_v35  ;;  %v2053_v17 = vrot.slane %v1684_v50, 7  ;;  %v2085_v45 = vsel %vm1027_vm3, -inf, %v2037_v12 }
 0x1b7   : > { %v2117_v19 = vrot.slane %v1684_v50, 1  ;;  %v2245_v52 = vrot.slane %v1684_v50, 6  ;;  %v2277_v29 = vsel %vm1221_vm4, -inf, %v2229_v54  ;;  %v2309_v23 = vrot.slane %v1684_v50, 2  ;;  %2423 = vst.msk [vmem:[#allocation2 + $0x50] sm:$0xff] %vm226_vm7, %v2391_v21  ;;  %2424 = vst.msk [vmem:[#allocation2 + $0x58] sm:$0xff] %vm226_vm7, %v2392_v58 }
 0x1b8   : > { %v1686_v1 = vmax.f32 %v1621_v60, %v6570_v26  ;;  %4800 = vmatprep.mubr.msk.bf16.mxu0 %vm226_vm7, %v1743_v11  ;;  %v2069_v10 = vsel %vm1027_vm3, %v2037_v12, %v2053_v17  ;;  %v2038_v44 = vrot.slane %v1685_v34, 7  ;;  %v2102_v38 = vrot.slane %v1685_v34, 1 }
 0x1b9   : > { %v2133_v63 = vsel %vm1092_vm5, %v2117_v19, -inf  ;;  %v2149_v8 = vsel %vm1092_vm5, %v2101_v56, %v2117_v19  ;;  %v2261_v40 = vsel %vm1221_vm4, %v2229_v54, %v2245_v52  ;;  %v2325_v18 = vsel %vm1286_vm6, %v2309_v23, -inf }
 0x1ba   : > { %v2169_v15 = vmax.f32 %v2085_v45, %v2149_v8  ;;  %v2170_v57 = vmax.f32 %v2069_v10, %v2133_v63  ;;  %v2341_v30 = vsel %vm1286_vm6, %v2293_v43, %v2309_v23  ;;  %v2362_v32 = vmax.f32 %v2261_v40, %v2325_v18  ;;  %v8395_v10 = vld [vmem:[#allocation11_spill] sm:$0xff] }
 0x1bb   : > { %v1744_v14 = vpack.c.bf16 %v1686_v1, %v1685_v34  ;;  %v2054_v25 = vrot.slane %v1686_v1, 7  ;;  %v2361_v4 = vmax.f32 %v2277_v29, %v2341_v30  ;;  %v2086_v31 = vsel %vm1027_vm3, -inf, %v2038_v44 }
 0x1bc   : > { %v2201_v3 = vmax.f32 %v1683_v35, %v2169_v15  ;;  %v2202_v2 = vmax.f32 %v1684_v50, %v2170_v57  ;;  %v2118_v51 = vrot.slane %v1686_v1, 1  ;;  %v2230_v46 = vrot.slane %v1685_v34, 6 }
 0x1bd   : > { %4801 = vmatmul.mubr.msk.bf16.gmra.mrb[24].mxu0 %vm226_vm7, %v1744_v14  ;;  %v2070_v41 = vsel %vm1027_vm3, %v2038_v44, %v2054_v25  ;;  %v2246_v20 = vrot.slane %v1686_v1, 6  ;;  %v2294_v22 = vrot.slane %v1685_v34, 2  ;;  %v2310_v28 = vrot.slane %v1686_v1, 2 }
 0x1be   : > { %v2393_v16 = vmax.f32 %v2201_v3, %v2361_v4  ;;  %v2394_v33 = vmax.f32 %v2202_v2, %v2362_v32  ;;  %v2134_v24 = vsel %vm1092_vm5, %v2118_v51, -inf  ;;  %v2150_v42 = vsel %vm1092_vm5, %v2102_v38, %v2118_v51 }
 0x1bf   : > { %v2278_v35 = vsel %vm1221_vm4, -inf, %v2230_v46  ;;  %v2171_v13 = vmax.f32 %v2086_v31, %v2150_v42  ;;  %v2172_v36 = vmax.f32 %v2070_v41, %v2134_v24  ;;  %v2262_v60 = vsel %vm1221_vm4, %v2230_v46, %v2246_v20  ;;  %v6668_v46 = vld [vmem:[#allocation2 + $0xb0] sm:$0xff] }
 0x1c0   : > { %v1557_v50 = vmax.f32 %v1493_v49, %v6542_v48  ;;  %2425 = vst.msk [vmem:[#allocation2 + $0x60] sm:$0xff] %vm226_vm7, %v2393_v16  ;;  %2426 = vst.msk [vmem:[#allocation2 + $0x68] sm:$0xff] %vm226_vm7, %v2394_v33  ;;  %v2326_v12 = vsel %vm1286_vm6, %v2310_v28, -inf  ;;  %v2342_v56 = vsel %vm1286_vm6, %v2294_v22, %v2310_v28  ;;  %v1558_v54 = vmax.f32 %v1494_v27, %v6554_v61  ;;  %v6626_v27 = vld [vmem:[#allocation2 + $0x20] sm:$0xff] }
 0x1c1   : > { %v743_v21 = vpack.c.bf16 %v6016_v37, %v5915_v53  ;;  %v2203_v39 = vmax.f32 %v1685_v34, %v2171_v13  ;;  %v2204_v49 = vmax.f32 %v1686_v1, %v2172_v36  ;;  %v2363_v58 = vmax.f32 %v2278_v35, %v2342_v56  ;;  %v6628_v37 = vld [vmem:[#allocation2 + $0xa0] sm:$0xff]  ;;  %v6630_v34 = vld [vmem:[#allocation2 + $0xa8] sm:$0xff]  ;;  %v6673_v35 = vld [vmem:[#allocation2 + $0xb8] sm:$0xff] }
 0x1c2   : > { %v2364_v43 = vmax.f32 %v2262_v60, %v2326_v12  ;;  %v1622_v11 = vmax.f32 %v1557_v50, %v6565_v62  ;;  %v1623_v17 = vmax.f32 %v1558_v54, %v6570_v26  ;;  %v744_v45 = vpack.c.bf16 %v6405_v9, %v6294_v6 }
 0x1c3   : > { %4783 = vmatmul.mubr.msk.bf16.gmra.mrb[40].mxu1 %vm226_vm7, %v743_v21  ;;  %v1495_v47 = vmax.f32 %v6511_v59, %v6542_v48  ;;  %v2395_v19 = vmax.f32 %v2203_v39, %v2363_v58  ;;  %v1496_v52 = vmax.f32 %v6513_v7, %v6554_v61  ;;  %v1497_v29 = vmax.f32 %v6542_v48, %v6565_v62 }
 0x1c4   : > { %v2396_v53 = vmax.f32 %v2204_v49, %v2364_v43  ;;  %v1687_v23 = vmax.f32 %v1622_v11, %v6628_v37  ;;  %v1688_v6 = vmax.f32 %v1623_v17, %v6630_v34  ;;  %4786 = vmatprep.mubr.msk.bf16.mxu1 %vm226_vm7, %v744_v45  ;;  %v1498_v59 = vmax.f32 %v6554_v61, %v6570_v26  ;;  %v6681_v17 = vld [vmem:[#allocation2 + $0xc0] sm:$0xff] }
 0x1c5   : > { %v1559_v9 = vmax.f32 %v1495_v47, %v6565_v62  ;;  %v1560_v1 = vmax.f32 %v1496_v52, %v6570_v26  ;;  %2427 = vst.msk [vmem:[#allocation2 + $0x70] sm:$0xff] %vm226_vm7, %v2395_v19  ;;  %v1561_v7 = vmax.f32 %v1497_v29, %v6628_v37  ;;  %v745_v48 = vpack.c.bf16 %v6345_v0, %v6212_v5 }
 0x1c6   : > { %2428 = vst.msk [vmem:[#allocation2 + $0x78] sm:$0xff] %vm226_vm7, %v2396_v53  ;;  %v2577_v63 = vmax.f32 %v8395_v10, %v6626_v27  ;;  %v1745_v8 = vpack.c.bf16 %v1688_v6, %v1687_v23  ;;  %v2039_v44 = vrot.slane %v1687_v23, 7  ;;  %v2055_v15 = vrot.slane %v1688_v6, 7  ;;  %v6685_v53 = vld [vmem:[#allocation2 + $0xc8] sm:$0xff] }
 0x1c7   : > { %v2103_v57 = vrot.slane %v1687_v23, 1  ;;  %v2119_v40 = vrot.slane %v1688_v6, 1  ;;  %v2231_v61 = vrot.slane %v1687_v23, 6  ;;  %v2247_v18 = vrot.slane %v1688_v6, 6 }
 0x1c8   : > { %v2295_v30 = vrot.slane %v1687_v23, 2  ;;  %4804 = vmatprep.mubr.msk.bf16.mxu0 %vm226_vm7, %v1745_v8  ;;  %v2071_v32 = vsel %vm1027_vm3, %v2039_v44, %v2055_v15  ;;  %v2087_v14 = vsel %vm1027_vm3, -inf, %v2039_v44  ;;  %v2311_v5 = vrot.slane %v1688_v6, 2 }
 0x1c9   : > { %v1624_v0 = vmax.f32 %v1559_v9, %v6628_v37  ;;  %v2135_v25 = vsel %vm1092_vm5, %v2119_v40, -inf  ;;  %v2151_v3 = vsel %vm1092_vm5, %v2103_v57, %v2119_v40  ;;  %v2263_v2 = vsel %vm1221_vm4, %v2231_v61, %v2247_v18 }
 0x1ca   : > { %v2279_v4 = vsel %vm1221_vm4, -inf, %v2231_v61  ;;  %v2173_v31 = vmax.f32 %v2087_v14, %v2151_v3  ;;  %v2174_v41 = vmax.f32 %v2071_v32, %v2135_v25  ;;  %v2327_v38 = vsel %vm1286_vm6, %v2311_v5, -inf }
 0x1cb   : > { %v2343_v51 = vsel %vm1286_vm6, %v2295_v30, %v2311_v5  ;;  %4787 = vmatmul.mubr.msk.bf16.gmra.mrb[44].mxu1 %vm226_vm7, %v745_v48  ;;  %v2366_v33 = vmax.f32 %v2263_v2, %v2327_v38  ;;  %v1625_v20 = vmax.f32 %v1560_v1, %v6630_v34  ;;  %v1689_v22 = vmax.f32 %v1624_v0, %v6668_v46 }
 0x1cc   : > { %v2365_v16 = vmax.f32 %v2279_v4, %v2343_v51  ;;  %v2205_v24 = vmax.f32 %v1687_v23, %v2173_v31  ;;  %v2206_v42 = vmax.f32 %v1688_v6, %v2174_v41  ;;  %v1562_v28 = vmax.f32 %v1498_v59, %v6630_v34  ;;  %v6709_v31 = vld [vmem:[#allocation2 + $0x28] sm:$0xff]  ;;  %v6711_v41 = vld [vmem:[#allocation2 + $0x30] sm:$0xff] }
 0x1cd   : > { %v1626_v13 = vmax.f32 %v1561_v7, %v6668_v46  ;;  %v1690_v36 = vmax.f32 %v1625_v20, %v6673_v35  ;;  %v2040_v60 = vrot.slane %v1689_v22, 7  ;;  %v2104_v50 = vrot.slane %v1689_v22, 1 }
 0x1ce   : > { %v2232_v12 = vrot.slane %v1689_v22, 6  ;;  %v2397_v56 = vmax.f32 %v2205_v24, %v2365_v16  ;;  %v2398_v54 = vmax.f32 %v2206_v42, %v2366_v33  ;;  %v2296_v21 = vrot.slane %v1689_v22, 2 }
 0x1cf   : > { %v1627_v39 = vmax.f32 %v1562_v28, %v6673_v35  ;;  %v1746_v49 = vpack.c.bf16 %v1690_v36, %v1689_v22  ;;  %v2056_v58 = vrot.slane %v1690_v36, 7  ;;  %v2088_v43 = vsel %vm1027_vm3, -inf, %v2040_v60  ;;  %v6721_v28 = vld [vmem:[#allocation2 + $0x38] sm:$0xff] }
 0x1d0   : > { %v2120_v11 = vrot.slane %v1690_v36, 1  ;;  %v2248_v45 = vrot.slane %v1690_v36, 6  ;;  %v2280_v47 = vsel %vm1221_vm4, -inf, %v2232_v12  ;;  %v2312_v19 = vrot.slane %v1690_v36, 2  ;;  %2429 = vst.msk [vmem:[#allocation2 + $0x80] sm:$0xff] %vm226_vm7, %v2397_v56  ;;  %2430 = vst.msk [vmem:[#allocation2 + $0x88] sm:$0xff] %vm226_vm7, %v2398_v54 }
 0x1d1   : > { %v1691_v52 = vmax.f32 %v1626_v13, %v6681_v17  ;;  %4805 = vmatmul.mubr.msk.bf16.gmra.mrb[28].mxu0 %vm226_vm7, %v1746_v49  ;;  %v2072_v29 = vsel %vm1027_vm3, %v2040_v60, %v2056_v58  ;;  %v1692_v9 = vmax.f32 %v1627_v39, %v6685_v53  ;;  %v6723_v13 = vld [vmem:[#allocation2 + $0x40] sm:$0xff]  ;;  %v1500_v56 = vmax.f32 %v6570_v26, %v6630_v34  ;;  %v6741_v58 = vld [vmem:[#allocation2 + $0x48] sm:$0xff] }
 0x1d2   : > { %v2136_v23 = vsel %vm1092_vm5, %v2120_v11, -inf  ;;  %v2152_v6 = vsel %vm1092_vm5, %v2104_v50, %v2120_v11  ;;  %v2264_v7 = vsel %vm1221_vm4, %v2232_v12, %v2248_v45  ;;  %v2328_v48 = vsel %vm1286_vm6, %v2312_v19, -inf }
 0x1d3   : > { %v2175_v59 = vmax.f32 %v2088_v43, %v2152_v6  ;;  %v2176_v1 = vmax.f32 %v2072_v29, %v2136_v23  ;;  %v2344_v8 = vsel %vm1286_vm6, %v2296_v21, %v2312_v19  ;;  %v2368_v44 = vmax.f32 %v2264_v7, %v2328_v48 }
 0x1d4   : > { %v1747_v15 = vpack.c.bf16 %v1692_v9, %v1691_v52  ;;  %v2041_v57 = vrot.slane %v1691_v52, 7  ;;  %v2367_v18 = vmax.f32 %v2280_v47, %v2344_v8  ;;  %v2057_v30 = vrot.slane %v1692_v9, 7 }
 0x1d5   : > { %v2207_v40 = vmax.f32 %v1689_v22, %v2175_v59  ;;  %v2208_v61 = vmax.f32 %v1690_v36, %v2176_v1  ;;  %v2105_v14 = vrot.slane %v1691_v52, 1  ;;  %v2121_v5 = vrot.slane %v1692_v9, 1  ;;  %v8396_v36 = vld [vmem:[#allocation4_spill] sm:$0xff] }
 0x1d6   : > { %4808 = vmatprep.mubr.msk.bf16.mxu0 %vm226_vm7, %v1747_v15  ;;  %v2089_v32 = vsel %vm1027_vm3, -inf, %v2041_v57  ;;  %v2233_v0 = vrot.slane %v1691_v52, 6  ;;  %v2073_v2 = vsel %vm1027_vm3, %v2041_v57, %v2057_v30  ;;  %v2249_v4 = vrot.slane %v1692_v9, 6 }
 0x1d7   : > { %v2399_v25 = vmax.f32 %v2207_v40, %v2367_v18  ;;  %v2400_v3 = vmax.f32 %v2208_v61, %v2368_v44  ;;  %v2137_v38 = vsel %vm1092_vm5, %v2121_v5, -inf  ;;  %v2153_v51 = vsel %vm1092_vm5, %v2105_v14, %v2121_v5  ;;  %v6760_v40 = vld [vmem:[#allocation2 + $0xd0] sm:$0xff] }
 0x1d8   : > { %v2281_v16 = vsel %vm1221_vm4, -inf, %v2233_v0  ;;  %v2297_v33 = vrot.slane %v1691_v52, 2  ;;  %v2177_v20 = vmax.f32 %v2089_v32, %v2153_v51  ;;  %v2178_v22 = vmax.f32 %v2073_v2, %v2137_v38 }
 0x1d9   : > { %v2265_v24 = vsel %vm1221_vm4, %v2233_v0, %v2249_v4  ;;  %v2313_v42 = vrot.slane %v1692_v9, 2  ;;  %2431 = vst.msk [vmem:[#allocation2 + $0x90] sm:$0xff] %vm226_vm7, %v2399_v25  ;;  %2432 = vst.msk [vmem:[#allocation2 + $0x98] sm:$0xff] %vm226_vm7, %v2400_v3  ;;  %v2578_v60 = vmax.f32 %v8396_v36, %v6709_v31  ;;  %v2641_v50 = vmax.f32 %v2577_v63, %v6711_v41  ;;  %v6774_v3 = vld [vmem:[#allocation2 + $0xd8] sm:$0xff] }
 0x1da   : > { %v1499_v12 = vmax.f32 %v6565_v62, %v6628_v37  ;;  %v2209_v54 = vmax.f32 %v1691_v52, %v2177_v20  ;;  %v2210_v21 = vmax.f32 %v1692_v9, %v2178_v22  ;;  %v1564_v26 = vmax.f32 %v1500_v56, %v6673_v35 }
 0x1db   : > { %v2329_v39 = vsel %vm1286_vm6, %v2313_v42, -inf  ;;  %v2345_v49 = vsel %vm1286_vm6, %v2297_v33, %v2313_v42  ;;  %v2642_v10 = vmax.f32 %v2578_v60, %v6721_v28  ;;  %v2705_v63 = vmax.f32 %v2641_v50, %v6723_v13 }
 0x1dc   : > { %v2369_v43 = vmax.f32 %v2281_v16, %v2345_v49  ;;  %v2370_v11 = vmax.f32 %v2265_v24, %v2329_v39  ;;  %v1563_v62 = vmax.f32 %v1499_v12, %v6668_v46  ;;  %v1501_v45 = vmax.f32 %v6628_v37, %v6668_v46 }
 0x1dd   : > { %v1502_v47 = vmax.f32 %v6630_v34, %v6673_v35  ;;  %v2706_v29 = vmax.f32 %v2642_v10, %v6741_v58  ;;  %v3063_v23 = vrot.slane %v2705_v63, 7  ;;  %v3127_v6 = vrot.slane %v2705_v63, 1  ;;  %v6790_v10 = vld [vmem:[#allocation2 + $0x18] sm:$0xff] }
 0x1de   : > { %v2401_v19 = vmax.f32 %v2209_v54, %v2369_v43  ;;  %v2402_v52 = vmax.f32 %v2210_v21, %v2370_v11  ;;  %v3255_v9 = vrot.slane %v2705_v63, 6  ;;  %v3319_v59 = vrot.slane %v2705_v63, 2  ;;  %v6781_v21 = vld [vmem:[#allocation2 + $0x10] sm:$0xff] }
 0x1df   : > { %v1628_v1 = vmax.f32 %v1563_v62, %v6681_v17  ;;  %v2769_v7 = vpack.c.bf16 %v2706_v29, %v2705_v63  ;;  %v3079_v48 = vrot.slane %v2706_v29, 7  ;;  %v3111_v8 = vsel %vm1027_vm3, -inf, %v3063_v23 }
 0x1e0   : > { %v3143_v44 = vrot.slane %v2706_v29, 1  ;;  %2433 = vst.msk [vmem:[#allocation2 + $0xa0] sm:$0xff] %vm226_vm7, %v2401_v19  ;;  %2434 = vst.msk [vmem:[#allocation2 + $0xa8] sm:$0xff] %vm226_vm7, %v2402_v52  ;;  %v3271_v37 = vrot.slane %v2706_v29, 6  ;;  %v3303_v34 = vsel %vm1221_vm4, -inf, %v3255_v9  ;;  %v3335_v15 = vrot.slane %v2706_v29, 2 }
 0x1e1   : > { %v1629_v57 = vmax.f32 %v1564_v26, %v6685_v53  ;;  %4826 = vmatprep.mubr.msk.bf16.mxu1 %vm226_vm7, %v2769_v7  ;;  %v3095_v61 = vsel %vm1027_vm3, %v3063_v23, %v3079_v48  ;;  %v1693_v32 = vmax.f32 %v1628_v1, %v6760_v40  ;;  %v1566_v23 = vmax.f32 %v1502_v47, %v6685_v53  ;;  %v6802_v1 = vld [vmem:[#allocation2 + $0xe0] sm:$0xff]  ;;  %v6804_v7 = vld [vmem:[#allocation2 + $0xe8] sm:$0xff] }
 0x1e2   : > { %v3159_v18 = vsel %vm1092_vm5, %v3143_v44, -inf  ;;  %v3175_v30 = vsel %vm1092_vm5, %v3127_v6, %v3143_v44  ;;  %v3287_v0 = vsel %vm1221_vm4, %v3255_v9, %v3271_v37  ;;  %v3351_v25 = vsel %vm1286_vm6, %v3335_v15, -inf }
 0x1e3   : > { %v3191_v14 = vmax.f32 %v3111_v8, %v3175_v30  ;;  %v3192_v5 = vmax.f32 %v3095_v61, %v3159_v18  ;;  %v3367_v2 = vsel %vm1286_vm6, %v3319_v59, %v3335_v15  ;;  %v3384_v4 = vmax.f32 %v3287_v0, %v3351_v25 }
 0x1e4   : > { %v1694_v38 = vmax.f32 %v1629_v57, %v6774_v3  ;;  %v2042_v51 = vrot.slane %v1693_v32, 7  ;;  %v3383_v20 = vmax.f32 %v3303_v34, %v3367_v2  ;;  %v2106_v22 = vrot.slane %v1693_v32, 1  ;;  %v6827_v2 = vld [vmem:[#allocation2 + $0x50] sm:$0xff] }
 0x1e5   : > { %v3223_v16 = vmax.f32 %v2705_v63, %v3191_v14  ;;  %v3224_v33 = vmax.f32 %v2706_v29, %v3192_v5  ;;  %v2234_v56 = vrot.slane %v1693_v32, 6  ;;  %v2298_v11 = vrot.slane %v1693_v32, 2 }
 0x1e6   : > { %v1748_v24 = vpack.c.bf16 %v1694_v38, %v1693_v32  ;;  %v2058_v42 = vrot.slane %v1694_v38, 7  ;;  %v2090_v36 = vsel %vm1027_vm3, -inf, %v2042_v51  ;;  %v2122_v60 = vrot.slane %v1694_v38, 1 }
 0x1e7   : > { %v3415_v50 = vmax.f32 %v3223_v16, %v3383_v20  ;;  %v3416_v12 = vmax.f32 %v3224_v33, %v3384_v4  ;;  %v2250_v54 = vrot.slane %v1694_v38, 6  ;;  %v2282_v19 = vsel %vm1221_vm4, -inf, %v2234_v56 }
 0x1e8   : > { %4809 = vmatmul.mubr.msk.bf16.gmra.mrb[32].mxu0 %vm226_vm7, %v1748_v24  ;;  %v2074_v39 = vsel %vm1027_vm3, %v2042_v51, %v2058_v42  ;;  %v2138_v49 = vsel %vm1092_vm5, %v2122_v60, -inf  ;;  %v2154_v43 = vsel %vm1092_vm5, %v2106_v22, %v2122_v60  ;;  %v2314_v52 = vrot.slane %v1694_v38, 2  ;;  %v6836_v60 = vld [vmem:[#allocation2 + $0x58] sm:$0xff] }
 0x1e9   : > { %v2179_v63 = vmax.f32 %v2090_v36, %v2154_v43  ;;  %v2180_v62 = vmax.f32 %v2074_v39, %v2138_v49  ;;  %v2266_v26 = vsel %vm1221_vm4, %v2234_v56, %v2250_v54  ;;  %3447 = vst.msk [vmem:[#allocation2 + $0x20] sm:$0xff] %vm226_vm7, %v3415_v50  ;;  %3448 = vst.msk [vmem:[#allocation2 + $0x28] sm:$0xff] %vm226_vm7, %v3416_v12 }
 0x1ea   : > { %v1565_v29 = vmax.f32 %v1501_v45, %v6681_v17  ;;  %v2515_v6 = vmax.f32 %v6781_v21, %v6626_v27  ;;  %v2516_v48 = vmax.f32 %v6790_v10, %v6709_v31  ;;  %v2517_v8 = vmax.f32 %v6626_v27, %v6711_v41 }
 0x1eb   : > { %v2211_v9 = vmax.f32 %v1693_v32, %v2179_v63  ;;  %v2212_v59 = vmax.f32 %v1694_v38, %v2180_v62  ;;  %v2330_v45 = vsel %vm1286_vm6, %v2314_v52, -inf  ;;  %v2346_v47 = vsel %vm1286_vm6, %v2298_v11, %v2314_v52 }
 0x1ec   : > { %v1630_v44 = vmax.f32 %v1565_v29, %v6760_v40  ;;  %v1631_v37 = vmax.f32 %v1566_v23, %v6774_v3  ;;  %v2371_v34 = vmax.f32 %v2282_v19, %v2346_v47  ;;  %v2372_v15 = vmax.f32 %v2266_v26, %v2330_v45 }
 0x1ed   : > { %v2579_v57 = vmax.f32 %v2515_v6, %v6711_v41  ;;  %v2580_v61 = vmax.f32 %v2516_v48, %v6721_v28  ;;  %v2518_v30 = vmax.f32 %v6709_v31, %v6721_v28  ;;  %v6823_v32 = vmax.f32 %v2517_v8, %v6723_v13 }
 0x1ee   : > { %v1695_v18 = vmax.f32 %v1630_v44, %v6802_v1  ;;  %v1696_v27 = vmax.f32 %v1631_v37, %v6804_v7  ;;  %v2403_v14 = vmax.f32 %v2211_v9, %v2371_v34  ;;  %v2404_v5 = vmax.f32 %v2212_v59, %v2372_v15 }
 0x1ef   : > { %v2643_v0 = vmax.f32 %v2579_v57, %v6723_v13  ;;  %v2644_v25 = vmax.f32 %v2580_v61, %v6741_v58 }
 0x1f0   : > { %v1749_v4 = vpack.c.bf16 %v1696_v27, %v1695_v18  ;;  %v2043_v38 = vrot.slane %v1695_v18, 7  ;;  %v2059_v51 = vrot.slane %v1696_v27, 7  ;;  %v2107_v16 = vrot.slane %v1695_v18, 1  ;;  %2435 = vst.msk [vmem:[#allocation2 + $0xb0] sm:$0xff] %vm226_vm7, %v2403_v14  ;;  %2436 = vst.msk [vmem:[#allocation2 + $0xb8] sm:$0xff] %vm226_vm7, %v2404_v5 }
 0x1f1   : > { %v2123_v33 = vrot.slane %v1696_v27, 1  ;;  %v2235_v20 = vrot.slane %v1695_v18, 6  ;;  %v2251_v22 = vrot.slane %v1696_v27, 6  ;;  %v2299_v24 = vrot.slane %v1695_v18, 2 }
 0x1f2   : > { %4812 = vmatprep.mubr.msk.bf16.mxu0 %vm226_vm7, %v1749_v4  ;;  %v2075_v31 = vsel %vm1027_vm3, %v2043_v38, %v2059_v51  ;;  %v2091_v42 = vsel %vm1027_vm3, -inf, %v2043_v38  ;;  %v2315_v36 = vrot.slane %v1696_v27, 2  ;;  %v2707_v50 = vmax.f32 %v2643_v0, %v6827_v2 }
 0x1f3   : > { %v2139_v12 = vsel %vm1092_vm5, %v2123_v33, -inf  ;;  %v2155_v56 = vsel %vm1092_vm5, %v2107_v16, %v2123_v33  ;;  %v2267_v54 = vsel %vm1221_vm4, %v2235_v20, %v2251_v22  ;;  %v2283_v39 = vsel %vm1221_vm4, -inf, %v2235_v20 }
 0x1f4   : > { %v2181_v49 = vmax.f32 %v2091_v42, %v2155_v56  ;;  %v2182_v43 = vmax.f32 %v2075_v31, %v2139_v12  ;;  %v2331_v11 = vsel %vm1286_vm6, %v2315_v36, -inf  ;;  %v2347_v63 = vsel %vm1286_vm6, %v2299_v24, %v2315_v36  ;;  %v6880_v31 = vld [vmem:[#allocation2 + $0x68] sm:$0xff] }
 0x1f5   : > { %v2373_v62 = vmax.f32 %v2283_v39, %v2347_v63  ;;  %v2374_v26 = vmax.f32 %v2267_v54, %v2331_v11  ;;  %v2708_v19 = vmax.f32 %v2644_v25, %v6836_v60  ;;  %v3064_v52 = vrot.slane %v2707_v50, 7  ;;  %v6865_v25 = vld [vmem:[#allocation2 + $0x60] sm:$0xff] }
 0x1f6   : > { %v2213_v29 = vmax.f32 %v1695_v18, %v2181_v49  ;;  %v2214_v23 = vmax.f32 %v1696_v27, %v2182_v43  ;;  %v3128_v6 = vrot.slane %v2707_v50, 1  ;;  %v3256_v9 = vrot.slane %v2707_v50, 6 }
 0x1f7   : > { %v2770_v59 = vpack.c.bf16 %v2708_v19, %v2707_v50  ;;  %v3080_v48 = vrot.slane %v2708_v19, 7  ;;  %v3112_v8 = vsel %vm1027_vm3, -inf, %v3064_v52  ;;  %v3144_v45 = vrot.slane %v2708_v19, 1 }
 0x1f8   : > { %v2405_v47 = vmax.f32 %v2213_v29, %v2373_v62  ;;  %v2406_v44 = vmax.f32 %v2214_v23, %v2374_v26  ;;  %v3272_v37 = vrot.slane %v2708_v19, 6  ;;  %v3304_v34 = vsel %vm1221_vm4, -inf, %v3256_v9 }
 0x1f9   : > { %4827 = vmatmul.mubr.msk.bf16.vlgmr.msra.gmra.mrb[48].mxu1 %vm226_vm7, %v2770_v59  ;;  %v3096_v15 = vsel %vm1027_vm3, %v3064_v52, %v3080_v48  ;;  %v3160_v57 = vsel %vm1092_vm5, %v3144_v45, -inf  ;;  %v3176_v61 = vsel %vm1092_vm5, %v3128_v6, %v3144_v45  ;;  %v3320_v18 = vrot.slane %v2707_v50, 2 }
 0x1fa   : > { %v3193_v27 = vmax.f32 %v3112_v8, %v3176_v61  ;;  %v3194_v14 = vmax.f32 %v3096_v15, %v3160_v57  ;;  %v3288_v5 = vsel %vm1221_vm4, %v3256_v9, %v3272_v37  ;;  %v3336_v0 = vrot.slane %v2708_v19, 2  ;;  %2437 = vst.msk [vmem:[#allocation2 + $0xc0] sm:$0xff] %vm226_vm7, %v2405_v47  ;;  %2438 = vst.msk [vmem:[#allocation2 + $0xc8] sm:$0xff] %vm226_vm7, %v2406_v44  ;;  %v6899_v9 = vld [vmem:[#allocation2 + $0xf0] sm:$0xff]  ;;  %v6913_v15 = vld [vmem:[#allocation2 + $0xf8] sm:$0xff] }
 0x1fb   : > { %v2582_v4 = vmax.f32 %v2518_v30, %v6741_v58  ;;  %v2645_v38 = vmax.f32 %v6823_v32, %v6827_v2  ;;  %v1503_v51 = vmax.f32 %v6668_v46, %v6681_v17  ;;  %v1504_v16 = vmax.f32 %v6673_v35, %v6685_v53 }
 0x1fc   : > { %v3225_v33 = vmax.f32 %v2707_v50, %v3193_v27  ;;  %v3226_v20 = vmax.f32 %v2708_v19, %v3194_v14  ;;  %v3352_v22 = vsel %vm1286_vm6, %v3336_v0, -inf  ;;  %v3368_v24 = vsel %vm1286_vm6, %v3320_v18, %v3336_v0 }
 0x1fd   : > { %v3385_v30 = vmax.f32 %v3304_v34, %v3368_v24  ;;  %v3386_v42 = vmax.f32 %v3288_v5, %v3352_v22  ;;  %v2646_v32 = vmax.f32 %v2582_v4, %v6836_v60  ;;  %v2709_v36 = vmax.f32 %v2645_v38, %v6865_v25 }
 0x1fe   : > { %v1567_v46 = vmax.f32 %v1503_v51, %v6760_v40  ;;  %v1568_v35 = vmax.f32 %v1504_v16, %v6774_v3  ;;  %v1505_v50 = vmax.f32 %v6681_v17, %v6760_v40  ;;  %v1506_v12 = vmax.f32 %v6685_v53, %v6774_v3 }
 0x1ff   : > { %v3417_v56 = vmax.f32 %v3225_v33, %v3385_v30  ;;  %v3418_v54 = vmax.f32 %v3226_v20, %v3386_v42  ;;  %v2710_v39 = vmax.f32 %v2646_v32, %v6880_v31  ;;  %v3065_v49 = vrot.slane %v2709_v36, 7 }
 0x200   : > { %v3129_v43 = vrot.slane %v2709_v36, 1  ;;  %v3257_v11 = vrot.slane %v2709_v36, 6  ;;  %v3321_v63 = vrot.slane %v2709_v36, 2  ;;  %v1632_v62 = vmax.f32 %v1567_v46, %v6802_v1 }
 0x201   : > { %v2771_v26 = vpack.c.bf16 %v2710_v39, %v2709_v36  ;;  %v3081_v19 = vrot.slane %v2710_v39, 7  ;;  %v3113_v52 = vsel %vm1027_vm3, -inf, %v3065_v49  ;;  %v3145_v29 = vrot.slane %v2710_v39, 1  ;;  %3449 = vst.msk [vmem:[#allocation2 + $0x30] sm:$0xff] %vm226_vm7, %v3417_v56  ;;  %3450 = vst.msk [vmem:[#allocation2 + $0x38] sm:$0xff] %vm226_vm7, %v3418_v54 }
 0x202   : > { %v3273_v17 = vrot.slane %v2710_v39, 6  ;;  %v3305_v53 = vsel %vm1221_vm4, -inf, %v3257_v11  ;;  %v3337_v23 = vrot.slane %v2710_v39, 2  ;;  %v1633_v6 = vmax.f32 %v1568_v35, %v6804_v7 }
 0x203   : > { %4830 = vmatprep.mubr.msk.bf16.mxu1 %vm226_vm7, %v2771_v26  ;;  %v3097_v59 = vsel %vm1027_vm3, %v3065_v49, %v3081_v19  ;;  %v3161_v48 = vsel %vm1092_vm5, %v3145_v29, -inf  ;;  %v3177_v8 = vsel %vm1092_vm5, %v3129_v43, %v3145_v29  ;;  %v1697_v45 = vmax.f32 %v1632_v62, %v6899_v9  ;;  %v6937_v19 = vld [vmem:[#allocation2 + $0x100] sm:$0xff] }
 0x204   : > { %v3195_v47 = vmax.f32 %v3113_v52, %v3177_v8  ;;  %v3196_v44 = vmax.f32 %v3097_v59, %v3161_v48  ;;  %v3289_v37 = vsel %vm1221_vm4, %v3257_v11, %v3273_v17  ;;  %v3353_v34 = vsel %vm1286_vm6, %v3337_v23, -inf  ;;  %v6939_v52 = vld [vmem:[#allocation2 + $0x108] sm:$0xff] }
 0x205   : > { %v3369_v57 = vsel %vm1286_vm6, %v3321_v63, %v3337_v23  ;;  %v3388_v61 = vmax.f32 %v3289_v37, %v3353_v34  ;;  %v1698_v18 = vmax.f32 %v1633_v6, %v6913_v15  ;;  %v2044_v27 = vrot.slane %v1697_v45, 7 }
 0x206   : > { %v3227_v14 = vmax.f32 %v2709_v36, %v3195_v47  ;;  %v3228_v5 = vmax.f32 %v2710_v39, %v3196_v44  ;;  %v3387_v0 = vmax.f32 %v3305_v53, %v3369_v57  ;;  %v2108_v4 = vrot.slane %v1697_v45, 1  ;;  %v6962_v57 = vld [vmem:[#allocation2 + $0x70] sm:$0xff] }
 0x207   : > { %v1750_v38 = vpack.c.bf16 %v1698_v18, %v1697_v45  ;;  %v2060_v51 = vrot.slane %v1698_v18, 7  ;;  %v2092_v16 = vsel %vm1027_vm3, -inf, %v2044_v27  ;;  %v2124_v33 = vrot.slane %v1698_v18, 1 }
 0x208   : > { %v3419_v20 = vmax.f32 %v3227_v14, %v3387_v0  ;;  %v3420_v22 = vmax.f32 %v3228_v5, %v3388_v61  ;;  %v2236_v24 = vrot.slane %v1697_v45, 6  ;;  %v2252_v30 = vrot.slane %v1698_v18, 6 }
 0x209   : > { %4813 = vmatmul.mubr.msk.bf16.gmra.mrb[36].mxu0 %vm226_vm7, %v1750_v38  ;;  %v2076_v42 = vsel %vm1027_vm3, %v2044_v27, %v2060_v51  ;;  %v2140_v32 = vsel %vm1092_vm5, %v2124_v33, -inf  ;;  %v2156_v36 = vsel %vm1092_vm5, %v2108_v4, %v2124_v33  ;;  %v2300_v46 = vrot.slane %v1697_v45, 2  ;;  %v6971_v33 = vld [vmem:[#allocation2 + $0x78] sm:$0xff] }
 0x20a   : > { %v2183_v35 = vmax.f32 %v2092_v16, %v2156_v36  ;;  %v2184_v56 = vmax.f32 %v2076_v42, %v2140_v32  ;;  %v2268_v54 = vsel %vm1221_vm4, %v2236_v24, %v2252_v30  ;;  %v2284_v39 = vsel %vm1221_vm4, -inf, %v2236_v24  ;;  %3451 = vst.msk [vmem:[#allocation2 + $0x40] sm:$0xff] %vm226_vm7, %v3419_v20  ;;  %3452 = vst.msk [vmem:[#allocation2 + $0x48] sm:$0xff] %vm226_vm7, %v3420_v22 }
 0x20b   : > { %v2316_v49 = vrot.slane %v1698_v18, 2  ;;  %v1569_v43 = vmax.f32 %v1505_v50, %v6802_v1  ;;  %v1570_v11 = vmax.f32 %v1506_v12, %v6804_v7  ;;  %v2519_v63 = vmax.f32 %v6711_v41, %v6723_v13 }
 0x20c   : > { %v2215_v62 = vmax.f32 %v1697_v45, %v2183_v35  ;;  %v2216_v26 = vmax.f32 %v1698_v18, %v2184_v56  ;;  %v2520_v29 = vmax.f32 %v6721_v28, %v6741_v58  ;;  %v2521_v17 = vmax.f32 %v6723_v13, %v6827_v2 }
 0x20d   : > { %v2332_v50 = vsel %vm1286_vm6, %v2316_v49, -inf  ;;  %v2348_v12 = vsel %vm1286_vm6, %v2300_v46, %v2316_v49  ;;  %v1634_v41 = vmax.f32 %v1569_v43, %v6899_v9  ;;  %v1635_v53 = vmax.f32 %v1570_v11, %v6913_v15 }
 0x20e   : > { %v2375_v23 = vmax.f32 %v2284_v39, %v2348_v12  ;;  %v2376_v6 = vmax.f32 %v2268_v54, %v2332_v50  ;;  %v2583_v59 = vmax.f32 %v2519_v63, %v6827_v2  ;;  %v2584_v48 = vmax.f32 %v2520_v29, %v6836_v60 }
 0x20f   : > { %v1699_v28 = vmax.f32 %v1634_v41, %v6937_v19  ;;  %v1700_v13 = vmax.f32 %v1635_v53, %v6939_v52  ;;  %v2522_v8 = vmax.f32 %v6741_v58, %v6836_v60  ;;  %v6958_v45 = vmax.f32 %v2521_v17, %v6865_v25 }
 0x210   : > { %v2407_v47 = vmax.f32 %v2215_v62, %v2375_v23  ;;  %v2408_v44 = vmax.f32 %v2216_v26, %v2376_v6  ;;  %v2647_v37 = vmax.f32 %v2583_v59, %v6865_v25  ;;  %v2648_v34 = vmax.f32 %v2584_v48, %v6880_v31 }
 0x211   : > { %v1751_v61 = vpack.c.bf16 %v1700_v13, %v1699_v28  ;;  %v2045_v18 = vrot.slane %v1699_v28, 7  ;;  %v2061_v27 = vrot.slane %v1700_v13, 7  ;;  %v2109_v14 = vrot.slane %v1699_v28, 1 }
 0x212   : > { %v2125_v5 = vrot.slane %v1700_v13, 1  ;;  %v2237_v0 = vrot.slane %v1699_v28, 6  ;;  %v2253_v4 = vrot.slane %v1700_v13, 6  ;;  %v2301_v38 = vrot.slane %v1699_v28, 2  ;;  %2439 = vst.msk [vmem:[#allocation2 + $0xd0] sm:$0xff] %vm226_vm7, %v2407_v47  ;;  %2440 = vst.msk [vmem:[#allocation2 + $0xd8] sm:$0xff] %vm226_vm7, %v2408_v44 }
 0x213   : > { %4816 = vmatprep.mubr.msk.bf16.mxu0 %vm226_vm7, %v1751_v61  ;;  %v2077_v58 = vsel %vm1027_vm3, %v2045_v18, %v2061_v27  ;;  %v2093_v51 = vsel %vm1027_vm3, -inf, %v2045_v18  ;;  %v2317_v16 = vrot.slane %v1700_v13, 2  ;;  %v2711_v20 = vmax.f32 %v2647_v37, %v6962_v57 }
 0x214   : > { %v2141_v22 = vsel %vm1092_vm5, %v2125_v5, -inf  ;;  %v2157_v24 = vsel %vm1092_vm5, %v2109_v14, %v2125_v5  ;;  %v2269_v30 = vsel %vm1221_vm4, %v2237_v0, %v2253_v4  ;;  %v2285_v42 = vsel %vm1221_vm4, -inf, %v2237_v0 }
 0x215   : > { %v2185_v32 = vmax.f32 %v2093_v51, %v2157_v24  ;;  %v2186_v36 = vmax.f32 %v2077_v58, %v2141_v22  ;;  %v2333_v46 = vsel %vm1286_vm6, %v2317_v16, -inf  ;;  %v2349_v35 = vsel %vm1286_vm6, %v2301_v38, %v2317_v16  ;;  %v7015_v58 = vld [vmem:[#allocation2 + $0x88] sm:$0xff] }
 0x216   : > { %v2377_v56 = vmax.f32 %v2285_v42, %v2349_v35  ;;  %v2378_v54 = vmax.f32 %v2269_v30, %v2333_v46  ;;  %v2712_v39 = vmax.f32 %v2648_v34, %v6971_v33  ;;  %v3066_v49 = vrot.slane %v2711_v20, 7  ;;  %v7000_v34 = vld [vmem:[#allocation2 + $0x80] sm:$0xff] }
 0x217   : > { %v2217_v43 = vmax.f32 %v1699_v28, %v2185_v32  ;;  %v2218_v11 = vmax.f32 %v1700_v13, %v2186_v36  ;;  %v3130_v63 = vrot.slane %v2711_v20, 1  ;;  %v3258_v62 = vrot.slane %v2711_v20, 6 }
 0x218   : > { %v2772_v26 = vpack.c.bf16 %v2712_v39, %v2711_v20  ;;  %v3082_v29 = vrot.slane %v2712_v39, 7  ;;  %v3114_v17 = vsel %vm1027_vm3, -inf, %v3066_v49  ;;  %v3146_v50 = vrot.slane %v2712_v39, 1 }
 0x219   : > { %v2409_v12 = vmax.f32 %v2217_v43, %v2377_v56  ;;  %v2410_v41 = vmax.f32 %v2218_v11, %v2378_v54  ;;  %v3274_v53 = vrot.slane %v2712_v39, 6  ;;  %v3306_v23 = vsel %vm1221_vm4, -inf, %v3258_v62 }
 0x21a   : > { %4831 = vmatmul.mubr.msk.bf16.gmra.mrb[52].mxu1 %vm226_vm7, %v2772_v26  ;;  %v3098_v6 = vsel %vm1027_vm3, %v3066_v49, %v3082_v29  ;;  %v3162_v59 = vsel %vm1092_vm5, %v3146_v50, -inf  ;;  %v3178_v48 = vsel %vm1092_vm5, %v3130_v63, %v3146_v50  ;;  %v3322_v28 = vrot.slane %v2711_v20, 2 }
 0x21b   : > { %v3197_v13 = vmax.f32 %v3114_v17, %v3178_v48  ;;  %v3198_v47 = vmax.f32 %v3098_v6, %v3162_v59  ;;  %v3290_v44 = vsel %vm1221_vm4, %v3258_v62, %v3274_v53  ;;  %v3338_v37 = vrot.slane %v2712_v39, 2  ;;  %2441 = vst.msk [vmem:[#allocation2 + $0xe0] sm:$0xff] %vm226_vm7, %v2409_v12  ;;  %2442 = vst.msk [vmem:[#allocation2 + $0xe8] sm:$0xff] %vm226_vm7, %v2410_v41  ;;  %v7034_v62 = vld [vmem:[#allocation2 + $0x110] sm:$0xff]  ;;  %v7048_v6 = vld [vmem:[#allocation2 + $0x118] sm:$0xff] }
 0x21c   : > { %v2586_v61 = vmax.f32 %v2522_v8, %v6880_v31  ;;  %v2649_v18 = vmax.f32 %v6958_v45, %v6962_v57  ;;  %v1507_v27 = vmax.f32 %v6760_v40, %v6802_v1  ;;  %v1508_v14 = vmax.f32 %v6774_v3, %v6804_v7 }
 0x21d   : > { %v3229_v5 = vmax.f32 %v2711_v20, %v3197_v13  ;;  %v3230_v0 = vmax.f32 %v2712_v39, %v3198_v47  ;;  %v3354_v4 = vsel %vm1286_vm6, %v3338_v37, -inf  ;;  %v3370_v38 = vsel %vm1286_vm6, %v3322_v28, %v3338_v37 }
 0x21e   : > { %v3389_v8 = vmax.f32 %v3306_v23, %v3370_v38  ;;  %v3390_v51 = vmax.f32 %v3290_v44, %v3354_v4  ;;  %v2650_v45 = vmax.f32 %v2586_v61, %v6971_v33  ;;  %v2713_v16 = vmax.f32 %v2649_v18, %v7000_v34 }
 0x21f   : > { %v1571_v40 = vmax.f32 %v1507_v27, %v6899_v9  ;;  %v1572_v3 = vmax.f32 %v1508_v14, %v6913_v15  ;;  %v1509_v20 = vmax.f32 %v6802_v1, %v6899_v9  ;;  %v1510_v22 = vmax.f32 %v6804_v7, %v6913_v15 }
 0x220   : > { %v3421_v24 = vmax.f32 %v3229_v5, %v3389_v8  ;;  %v3422_v30 = vmax.f32 %v3230_v0, %v3390_v51  ;;  %v2714_v42 = vmax.f32 %v2650_v45, %v7015_v58  ;;  %v3067_v32 = vrot.slane %v2713_v16, 7 }
 0x221   : > { %v3131_v36 = vrot.slane %v2713_v16, 1  ;;  %v3259_v46 = vrot.slane %v2713_v16, 6  ;;  %v3323_v35 = vrot.slane %v2713_v16, 2  ;;  %v1636_v56 = vmax.f32 %v1571_v40, %v6937_v19 }
 0x222   : > { %v2773_v54 = vpack.c.bf16 %v2714_v42, %v2713_v16  ;;  %v3083_v39 = vrot.slane %v2714_v42, 7  ;;  %v3115_v49 = vsel %vm1027_vm3, -inf, %v3067_v32  ;;  %v3147_v43 = vrot.slane %v2714_v42, 1  ;;  %3453 = vst.msk [vmem:[#allocation2 + $0x50] sm:$0xff] %vm226_vm7, %v3421_v24  ;;  %3454 = vst.msk [vmem:[#allocation2 + $0x58] sm:$0xff] %vm226_vm7, %v3422_v30 }
 0x223   : > { %v3275_v1 = vrot.slane %v2714_v42, 6  ;;  %v3307_v7 = vsel %vm1221_vm4, -inf, %v3259_v46  ;;  %v3339_v11 = vrot.slane %v2714_v42, 2  ;;  %v1637_v63 = vmax.f32 %v1572_v3, %v6939_v52 }
 0x224   : > { %4834 = vmatprep.mubr.msk.bf16.mxu1 %vm226_vm7, %v2773_v54  ;;  %v3099_v26 = vsel %vm1027_vm3, %v3067_v32, %v3083_v39  ;;  %v3163_v29 = vsel %vm1092_vm5, %v3147_v43, -inf  ;;  %v3179_v17 = vsel %vm1092_vm5, %v3131_v36, %v3147_v43  ;;  %v1701_v50 = vmax.f32 %v1636_v56, %v7034_v62  ;;  %v7072_v39 = vld [vmem:[#allocation2 + $0x120] sm:$0xff] }
 0x225   : > { %v3199_v12 = vmax.f32 %v3115_v49, %v3179_v17  ;;  %v3200_v41 = vmax.f32 %v3099_v26, %v3163_v29  ;;  %v3291_v53 = vsel %vm1221_vm4, %v3259_v46, %v3275_v1  ;;  %v3355_v23 = vsel %vm1286_vm6, %v3339_v11, -inf  ;;  %v7074_v49 = vld [vmem:[#allocation2 + $0x128] sm:$0xff] }
 0x226   : > { %v3371_v59 = vsel %vm1286_vm6, %v3323_v35, %v3339_v11  ;;  %v3392_v48 = vmax.f32 %v3291_v53, %v3355_v23  ;;  %v1702_v28 = vmax.f32 %v1637_v63, %v7048_v6  ;;  %v2046_v13 = vrot.slane %v1701_v50, 7 }
 0x227   : > { %v3231_v47 = vmax.f32 %v2713_v16, %v3199_v12  ;;  %v3232_v44 = vmax.f32 %v2714_v42, %v3200_v41  ;;  %v3391_v37 = vmax.f32 %v3307_v7, %v3371_v59  ;;  %v2110_v61 = vrot.slane %v1701_v50, 1  ;;  %v7097_v59 = vld [vmem:[#allocation2 + $0x90] sm:$0xff] }
 0x228   : > { %v1752_v18 = vpack.c.bf16 %v1702_v28, %v1701_v50  ;;  %v2062_v27 = vrot.slane %v1702_v28, 7  ;;  %v2094_v14 = vsel %vm1027_vm3, -inf, %v2046_v13  ;;  %v2126_v5 = vrot.slane %v1702_v28, 1 }
 0x229   : > { %v3423_v0 = vmax.f32 %v3231_v47, %v3391_v37  ;;  %v3424_v4 = vmax.f32 %v3232_v44, %v3392_v48  ;;  %v2238_v38 = vrot.slane %v1701_v50, 6  ;;  %v2254_v8 = vrot.slane %v1702_v28, 6 }
 0x22a   : > { %4817 = vmatmul.mubr.msk.bf16.gmra.mrb[40].mxu0 %vm226_vm7, %v1752_v18  ;;  %v2078_v51 = vsel %vm1027_vm3, %v2046_v13, %v2062_v27  ;;  %v2142_v45 = vsel %vm1092_vm5, %v2126_v5, -inf  ;;  %v2158_v16 = vsel %vm1092_vm5, %v2110_v61, %v2126_v5  ;;  %v2302_v40 = vrot.slane %v1701_v50, 2  ;;  %v7106_v5 = vld [vmem:[#allocation2 + $0x98] sm:$0xff] }
 0x22b   : > { %v2187_v3 = vmax.f32 %v2094_v14, %v2158_v16  ;;  %v2188_v24 = vmax.f32 %v2078_v51, %v2142_v45  ;;  %v2270_v30 = vsel %vm1221_vm4, %v2238_v38, %v2254_v8  ;;  %v2286_v42 = vsel %vm1221_vm4, -inf, %v2238_v38  ;;  %3455 = vst.msk [vmem:[#allocation2 + $0x60] sm:$0xff] %vm226_vm7, %v3423_v0  ;;  %3456 = vst.msk [vmem:[#allocation2 + $0x68] sm:$0xff] %vm226_vm7, %v3424_v4 }
 0x22c   : > { %v2318_v32 = vrot.slane %v1702_v28, 2  ;;  %v1573_v36 = vmax.f32 %v1509_v20, %v6937_v19  ;;  %v1574_v46 = vmax.f32 %v1510_v22, %v6939_v52  ;;  %v2523_v35 = vmax.f32 %v6827_v2, %v6865_v25 }
 0x22d   : > { %v2219_v56 = vmax.f32 %v1701_v50, %v2187_v3  ;;  %v2220_v54 = vmax.f32 %v1702_v28, %v2188_v24  ;;  %v2524_v43 = vmax.f32 %v6836_v60, %v6880_v31  ;;  %v2525_v1 = vmax.f32 %v6865_v25, %v6962_v57 }
 0x22e   : > { %v2334_v20 = vsel %vm1286_vm6, %v2318_v32, -inf  ;;  %v2350_v22 = vsel %vm1286_vm6, %v2302_v40, %v2318_v32  ;;  %v1638_v2 = vmax.f32 %v1573_v36, %v7034_v62  ;;  %v1639_v7 = vmax.f32 %v1574_v46, %v7048_v6 }
 0x22f   : > { %v2379_v11 = vmax.f32 %v2286_v42, %v2350_v22  ;;  %v2380_v63 = vmax.f32 %v2270_v30, %v2334_v20  ;;  %v2587_v26 = vmax.f32 %v2523_v35, %v6962_v57  ;;  %v2588_v29 = vmax.f32 %v2524_v43, %v6971_v33 }
 0x230   : > { %v1703_v60 = vmax.f32 %v1638_v2, %v7072_v39  ;;  %v1704_v25 = vmax.f32 %v1639_v7, %v7074_v49  ;;  %v2526_v17 = vmax.f32 %v6880_v31, %v6971_v33  ;;  %v7093_v50 = vmax.f32 %v2525_v1, %v7000_v34 }
 0x231   : > { %v2411_v12 = vmax.f32 %v2219_v56, %v2379_v11  ;;  %v2412_v41 = vmax.f32 %v2220_v54, %v2380_v63  ;;  %v2651_v53 = vmax.f32 %v2587_v26, %v7000_v34  ;;  %v2652_v23 = vmax.f32 %v2588_v29, %v7015_v58 }
 0x232   : > { %v1753_v48 = vpack.c.bf16 %v1704_v25, %v1703_v60  ;;  %v2047_v28 = vrot.slane %v1703_v60, 7  ;;  %v2063_v13 = vrot.slane %v1704_v25, 7  ;;  %v2111_v47 = vrot.slane %v1703_v60, 1 }
 0x233   : > { %v2127_v44 = vrot.slane %v1704_v25, 1  ;;  %v2239_v37 = vrot.slane %v1703_v60, 6  ;;  %v2255_v61 = vrot.slane %v1704_v25, 6  ;;  %v2303_v18 = vrot.slane %v1703_v60, 2  ;;  %2443 = vst.msk [vmem:[#allocation2 + $0xf0] sm:$0xff] %vm226_vm7, %v2411_v12  ;;  %2444 = vst.msk [vmem:[#allocation2 + $0xf8] sm:$0xff] %vm226_vm7, %v2412_v41 }
 0x234   : > { %4820 = vmatprep.mubr.msk.bf16.mxu0 %vm226_vm7, %v1753_v48  ;;  %v2079_v31 = vsel %vm1027_vm3, %v2047_v28, %v2063_v13  ;;  %v2095_v27 = vsel %vm1027_vm3, -inf, %v2047_v28  ;;  %v2319_v14 = vrot.slane %v1704_v25, 2  ;;  %v2715_v0 = vmax.f32 %v2651_v53, %v7097_v59 }
 0x235   : > { %v2143_v4 = vsel %vm1092_vm5, %v2127_v44, -inf  ;;  %v2159_v38 = vsel %vm1092_vm5, %v2111_v47, %v2127_v44  ;;  %v2271_v8 = vsel %vm1221_vm4, %v2239_v37, %v2255_v61  ;;  %v2287_v51 = vsel %vm1221_vm4, -inf, %v2239_v37  ;;  %v7144_v47 = vld [vmem:[#allocation2] sm:$0xff]  ;;  %v7146_v44 = vld [vmem:[#allocation2 + $0x8] sm:$0xff] }
 0x236   : > { %v2189_v45 = vmax.f32 %v2095_v27, %v2159_v38  ;;  %v2190_v16 = vmax.f32 %v2079_v31, %v2143_v4  ;;  %v2335_v40 = vsel %vm1286_vm6, %v2319_v14, -inf  ;;  %v2351_v3 = vsel %vm1286_vm6, %v2303_v18, %v2319_v14  ;;  %v7152_v31 = vld [vmem:[#allocation2 + $0xa0] sm:$0xff] }
 0x237   : > { %v2381_v24 = vmax.f32 %v2287_v51, %v2351_v3  ;;  %v2382_v30 = vmax.f32 %v2271_v8, %v2335_v40  ;;  %v2716_v42 = vmax.f32 %v2652_v23, %v7106_v5  ;;  %v3068_v32 = vrot.slane %v2715_v0, 7 }
 0x238   : > { %v2221_v36 = vmax.f32 %v1703_v60, %v2189_v45  ;;  %v2222_v46 = vmax.f32 %v1704_v25, %v2190_v16  ;;  %v3132_v35 = vrot.slane %v2715_v0, 1  ;;  %v3260_v56 = vrot.slane %v2715_v0, 6 }
 0x239   : > { %v2774_v54 = vpack.c.bf16 %v2716_v42, %v2715_v0  ;;  %v3084_v43 = vrot.slane %v2716_v42, 7  ;;  %v3116_v1 = vsel %vm1027_vm3, -inf, %v3068_v32  ;;  %v3148_v20 = vrot.slane %v2716_v42, 1 }
 0x23a   : > { %v2413_v22 = vmax.f32 %v2221_v36, %v2381_v24  ;;  %v2414_v2 = vmax.f32 %v2222_v46, %v2382_v30  ;;  %v3276_v7 = vrot.slane %v2716_v42, 6  ;;  %v3308_v11 = vsel %vm1221_vm4, -inf, %v3260_v56  ;;  %v1673_v30 = vld [vmem:[#allocation2 + $0x130] sm:$0xff] }
 0x23b   : > { %4835 = vmatmul.mubr.msk.bf16.gmra.mrb[56].mxu1 %vm226_vm7, %v2774_v54  ;;  %v3100_v63 = vsel %vm1027_vm3, %v3068_v32, %v3084_v43  ;;  %v3164_v26 = vsel %vm1092_vm5, %v3148_v20, -inf  ;;  %v3180_v29 = vsel %vm1092_vm5, %v3132_v35, %v3148_v20  ;;  %v3324_v60 = vrot.slane %v2715_v0, 2  ;;  %v1674_v54 = vld [vmem:[#allocation2 + $0x138] sm:$0xff] }
 0x23c   : > { %v3201_v25 = vmax.f32 %v3116_v1, %v3180_v29  ;;  %v3202_v12 = vmax.f32 %v3100_v63, %v3164_v26  ;;  %v3292_v41 = vsel %vm1221_vm4, %v3260_v56, %v3276_v7  ;;  %v3340_v53 = vrot.slane %v2716_v42, 2  ;;  %2445 = vst.msk [vmem:[#allocation2 + $0x100] sm:$0xff] %vm226_vm7, %v2413_v22  ;;  %2446 = vst.msk [vmem:[#allocation2 + $0x108] sm:$0xff] %vm226_vm7, %v2414_v2 }
 0x23d   : > { %v2590_v23 = vmax.f32 %v2526_v17, %v7015_v58  ;;  %v2653_v48 = vmax.f32 %v7093_v50, %v7097_v59  ;;  %v1511_v28 = vmax.f32 %v6899_v9, %v6937_v19  ;;  %v1512_v13 = vmax.f32 %v6913_v15, %v6939_v52  ;;  %v7156_v19 = vld [vmem:[#allocation2 + $0xa8] sm:$0xff] }
 0x23e   : > { %v3233_v37 = vmax.f32 %v2715_v0, %v3201_v25  ;;  %v3234_v61 = vmax.f32 %v2716_v42, %v3202_v12  ;;  %v3356_v18 = vsel %vm1286_vm6, %v3340_v53, -inf  ;;  %v3372_v17 = vsel %vm1286_vm6, %v3324_v60, %v3340_v53 }
 0x23f   : > { %v3393_v50 = vmax.f32 %v3308_v11, %v3372_v17  ;;  %v3394_v27 = vmax.f32 %v3292_v41, %v3356_v18  ;;  %v2654_v9 = vmax.f32 %v2590_v23, %v7106_v5  ;;  %v2717_v15 = vmax.f32 %v2653_v48, %v7152_v31  ;;  %v7188_v17 = vld [vmem:[#allocation2 + $0x20] sm:$0xff] }
 0x240   : > { %v1575_v52 = vmax.f32 %v1511_v28, %v7034_v62  ;;  %v1576_v14 = vmax.f32 %v1512_v13, %v7048_v6  ;;  %v3543_v0 = vmax.f32 %v7144_v47, %v6781_v21  ;;  %v3544_v4 = vmax.f32 %v7146_v44, %v6790_v10 }
 0x241   : > { %v3425_v38 = vmax.f32 %v3233_v37, %v3393_v50  ;;  %v3426_v8 = vmax.f32 %v3234_v61, %v3394_v27  ;;  %v2718_v51 = vmax.f32 %v2654_v9, %v7156_v19  ;;  %v3069_v45 = vrot.slane %v2717_v15, 7  ;;  %v7190_v50 = vld [vmem:[#allocation2 + $0x28] sm:$0xff]  ;;  %v7192_v27 = vpop.f32.mrb[16].mxu1 }
 0x242   : > { %v3133_v16 = vrot.slane %v2717_v15, 1  ;;  %v3261_v40 = vrot.slane %v2717_v15, 6  ;;  %v3325_v3 = vrot.slane %v2717_v15, 2  ;;  %v1640_v24 = vmax.f32 %v1575_v52, %v7072_v39  ;;  %963 = vst.msk [vmem:[#allocation3 + $0x10] sm:$0xff] %vm960_vm8, %v7192_v27 }
 0x243   : > { %v2775_v62 = vpack.c.bf16 %v2718_v51, %v2717_v15  ;;  %v3085_v42 = vrot.slane %v2718_v51, 7  ;;  %v3117_v6 = vsel %vm1027_vm3, -inf, %v3069_v45  ;;  %v3149_v32 = vrot.slane %v2718_v51, 1  ;;  %3457 = vst.msk [vmem:[#allocation2 + $0x70] sm:$0xff] %vm226_vm7, %v3425_v38  ;;  %3458 = vst.msk [vmem:[#allocation2 + $0x78] sm:$0xff] %vm226_vm7, %v3426_v8  ;;  %v7201_v38 = vpop.f32.mrb[17].mxu1 }
 0x244   : > { %v3277_v36 = vrot.slane %v2718_v51, 6  ;;  %v3309_v46 = vsel %vm1221_vm4, -inf, %v3261_v40  ;;  %v3341_v35 = vrot.slane %v2718_v51, 2  ;;  %v1641_v56 = vmax.f32 %v1576_v14, %v7074_v49  ;;  %961 = vst.msk [vmem:[#allocation3] sm:$0xff] %vm960_vm8, %v7201_v38 }
 0x245   : > { %4838 = vmatprep.mubr.msk.bf16.mxu1 %vm226_vm7, %v2775_v62  ;;  %v3101_v39 = vsel %vm1027_vm3, %v3069_v45, %v3085_v42  ;;  %v3165_v43 = vsel %vm1092_vm5, %v3149_v32, -inf  ;;  %v3181_v1 = vsel %vm1092_vm5, %v3133_v16, %v3149_v32  ;;  %v1705_v20 = vmax.f32 %v1640_v24, %v1673_v30  ;;  %v7213_v24 = vpop.f32.mrb[18].mxu1 }
 0x246   : > { %v3203_v22 = vmax.f32 %v3117_v6, %v3181_v1  ;;  %v3204_v2 = vmax.f32 %v3101_v39, %v3165_v43  ;;  %v3293_v7 = vsel %vm1221_vm4, %v3261_v40, %v3277_v36  ;;  %v3357_v49 = vsel %vm1286_vm6, %v3341_v35, -inf  ;;  %v7207_v40 = vld [vmem:[#allocation2 + $0x30] sm:$0xff]  ;;  %v7225_v32 = vpop.f32.mrb[19].mxu1  ;;  %964 = vst.msk [vmem:[#allocation3 + $0x18] sm:$0xff] %vm960_vm8, %v7213_v24 }
 0x247   : > { %v3373_v11 = vsel %vm1286_vm6, %v3325_v3, %v3341_v35  ;;  %v3396_v63 = vmax.f32 %v3293_v7, %v3357_v49  ;;  %v1706_v26 = vmax.f32 %v1641_v56, %v1674_v54  ;;  %v2048_v29 = vrot.slane %v1705_v20, 7  ;;  %v7209_v3 = vld [vmem:[#allocation2 + $0x38] sm:$0xff]  ;;  %v7227_v35 = vld [vmem:[#allocation2 + $0x40] sm:$0xff]  ;;  %v7229_v56 = vld [vmem:[#allocation2 + $0x48] sm:$0xff]  ;;  %962 = vst.msk [vmem:[#allocation3 + $0x8] sm:$0xff] %vm960_vm8, %v7225_v32 }
 0x248   : > { %v3235_v60 = vmax.f32 %v2717_v15, %v3203_v22  ;;  %v3236_v25 = vmax.f32 %v2718_v51, %v3204_v2  ;;  %v3395_v12 = vmax.f32 %v3309_v46, %v3373_v11  ;;  %v2112_v41 = vrot.slane %v1705_v20, 1  ;;  %v3481_v1 = vld [vmem:[#allocation2 + $0x10] sm:$0xff]  ;;  %v7254_v11 = vld [vmem:[#allocation2 + $0x18] sm:$0xff] }
 0x249   : > { %v1754_v53 = vpack.c.bf16 %v1706_v26, %v1705_v20  ;;  %v2064_v23 = vrot.slane %v1706_v26, 7  ;;  %v2096_v48 = vsel %vm1027_vm3, -inf, %v2048_v29  ;;  %v2128_v28 = vrot.slane %v1706_v26, 1 }
 0x24a   : > { %v3427_v13 = vmax.f32 %v3235_v60, %v3395_v12  ;;  %v3428_v37 = vmax.f32 %v3236_v25, %v3396_v63  ;;  %v2240_v61 = vrot.slane %v1705_v20, 6  ;;  %v2256_v18 = vrot.slane %v1706_v26, 6  ;;  %v7260_v12 = vld [vmem:[#allocation2 + $0xb0] sm:$0xff] }
 0x24b   : > { %4821 = vmatmul.mubr.msk.bf16.gmra.mrb[44].mxu0 %vm226_vm7, %v1754_v53  ;;  %v2080_v9 = vsel %vm1027_vm3, %v2048_v29, %v2064_v23  ;;  %v2144_v15 = vsel %vm1092_vm5, %v2128_v28, -inf  ;;  %v2160_v52 = vsel %vm1092_vm5, %v2112_v41, %v2128_v28  ;;  %v2304_v14 = vrot.slane %v1705_v20, 2  ;;  %v7264_v23 = vld [vmem:[#allocation2 + $0xb8] sm:$0xff] }
 0x24c   : > { %v2191_v8 = vmax.f32 %v2096_v48, %v2160_v52  ;;  %v2192_v51 = vmax.f32 %v2080_v9, %v2144_v15  ;;  %v2272_v45 = vsel %vm1221_vm4, %v2240_v61, %v2256_v18  ;;  %v2288_v16 = vsel %vm1221_vm4, -inf, %v2240_v61  ;;  %3459 = vst.msk [vmem:[#allocation2 + $0x80] sm:$0xff] %vm226_vm7, %v3427_v13  ;;  %3460 = vst.msk [vmem:[#allocation2 + $0x88] sm:$0xff] %vm226_vm7, %v3428_v37  ;;  %v7275_v18 = vld [vmem:[#allocation2 + $0xc0] sm:$0xff] }
 0x24d   : > { %v2320_v30 = vrot.slane %v1706_v26, 2  ;;  %v3607_v62 = vmax.f32 %v3543_v0, %v7188_v17  ;;  %v3608_v42 = vmax.f32 %v3544_v4, %v7190_v50  ;;  %v2527_v6 = vmax.f32 %v6962_v57, %v7000_v34  ;;  %v7235_v0 = vpop.f32.mrb[20].mxu1 }
 0x24e   : > { %v2223_v36 = vmax.f32 %v1705_v20, %v2191_v8  ;;  %v2224_v46 = vmax.f32 %v1706_v26, %v2192_v51  ;;  %v2528_v21 = vmax.f32 %v6971_v33, %v7015_v58  ;;  %v2529_v47 = vmax.f32 %v7000_v34, %v7097_v59  ;;  %v7243_v54 = vpop.f32.mrb[21].mxu1  ;;  %967 = vst.msk [vmem:[#allocation3 + $0x30] sm:$0xff] %vm960_vm8, %v7235_v0 }
 0x24f   : > { %v2336_v10 = vsel %vm1286_vm6, %v2320_v30, -inf  ;;  %v2352_v57 = vsel %vm1286_vm6, %v2304_v14, %v2320_v30  ;;  %v3671_v44 = vmax.f32 %v3607_v62, %v7207_v40  ;;  %v3672_v4 = vmax.f32 %v3608_v42, %v7209_v3  ;;  %v7247_v20 = vpop.f32.mrb[22].mxu1  ;;  %965 = vst.msk [vmem:[#allocation3 + $0x20] sm:$0xff] %vm960_vm8, %v7243_v54 }
 0x250   : > { %v2383_v39 = vmax.f32 %v2288_v16, %v2352_v57  ;;  %v2384_v43 = vmax.f32 %v2272_v45, %v2336_v10  ;;  %v2591_v33 = vmax.f32 %v2527_v6, %v7097_v59  ;;  %v2592_v34 = vmax.f32 %v2528_v21, %v7106_v5  ;;  %v7256_v63 = vpop.f32.mrb[23].mxu1  ;;  %968 = vst.msk [vmem:[#allocation3 + $0x38] sm:$0xff] %vm960_vm8, %v7247_v20 }
 0x251   : > { %v3735_v22 = vmax.f32 %v3671_v44, %v7227_v35  ;;  %v3736_v2 = vmax.f32 %v3672_v4, %v7229_v56  ;;  %v2530_v7 = vmax.f32 %v7015_v58, %v7106_v5  ;;  %v2593_v49 = vmax.f32 %v2529_v47, %v7152_v31  ;;  %v7262_v41 = vpop.f32.mrb[24].mxu1  ;;  %v7301_v4 = vld [vmem:[#allocation2 + $0xc8] sm:$0xff]  ;;  %966 = vst.msk [vmem:[#allocation3 + $0x28] sm:$0xff] %vm960_vm8, %v7256_v63 }
 0x252   : > { %v2415_v26 = vmax.f32 %v2223_v36, %v2383_v39  ;;  %v2416_v29 = vmax.f32 %v2224_v46, %v2384_v43  ;;  %v2655_v60 = vmax.f32 %v2591_v33, %v7152_v31  ;;  %v2656_v25 = vmax.f32 %v2592_v34, %v7156_v19  ;;  %v7269_v13 = vpop.f32.mrb[25].mxu1  ;;  %v7283_v14 = vpop.f32.mrb[16].mxu0  ;;  %971 = vst.msk [vmem:[#allocation3 + $0x50] sm:$0xff] %vm960_vm8, %v7262_v41 }
 0x253   : > { %v3799_v53 = vpack.c.bf16 %v3736_v2, %v3735_v22  ;;  %v2594_v58 = vmax.f32 %v2530_v7, %v7156_v19  ;;  %v2657_v48 = vmax.f32 %v2593_v49, %v7260_v12  ;;  %v3545_v28 = vmax.f32 %v3481_v1, %v7188_v17  ;;  %v7281_v52 = vpop.f32.mrb[26].mxu1  ;;  %8397 = vst [vmem:[#allocation7_spill] sm:$0xff] %v7283_v14  ;;  %v7297_v62 = vpop.f32.mrb[17].mxu0 }
 0x254   : > { %2447 = vst.msk [vmem:[#allocation2 + $0x110] sm:$0xff] %vm226_vm7, %v2415_v26  ;;  %2448 = vst.msk [vmem:[#allocation2 + $0x118] sm:$0xff] %vm226_vm7, %v2416_v29  ;;  %v2719_v37 = vmax.f32 %v2655_v60, %v7260_v12  ;;  %v2720_v61 = vmax.f32 %v2656_v25, %v7264_v23  ;;  %v3546_v9 = vmax.f32 %v7254_v11, %v7190_v50  ;;  %v7295_v30 = vpop.f32.mrb[27].mxu1  ;;  %v7299_v21 = vpop.f32.mrb[18].mxu0 }
 0x255   : > { %v3547_v15 = vmax.f32 %v7188_v17, %v7207_v40  ;;  %4860 = vmatprep.mubr.msk.bf16.mxu0 %vm226_vm7, %v3799_v53  ;;  %v2658_v8 = vmax.f32 %v2594_v58, %v7264_v23  ;;  %v7288_v51 = vmax.f32 %v2657_v48, %v7275_v18  ;;  %v7291_v45 = vmax.f32 %v3545_v28, %v7207_v40  ;;  %v7303_v39 = vpop.f32.mrb[19].mxu0 }
 0x256   : > { %v3548_v16 = vmax.f32 %v7190_v50, %v7209_v3  ;;  %8398 = vst [vmem:[#allocation8_spill] sm:$0xff] %v7297_v62  ;;  %v2776_v42 = vpack.c.bf16 %v2720_v61, %v2719_v37  ;;  %v3070_v6 = vrot.slane %v2719_v37, 7  ;;  %v3086_v36 = vrot.slane %v2720_v61, 7  ;;  %8399 = vst [vmem:[#allocation9_spill] sm:$0xff] %v7299_v21 }
 0x257   : > { %v3134_v46 = vrot.slane %v2719_v37, 1  ;;  %v3150_v47 = vrot.slane %v2720_v61, 1  ;;  %v3262_v10 = vrot.slane %v2719_v37, 6  ;;  %v3278_v57 = vrot.slane %v2720_v61, 6  ;;  %8400 = vst [vmem:[#allocation5_spill] sm:$0xff] %v7303_v39  ;;  %969 = vst.msk [vmem:[#allocation3 + $0x40] sm:$0xff] %vm960_vm8, %v7269_v13 }
 0x258   : > { %v3326_v44 = vrot.slane %v2719_v37, 2  ;;  %4839 = vmatmul.mubr.msk.bf16.gmra.mrb[60].mxu1 %vm226_vm7, %v2776_v42  ;;  %v3102_v50 = vsel %vm1027_vm3, %v3070_v6, %v3086_v36  ;;  %v3118_v43 = vsel %vm1027_vm3, -inf, %v3070_v6  ;;  %v3342_v33 = vrot.slane %v2720_v61, 2  ;;  %972 = vst.msk [vmem:[#allocation3 + $0x58] sm:$0xff] %vm960_vm8, %v7281_v52  ;;  %970 = vst.msk [vmem:[#allocation3 + $0x48] sm:$0xff] %vm960_vm8, %v7295_v30 }
 0x259   : > { %v2722_v34 = vmax.f32 %v2658_v8, %v7301_v4  ;;  %v3166_v1 = vsel %vm1092_vm5, %v3150_v47, -inf  ;;  %v3182_v22 = vsel %vm1092_vm5, %v3134_v46, %v3150_v47  ;;  %v3294_v2 = vsel %vm1221_vm4, %v3262_v10, %v3278_v57 }
 0x25a   : > { %v3310_v7 = vsel %vm1221_vm4, -inf, %v3262_v10  ;;  %v3205_v49 = vmax.f32 %v3118_v43, %v3182_v22  ;;  %v3206_v11 = vmax.f32 %v3102_v50, %v3166_v1  ;;  %v3358_v26 = vsel %vm1286_vm6, %v3342_v33, -inf }
 0x25b   : > { %v3374_v29 = vsel %vm1286_vm6, %v3326_v44, %v3342_v33  ;;  %v3398_v25 = vmax.f32 %v3294_v2, %v3358_v26  ;;  %v2777_v53 = vpack.c.bf16 %v2722_v34, %v7288_v51  ;;  %v3071_v58 = vrot.slane %v7288_v51, 7  ;;  %v7348_v26 = vld [vmem:[#allocation2 + $0x58] sm:$0xff] }
 0x25c   : > { %v3397_v60 = vmax.f32 %v3310_v7, %v3374_v29  ;;  %v3237_v48 = vmax.f32 %v2719_v37, %v3205_v49  ;;  %v3238_v28 = vmax.f32 %v2720_v61, %v3206_v11  ;;  %v3087_v8 = vrot.slane %v2722_v34, 7  ;;  %v7342_v49 = vld [vmem:[#allocation2 + $0x50] sm:$0xff] }
 0x25d   : > { %v3135_v42 = vrot.slane %v7288_v51, 1  ;;  %4842 = vmatprep.mubr.msk.bf16.mxu1 %vm226_vm7, %v2777_v53  ;;  %v3119_v6 = vsel %vm1027_vm3, -inf, %v3071_v58  ;;  %v3151_v36 = vrot.slane %v2722_v34, 1  ;;  %v3263_v46 = vrot.slane %v7288_v51, 6 }
 0x25e   : > { %v3279_v47 = vrot.slane %v2722_v34, 6  ;;  %v3429_v10 = vmax.f32 %v3237_v48, %v3397_v60  ;;  %v3430_v57 = vmax.f32 %v3238_v28, %v3398_v25  ;;  %v3103_v44 = vsel %vm1027_vm3, %v3071_v58, %v3087_v8 }
 0x25f   : > { %v3327_v37 = vrot.slane %v7288_v51, 2  ;;  %v3167_v61 = vsel %vm1092_vm5, %v3151_v36, -inf  ;;  %v3183_v50 = vsel %vm1092_vm5, %v3135_v42, %v3151_v36  ;;  %v3311_v33 = vsel %vm1221_vm4, -inf, %v3263_v46 }
 0x260   : > { %v3295_v43 = vsel %vm1221_vm4, %v3263_v46, %v3279_v47  ;;  %v3207_v1 = vmax.f32 %v3119_v6, %v3183_v50  ;;  %v3208_v22 = vmax.f32 %v3103_v44, %v3167_v61  ;;  %v3343_v2 = vrot.slane %v2722_v34, 2  ;;  %3461 = vst.msk [vmem:[#allocation2 + $0x90] sm:$0xff] %vm226_vm7, %v3429_v10  ;;  %3462 = vst.msk [vmem:[#allocation2 + $0x98] sm:$0xff] %vm226_vm7, %v3430_v57  ;;  %v7380_v50 = vld [vmem:[#allocation2 + $0xd0] sm:$0xff] }
 0x261   : > { %v3610_v7 = vmax.f32 %v3546_v9, %v7209_v3  ;;  %v3673_v11 = vmax.f32 %v7291_v45, %v7227_v35  ;;  %v3611_v29 = vmax.f32 %v3547_v15, %v7227_v35  ;;  %v3612_v60 = vmax.f32 %v3548_v16, %v7229_v56  ;;  %v7364_v15 = vld [vmem:[#allocation2 + $0x60] sm:$0xff]  ;;  %v7366_v16 = vld [vmem:[#allocation2 + $0x68] sm:$0xff] }
 0x262   : > { %v2531_v9 = vmax.f32 %v7097_v59, %v7152_v31  ;;  %v3239_v25 = vmax.f32 %v7288_v51, %v3207_v1  ;;  %v3240_v53 = vmax.f32 %v2722_v34, %v3208_v22  ;;  %v3359_v58 = vsel %vm1286_vm6, %v3343_v2, -inf }
 0x263   : > { %v3375_v45 = vsel %vm1286_vm6, %v3327_v37, %v3343_v2  ;;  %v3400_v28 = vmax.f32 %v3295_v43, %v3359_v58  ;;  %v3674_v8 = vmax.f32 %v3610_v7, %v7229_v56  ;;  %v3737_v17 = vmax.f32 %v3673_v11, %v7342_v49 }
 0x264   : > { %v3399_v48 = vmax.f32 %v3311_v33, %v3375_v45  ;;  %v3675_v59 = vmax.f32 %v3611_v29, %v7342_v49  ;;  %v3676_v51 = vmax.f32 %v3612_v60, %v7348_v26  ;;  %v2532_v34 = vmax.f32 %v7106_v5, %v7156_v19 }
 0x265   : > { %v2595_v42 = vmax.f32 %v2531_v9, %v7260_v12  ;;  %v3432_v36 = vmax.f32 %v3240_v53, %v3400_v28  ;;  %v3738_v46 = vmax.f32 %v3674_v8, %v7348_v26  ;;  %v2533_v47 = vmax.f32 %v7152_v31, %v7260_v12  ;;  %v7405_v53 = vld [vmem:[#allocation2 + $0xe0] sm:$0xff] }
 0x266   : > { %v3431_v6 = vmax.f32 %v3239_v25, %v3399_v48  ;;  %v3739_v10 = vmax.f32 %v3675_v59, %v7364_v15  ;;  %v3740_v57 = vmax.f32 %v3676_v51, %v7366_v16  ;;  %v2596_v44 = vmax.f32 %v2532_v34, %v7264_v23  ;;  %v7412_v34 = vld [vmem:[#allocation2 + $0xe8] sm:$0xff] }
 0x267   : > { %v2659_v37 = vmax.f32 %v2595_v42, %v7275_v18  ;;  %v3800_v61 = vpack.c.bf16 %v3738_v46, %v3737_v17  ;;  %v2534_v5 = vmax.f32 %v7156_v19, %v7264_v23  ;;  %v2597_v43 = vmax.f32 %v2533_v47, %v7275_v18  ;;  %3464 = vst.msk [vmem:[#allocation2 + $0xa8] sm:$0xff] %vm226_vm7, %v3432_v36  ;;  %v7394_v19 = vld [vmem:[#allocation2 + $0xd8] sm:$0xff] }
 0x268   : > { %3463 = vst.msk [vmem:[#allocation2 + $0xa0] sm:$0xff] %vm226_vm7, %v3431_v6  ;;  %v3549_v31 = vmax.f32 %v7207_v40, %v7227_v35  ;;  %v3801_v33 = vpack.c.bf16 %v3740_v57, %v3739_v10  ;;  %v2660_v1 = vmax.f32 %v2596_v44, %v7301_v4  ;;  %v3550_v2 = vmax.f32 %v7209_v3, %v7229_v56 }
 0x269   : > { %v2723_v22 = vmax.f32 %v2659_v37, %v7380_v50  ;;  %4861 = vmatmul.mubr.msk.bf16.vlgmr.msra.gmra.mrb[48].mxu0 %vm226_vm7, %v3800_v61  ;;  %v2598_v7 = vmax.f32 %v2534_v5, %v7301_v4  ;;  %v2661_v11 = vmax.f32 %v2597_v43, %v7380_v50  ;;  %v3551_v40 = vmax.f32 %v7227_v35, %v7342_v49 }
 0x26a   : > { %v7399_v29 = vmax.f32 %v3549_v31, %v7342_v49  ;;  %4864 = vmatprep.mubr.msk.bf16.mxu0 %vm226_vm7, %v3801_v33  ;;  %v2724_v60 = vmax.f32 %v2660_v1, %v7394_v19  ;;  %v3614_v28 = vmax.f32 %v3550_v2, %v7348_v26 }
 0x26b   : > { %v3072_v9 = vrot.slane %v2723_v22, 7  ;;  %v3136_v3 = vrot.slane %v2723_v22, 1  ;;  %v3264_v25 = vrot.slane %v2723_v22, 6  ;;  %v3328_v58 = vrot.slane %v2723_v22, 2 }
 0x26c   : > { %v2662_v45 = vmax.f32 %v2598_v7, %v7394_v19  ;;  %v2725_v48 = vmax.f32 %v2661_v11, %v7405_v53  ;;  %v2778_v8 = vpack.c.bf16 %v2724_v60, %v2723_v22  ;;  %v3088_v17 = vrot.slane %v2724_v60, 7 }
 0x26d   : > { %v3120_v59 = vsel %vm1027_vm3, -inf, %v3072_v9  ;;  %v3152_v51 = vrot.slane %v2724_v60, 1  ;;  %v3280_v42 = vrot.slane %v2724_v60, 6  ;;  %v3312_v6 = vsel %vm1221_vm4, -inf, %v3264_v25 }
 0x26e   : > { %v3344_v36 = vrot.slane %v2724_v60, 2  ;;  %v2726_v46 = vmax.f32 %v2662_v45, %v7412_v34  ;;  %4843 = vmatmul.mubr.msk.bf16.gmra.mrb[64].mxu1 %vm226_vm7, %v2778_v8  ;;  %v3104_v47 = vsel %vm1027_vm3, %v3072_v9, %v3088_v17  ;;  %v3073_v44 = vrot.slane %v2725_v48, 7 }
 0x26f   : > { %v3168_v10 = vsel %vm1092_vm5, %v3152_v51, -inf  ;;  %v3184_v57 = vsel %vm1092_vm5, %v3136_v3, %v3152_v51  ;;  %v3296_v5 = vsel %vm1221_vm4, %v3264_v25, %v3280_v42  ;;  %v3137_v45 = vrot.slane %v2725_v48, 1 }
 0x270   : > { %v3209_v37 = vmax.f32 %v3120_v59, %v3184_v57  ;;  %v3210_v61 = vmax.f32 %v3104_v47, %v3168_v10  ;;  %v3360_v43 = vsel %vm1286_vm6, %v3344_v36, -inf  ;;  %v3376_v31 = vsel %vm1286_vm6, %v3328_v58, %v3344_v36 }
 0x271   : > { %v3402_v33 = vmax.f32 %v3296_v5, %v3360_v43  ;;  %v2779_v1 = vpack.c.bf16 %v2726_v46, %v2725_v48  ;;  %v3089_v2 = vrot.slane %v2726_v46, 7  ;;  %v3401_v9 = vmax.f32 %v3312_v6, %v3376_v31  ;;  %v7435_v36 = vpop.f32.mrb[28].mxu1  ;;  %v7449_v5 = vld [vmem:[#allocation2 + $0x70] sm:$0xff]  ;;  %v7451_v43 = vld [vmem:[#allocation2 + $0x78] sm:$0xff] }
 0x272   : > { %v3241_v7 = vmax.f32 %v2723_v22, %v3209_v37  ;;  %v3242_v11 = vmax.f32 %v2724_v60, %v3210_v61  ;;  %v3121_v3 = vsel %vm1027_vm3, -inf, %v3073_v44  ;;  %v3153_v8 = vrot.slane %v2726_v46, 1  ;;  %v7443_v10 = vpop.f32.mrb[29].mxu1  ;;  %975 = vst.msk [vmem:[#allocation3 + $0x70] sm:$0xff] %vm960_vm8, %v7435_v36 }
 0x273   : > { %4846 = vmatprep.mubr.msk.bf16.mxu1 %vm226_vm7, %v2779_v1  ;;  %v3105_v25 = vsel %vm1027_vm3, %v3073_v44, %v3089_v2  ;;  %v3265_v17 = vrot.slane %v2725_v48, 6  ;;  %v3281_v58 = vrot.slane %v2726_v46, 6  ;;  %v3329_v42 = vrot.slane %v2725_v48, 2  ;;  %v7455_v31 = vpop.f32.mrb[30].mxu1  ;;  %973 = vst.msk [vmem:[#allocation3 + $0x60] sm:$0xff] %vm960_vm8, %v7443_v10 }
 0x274   : > { %v3433_v59 = vmax.f32 %v3241_v7, %v3401_v9  ;;  %v3434_v51 = vmax.f32 %v3242_v11, %v3402_v33  ;;  %v3169_v22 = vsel %vm1092_vm5, %v3153_v8, -inf  ;;  %v3185_v60 = vsel %vm1092_vm5, %v3137_v45, %v3153_v8  ;;  %v7464_v7 = vpop.f32.mrb[31].mxu1  ;;  %976 = vst.msk [vmem:[#allocation3 + $0x78] sm:$0xff] %vm960_vm8, %v7455_v31 }
 0x275   : > { %v3313_v6 = vsel %vm1221_vm4, -inf, %v3265_v17  ;;  %v3345_v47 = vrot.slane %v2726_v46, 2  ;;  %v3211_v57 = vmax.f32 %v3121_v3, %v3185_v60  ;;  %v3212_v44 = vmax.f32 %v3105_v25, %v3169_v22  ;;  %974 = vst.msk [vmem:[#allocation3 + $0x68] sm:$0xff] %vm960_vm8, %v7464_v7 }
 0x276   : > { %v3297_v37 = vsel %vm1221_vm4, %v3265_v17, %v3281_v58  ;;  %v3677_v61 = vmax.f32 %v7399_v29, %v7364_v15  ;;  %3465 = vst.msk [vmem:[#allocation2 + $0xb0] sm:$0xff] %vm226_vm7, %v3433_v59  ;;  %3466 = vst.msk [vmem:[#allocation2 + $0xb8] sm:$0xff] %vm226_vm7, %v3434_v51  ;;  %v3678_v2 = vmax.f32 %v3614_v28, %v7366_v16  ;;  %v7475_v58 = vld [vmem:[#allocation2 + $0x88] sm:$0xff] }
 0x277   : > { %v3361_v33 = vsel %vm1286_vm6, %v3345_v47, -inf  ;;  %v3377_v1 = vsel %vm1286_vm6, %v3329_v42, %v3345_v47  ;;  %v3552_v29 = vmax.f32 %v7229_v56, %v7348_v26  ;;  %v3243_v11 = vmax.f32 %v2725_v48, %v3211_v57  ;;  %v7473_v56 = vld [vmem:[#allocation2 + $0x80] sm:$0xff]  ;;  %v7487_v47 = vld [vmem:[#allocation2 + $0xf0] sm:$0xff] }
 0x278   : > { %v3244_v9 = vmax.f32 %v2726_v46, %v3212_v44  ;;  %v3403_v3 = vmax.f32 %v3313_v6, %v3377_v1  ;;  %v3404_v25 = vmax.f32 %v3297_v37, %v3361_v33  ;;  %v3741_v45 = vmax.f32 %v3677_v61, %v7449_v5  ;;  %v7500_v37 = vld [vmem:[#allocation2 + $0xf8] sm:$0xff] }
 0x279   : > { %v3742_v8 = vmax.f32 %v3678_v2, %v7451_v43  ;;  %v3615_v17 = vmax.f32 %v3551_v40, %v7364_v15  ;;  %v3616_v28 = vmax.f32 %v3552_v29, %v7366_v16  ;;  %v2535_v48 = vmax.f32 %v7260_v12, %v7275_v18  ;;  %v7510_v29 = vld [vmem:[#allocation2 + $0x100] sm:$0xff] }
 0x27a   : > { %v3435_v59 = vmax.f32 %v3243_v11, %v3403_v3  ;;  %v3436_v51 = vmax.f32 %v3244_v9, %v3404_v25  ;;  %v2536_v46 = vmax.f32 %v7264_v23, %v7301_v4  ;;  %v2537_v40 = vmax.f32 %v7275_v18, %v7380_v50  ;;  %v7495_v57 = vpop.f32.mrb[32].mxu1 }
 0x27b   : > { %v3802_v42 = vpack.c.bf16 %v3742_v8, %v3741_v45  ;;  %v3679_v22 = vmax.f32 %v3615_v17, %v7449_v5  ;;  %v3680_v35 = vmax.f32 %v3616_v28, %v7451_v43  ;;  %v2599_v60 = vmax.f32 %v2535_v48, %v7380_v50  ;;  %v7505_v33 = vpop.f32.mrb[33].mxu1  ;;  %v7531_v48 = vld [vmem:[#allocation2 + $0x108] sm:$0xff]  ;;  %979 = vst.msk [vmem:[#allocation3 + $0x90] sm:$0xff] %vm960_vm8, %v7495_v57 }
 0x27c   : > { %v2600_v6 = vmax.f32 %v2536_v46, %v7394_v19  ;;  %v2538_v12 = vmax.f32 %v7301_v4, %v7394_v19  ;;  %3467 = vst.msk [vmem:[#allocation2 + $0xc0] sm:$0xff] %vm226_vm7, %v3435_v59  ;;  %3468 = vst.msk [vmem:[#allocation2 + $0xc8] sm:$0xff] %vm226_vm7, %v3436_v51  ;;  %v3553_v23 = vmax.f32 %v7342_v49, %v7364_v15  ;;  %v7515_v9 = vpop.f32.mrb[34].mxu1 }
 0x27d   : > { %4865 = vmatmul.mubr.msk.bf16.gmra.mrb[52].mxu0 %vm226_vm7, %v3802_v42  ;;  %v3743_v18 = vmax.f32 %v3679_v22, %v7473_v56  ;;  %v3744_v44 = vmax.f32 %v3680_v35, %v7475_v58  ;;  %v2601_v61 = vmax.f32 %v2537_v40, %v7405_v53  ;;  %v3554_v4 = vmax.f32 %v7348_v26, %v7366_v16  ;;  %v7523_v8 = vpop.f32.mrb[35].mxu1 }
 0x27e   : > { %v2663_v1 = vmax.f32 %v2599_v60, %v7405_v53  ;;  %v2664_v49 = vmax.f32 %v2600_v6, %v7412_v34  ;;  %v2602_v2 = vmax.f32 %v2538_v12, %v7412_v34  ;;  %v7513_v11 = vmax.f32 %v3553_v23, %v7449_v5  ;;  %8401 = vst [vmem:[#allocation17_spill] sm:$0xff] %v7523_v8 }
 0x27f   : > { %v3803_v3 = vpack.c.bf16 %v3744_v44, %v3743_v18  ;;  %v2665_v25 = vmax.f32 %v2601_v61, %v7487_v47  ;;  %v7519_v26 = vmax.f32 %v3554_v4, %v7451_v43  ;;  %v3555_v45 = vmax.f32 %v7364_v15, %v7449_v5  ;;  %977 = vst.msk [vmem:[#allocation3 + $0x80] sm:$0xff] %vm960_vm8, %v7505_v33 }
 0x280   : > { %v2727_v17 = vmax.f32 %v2663_v1, %v7487_v47  ;;  %v2728_v28 = vmax.f32 %v2664_v49, %v7500_v37  ;;  %v2666_v59 = vmax.f32 %v2602_v2, %v7500_v37  ;;  %v3681_v51 = vmax.f32 %v7513_v11, %v7473_v56  ;;  %980 = vst.msk [vmem:[#allocation3 + $0x98] sm:$0xff] %vm960_vm8, %v7515_v9 }
 0x281   : > { %4868 = vmatprep.mubr.msk.bf16.mxu0 %vm226_vm7, %v3803_v3  ;;  %v7534_v46 = vmax.f32 %v2665_v25, %v7510_v29  ;;  %v3682_v15 = vmax.f32 %v7519_v26, %v7475_v58  ;;  %v3556_v42 = vmax.f32 %v7366_v16, %v7451_v43  ;;  %v7541_v22 = vmax.f32 %v3555_v45, %v7473_v56 }
 0x282   : > { %v2780_v35 = vpack.c.bf16 %v2728_v28, %v2727_v17  ;;  %v3074_v40 = vrot.slane %v2727_v17, 7  ;;  %v3090_v60 = vrot.slane %v2728_v28, 7  ;;  %v3138_v6 = vrot.slane %v2727_v17, 1  ;;  %v7549_v49 = vpop.f32.mrb[36].mxu1 }
 0x283   : > { %v3154_v12 = vrot.slane %v2728_v28, 1  ;;  %v3266_v23 = vrot.slane %v2727_v17, 6  ;;  %v3282_v18 = vrot.slane %v2728_v28, 6  ;;  %v3330_v44 = vrot.slane %v2727_v17, 2  ;;  %8402 = vst [vmem:[#allocation12_spill] sm:$0xff] %v7549_v49  ;;  %v7559_v26 = vpop.f32.mrb[20].mxu0 }
 0x284   : > { %4847 = vmatmul.mubr.msk.bf16.gmra.mrb[68].mxu1 %vm226_vm7, %v2780_v35  ;;  %v3106_v61 = vsel %vm1027_vm3, %v3074_v40, %v3090_v60  ;;  %v3122_v4 = vsel %vm1027_vm3, -inf, %v3074_v40  ;;  %v3346_v16 = vrot.slane %v2728_v28, 2  ;;  %v2730_v1 = vmax.f32 %v2666_v59, %v7531_v48  ;;  %8403 = vst [vmem:[#allocation18_spill] sm:$0xff] %v7559_v26  ;;  %v7561_v45 = vpop.f32.mrb[37].mxu1  ;;  %v7567_v39 = vpop.f32.mrb[21].mxu0 }
 0x285   : > { %v3170_v2 = vsel %vm1092_vm5, %v3154_v12, -inf  ;;  %v3186_v11 = vsel %vm1092_vm5, %v3138_v6, %v3154_v12  ;;  %v3298_v3 = vsel %vm1221_vm4, %v3266_v23, %v3282_v18  ;;  %v3314_v25 = vsel %vm1221_vm4, -inf, %v3266_v23  ;;  %8404 = vst [vmem:[#allocation19_spill] sm:$0xff] %v7561_v45  ;;  %8405 = vst [vmem:[#allocation20_spill] sm:$0xff] %v7567_v39  ;;  %v7569_v6 = vpop.f32.mrb[38].mxu1  ;;  %v7573_v21 = vpop.f32.mrb[22].mxu0 }
 0x286   : > { %v3213_v35 = vmax.f32 %v3122_v4, %v3186_v11  ;;  %v3214_v59 = vmax.f32 %v3106_v61, %v3170_v2  ;;  %v3362_v40 = vsel %vm1286_vm6, %v3346_v16, -inf  ;;  %v3378_v60 = vsel %vm1286_vm6, %v3330_v44, %v3346_v16  ;;  %8406 = vst [vmem:[#allocation21_spill] sm:$0xff] %v7569_v6  ;;  %8407 = vst [vmem:[#allocation22_spill] sm:$0xff] %v7573_v21  ;;  %v7575_v4 = vpop.f32.mrb[39].mxu1  ;;  %v7578_v44 = vpop.f32.mrb[23].mxu0  ;;  %v8422_v27 = vld [vmem:[#allocation17_spill] sm:$0xff] }
 0x287   : > { %v3405_v12 = vmax.f32 %v3314_v25, %v3378_v60  ;;  %v3406_v18 = vmax.f32 %v3298_v3, %v3362_v40  ;;  %v2781_v23 = vpack.c.bf16 %v2730_v1, %v7534_v46  ;;  %v3075_v26 = vrot.slane %v7534_v46, 7  ;;  %8408 = vst [vmem:[#allocation10_spill] sm:$0xff] %v7575_v4  ;;  %8409 = vst [vmem:[#allocation16_spill] sm:$0xff] %v7578_v44  ;;  %v7584_v60 = vld [vmem:[#allocation2 + $0x90] sm:$0xff] }
 0x288   : > { %v3245_v61 = vmax.f32 %v2727_v17, %v3213_v35  ;;  %v3246_v2 = vmax.f32 %v2728_v28, %v3214_v59  ;;  %v3091_v11 = vrot.slane %v2730_v1, 7  ;;  %v3139_v62 = vrot.slane %v7534_v46, 1  ;;  %v7589_v35 = vld [vmem:[#allocation2 + $0x98] sm:$0xff]  ;;  %978 = vst.msk [vmem:[#allocation3 + $0x88] sm:$0xff] %vm960_vm8, %v8422_v27 }
 0x289   : > { %4850 = vmatprep.mubr.msk.bf16.mxu1 %vm226_vm7, %v2781_v23  ;;  %v3123_v16 = vsel %vm1027_vm3, -inf, %v3075_v26  ;;  %v3155_v3 = vrot.slane %v2730_v1, 1  ;;  %v3267_v25 = vrot.slane %v7534_v46, 6  ;;  %v3283_v40 = vrot.slane %v2730_v1, 6 }
 0x28a   : > { %v3437_v21 = vmax.f32 %v3245_v61, %v3405_v12  ;;  %v3438_v39 = vmax.f32 %v3246_v2, %v3406_v18  ;;  %v3107_v17 = vsel %vm1027_vm3, %v3075_v26, %v3091_v11  ;;  %v3331_v28 = vrot.slane %v7534_v46, 2  ;;  %v8423_v38 = vld [vmem:[#allocation12_spill] sm:$0xff] }
 0x28b   : > { %v3171_v59 = vsel %vm1092_vm5, %v3155_v3, -inf  ;;  %v3187_v23 = vsel %vm1092_vm5, %v3139_v62, %v3155_v3  ;;  %v3299_v44 = vsel %vm1221_vm4, %v3267_v25, %v3283_v40  ;;  %v3315_v12 = vsel %vm1221_vm4, -inf, %v3267_v25  ;;  %v7606_v3 = vld [vmem:[#allocation2 + $0xa0] sm:$0xff]  ;;  %983 = vst.msk [vmem:[#allocation3 + $0xb0] sm:$0xff] %vm960_vm8, %v8423_v38 }
 0x28c   : > { %v3215_v18 = vmax.f32 %v3123_v16, %v3187_v23  ;;  %v3216_v61 = vmax.f32 %v3107_v17, %v3171_v59  ;;  %v3347_v2 = vrot.slane %v2730_v1, 2  ;;  %v3745_v26 = vmax.f32 %v3681_v51, %v7584_v60  ;;  %3469 = vst.msk [vmem:[#allocation2 + $0xd0] sm:$0xff] %vm226_vm7, %v3437_v21  ;;  %3470 = vst.msk [vmem:[#allocation2 + $0xd8] sm:$0xff] %vm226_vm7, %v3438_v39  ;;  %v7615_v51 = vld [vmem:[#allocation2 + $0xa8] sm:$0xff]  ;;  %v8424_v24 = vld [vmem:[#allocation19_spill] sm:$0xff] }
 0x28d   : > { %v3746_v11 = vmax.f32 %v3682_v15, %v7589_v35  ;;  %v3620_v14 = vmax.f32 %v3556_v42, %v7475_v58  ;;  %v3683_v62 = vmax.f32 %v7541_v22, %v7584_v60  ;;  %v2539_v16 = vmax.f32 %v7380_v50, %v7405_v53  ;;  %981 = vst.msk [vmem:[#allocation3 + $0xa0] sm:$0xff] %vm960_vm8, %v8424_v24  ;;  %v8425_v32 = vld [vmem:[#allocation21_spill] sm:$0xff]  ;;  %v1721_v24 = vld [vmem:[#allocation3 + $0x70] sm:$0xff] }
 0x28e   : > { %v3247_v25 = vmax.f32 %v7534_v46, %v3215_v18  ;;  %v3248_v40 = vmax.f32 %v2730_v1, %v3216_v61  ;;  %v3363_v21 = vsel %vm1286_vm6, %v3347_v2, -inf  ;;  %v3379_v39 = vsel %vm1286_vm6, %v3331_v28, %v3347_v2  ;;  %v7634_v2 = vld [vmem:[#allocation2 + $0x118] sm:$0xff]  ;;  %984 = vst.msk [vmem:[#allocation3 + $0xb8] sm:$0xff] %vm960_vm8, %v8425_v32  ;;  %v8426_v0 = vld [vmem:[#allocation10_spill] sm:$0xff]  ;;  %v1719_v32 = vld [vmem:[#allocation3 + $0x60] sm:$0xff] }
 0x28f   : > { %v3407_v15 = vmax.f32 %v3315_v12, %v3379_v39  ;;  %v3408_v42 = vmax.f32 %v3299_v44, %v3363_v21  ;;  %v3804_v17 = vpack.c.bf16 %v3746_v11, %v3745_v26  ;;  %v3684_v22 = vmax.f32 %v3620_v14, %v7589_v35  ;;  %v7626_v44 = vld [vmem:[#allocation2 + $0x110] sm:$0xff]  ;;  %982 = vst.msk [vmem:[#allocation3 + $0xa8] sm:$0xff] %vm960_vm8, %v8426_v0  ;;  %v1722_v0 = vld [vmem:[#allocation3 + $0x78] sm:$0xff] }
 0x290   : > { %v3747_v59 = vmax.f32 %v3683_v62, %v7606_v3  ;;  %v2540_v50 = vmax.f32 %v7394_v19, %v7412_v34  ;;  %v2603_v46 = vmax.f32 %v2539_v16, %v7487_v47  ;;  %v2541_v1 = vmax.f32 %v7405_v53, %v7487_v47  ;;  %v7630_v12 = vpop.f32.mrb[24].mxu0 }
 0x291   : > { %v3439_v23 = vmax.f32 %v3247_v25, %v3407_v15  ;;  %v3440_v18 = vmax.f32 %v3248_v40, %v3408_v42  ;;  %4869 = vmatmul.mubr.msk.bf16.gmra.mrb[56].mxu0 %vm226_vm7, %v3804_v17  ;;  %v3748_v28 = vmax.f32 %v3684_v22, %v7615_v51  ;;  %v2542_v14 = vmax.f32 %v7412_v34, %v7500_v37  ;;  %v7639_v11 = vpop.f32.mrb[25].mxu0  ;;  %v7653_v15 = vld [vmem:[#allocation2 + $0x120] sm:$0xff]  ;;  %v7655_v42 = vld [vmem:[#allocation2 + $0x128] sm:$0xff] }
 0x292   : > { %8410 = vst [vmem:[#allocation14_spill] sm:$0xff] %v7630_v12  ;;  %v2604_v19 = vmax.f32 %v2540_v50, %v7500_v37  ;;  %v2667_v61 = vmax.f32 %v2603_v46, %v7510_v29  ;;  %v2605_v53 = vmax.f32 %v2541_v1, %v7510_v29  ;;  %v3557_v26 = vmax.f32 %v7449_v5, %v7473_v56  ;;  %v7648_v40 = vpop.f32.mrb[26].mxu0 }
 0x293   : > { %8411 = vst [vmem:[#allocation23_spill] sm:$0xff] %v7639_v11  ;;  %v3805_v62 = vpack.c.bf16 %v3748_v28, %v3747_v59  ;;  %v2606_v16 = vmax.f32 %v2542_v14, %v7531_v48  ;;  %3471 = vst.msk [vmem:[#allocation2 + $0xe0] sm:$0xff] %vm226_vm7, %v3439_v23  ;;  %v3558_v34 = vmax.f32 %v7451_v43, %v7475_v58  ;;  %v7660_v22 = vpop.f32.mrb[27].mxu0 }
 0x294   : > { %3472 = vst.msk [vmem:[#allocation2 + $0xe8] sm:$0xff] %vm226_vm7, %v3440_v18  ;;  %v3559_v25 = vmax.f32 %v7473_v56, %v7584_v60  ;;  %8412 = vst [vmem:[#allocation6_spill] sm:$0xff] %v7648_v40  ;;  %v2668_v21 = vmax.f32 %v2604_v19, %v7531_v48  ;;  %v2731_v5 = vmax.f32 %v2667_v61, %v7626_v44 }
 0x295   : > { %v2669_v39 = vmax.f32 %v2605_v53, %v7626_v44  ;;  %v7658_v17 = vmax.f32 %v3557_v26, %v7584_v60  ;;  %8413 = vst [vmem:[#allocation15_spill] sm:$0xff] %v7660_v22  ;;  %4872 = vmatprep.mubr.msk.bf16.mxu0 %vm226_vm7, %v3805_v62  ;;  %v2670_v43 = vmax.f32 %v2606_v16, %v7634_v2 }
 0x296   : > { %v7665_v56 = vmax.f32 %v3558_v34, %v7589_v35  ;;  %v7670_v50 = vmax.f32 %v3559_v25, %v7606_v3  ;;  %v2732_v46 = vmax.f32 %v2668_v21, %v7634_v2  ;;  %v3076_v1 = vrot.slane %v2731_v5, 7  ;;  %v7677_v53 = vpop.f32.mrb[40].mxu1 }
 0x297   : > { %v3140_v23 = vrot.slane %v2731_v5, 1  ;;  %v3268_v18 = vrot.slane %v2731_v5, 6  ;;  %v3332_v28 = vrot.slane %v2731_v5, 2  ;;  %v2733_v14 = vmax.f32 %v2669_v39, %v7653_v15  ;;  %8414 = vst [vmem:[#allocation13_spill] sm:$0xff] %v7677_v53  ;;  %v7681_v25 = vpop.f32.mrb[41].mxu1 }
 0x298   : > { %v2734_v19 = vmax.f32 %v2670_v43, %v7655_v42  ;;  %v3685_v61 = vmax.f32 %v7658_v17, %v7606_v3  ;;  %v2782_v26 = vpack.c.bf16 %v2732_v46, %v2731_v5  ;;  %v3092_v62 = vrot.slane %v2732_v46, 7  ;;  %8415 = vst [vmem:[#allocation11_spill] sm:$0xff] %v7681_v25  ;;  %v7685_v43 = vpop.f32.mrb[42].mxu1 }
 0x299   : > { %v3124_v16 = vsel %vm1027_vm3, -inf, %v3076_v1  ;;  %v3156_v34 = vrot.slane %v2732_v46, 1  ;;  %v3284_v21 = vrot.slane %v2732_v46, 6  ;;  %v3316_v59 = vsel %vm1221_vm4, -inf, %v3268_v18  ;;  %8416 = vst [vmem:[#allocation4_spill] sm:$0xff] %v7685_v43  ;;  %v7694_v25 = vpop.f32.mrb[43].mxu1 }
 0x29a   : > { %v3348_v39 = vrot.slane %v2732_v46, 2  ;;  %v2783_v22 = vpack.c.bf16 %v2734_v19, %v2733_v14  ;;  %4851 = vmatmul.mubr.msk.bf16.gmra.mrb[72].mxu1 %vm226_vm7, %v2782_v26  ;;  %v3108_v17 = vsel %vm1027_vm3, %v3076_v1, %v3092_v62  ;;  %v3077_v12 = vrot.slane %v2733_v14, 7  ;;  %8417 = vst [vmem:[#allocation24_spill] sm:$0xff] %v7694_v25 }
 0x29b   : > { %v3172_v40 = vsel %vm1092_vm5, %v3156_v34, -inf  ;;  %v3188_v11 = vsel %vm1092_vm5, %v3140_v23, %v3156_v34  ;;  %v3300_v6 = vsel %vm1221_vm4, %v3268_v18, %v3284_v21  ;;  %v3093_v43 = vrot.slane %v2734_v19, 7 }
 0x29c   : > { %v3217_v53 = vmax.f32 %v3124_v16, %v3188_v11  ;;  %v3218_v4 = vmax.f32 %v3108_v17, %v3172_v40  ;;  %v3364_v26 = vsel %vm1286_vm6, %v3348_v39, -inf  ;;  %4854 = vmatprep.mubr.msk.bf16.mxu1 %vm226_vm7, %v2783_v22  ;;  %v3380_v1 = vsel %vm1286_vm6, %v3332_v28, %v3348_v39  ;;  %v8442_v27 = vld [vmem:[#allocation15_spill] sm:$0xff] }
 0x29d   : > { %v3410_v62 = vmax.f32 %v3300_v6, %v3364_v26  ;;  %v3125_v23 = vsel %vm1027_vm3, -inf, %v3077_v12  ;;  %v3409_v11 = vmax.f32 %v3316_v59, %v3380_v1  ;;  %v3141_v40 = vrot.slane %v2733_v14, 1 }
 0x29e   : > { %v3249_v34 = vmax.f32 %v2731_v5, %v3217_v53  ;;  %v3250_v25 = vmax.f32 %v2732_v46, %v3218_v4  ;;  %v3109_v18 = vsel %vm1027_vm3, %v3077_v12, %v3093_v43  ;;  %v3157_v16 = vrot.slane %v2734_v19, 1  ;;  %v7707_v28 = vpop.f32.mrb[44].mxu1  ;;  %v3717_v43 = vld [vmem:[#allocation2 + $0xb0] sm:$0xff]  ;;  %v8427_v54 = vld [vmem:[#allocation13_spill] sm:$0xff] }
 0x29f   : > { %v3269_v21 = vrot.slane %v2733_v14, 6  ;;  %v3285_v17 = vrot.slane %v2734_v19, 6  ;;  %v3333_v49 = vrot.slane %v2733_v14, 2  ;;  %v3349_v8 = vrot.slane %v2734_v19, 2  ;;  %v7717_v59 = vpop.f32.mrb[45].mxu1  ;;  %987 = vst.msk [vmem:[#allocation3 + $0xd0] sm:$0xff] %vm960_vm8, %v8427_v54 }
 0x2a0   : > { %v3441_v45 = vmax.f32 %v3249_v34, %v3409_v11  ;;  %v3442_v22 = vmax.f32 %v3250_v25, %v3410_v62  ;;  %v3173_v6 = vsel %vm1092_vm5, %v3157_v16, -inf  ;;  %v3189_v4 = vsel %vm1092_vm5, %v3141_v40, %v3157_v16  ;;  %v7725_v26 = vpop.f32.mrb[46].mxu1  ;;  %v7731_v16 = vld [vmem:[#allocation2 + $0xb8] sm:$0xff]  ;;  %v8429_v63 = vld [vmem:[#allocation4_spill] sm:$0xff]  ;;  %991 = vst.msk [vmem:[#allocation3 + $0xf0] sm:$0xff] %vm960_vm8, %v7707_v28  ;;  %989 = vst.msk [vmem:[#allocation3 + $0xe0] sm:$0xff] %vm960_vm8, %v7717_v59 }
 0x2a1   : > { %v3301_v5 = vsel %vm1221_vm4, %v3269_v21, %v3285_v17  ;;  %v3317_v12 = vsel %vm1221_vm4, -inf, %v3269_v21  ;;  %v3219_v46 = vmax.f32 %v3125_v23, %v3189_v4  ;;  %v3220_v53 = vmax.f32 %v3109_v18, %v3173_v6  ;;  %v7729_v11 = vpop.f32.mrb[47].mxu1  ;;  %v7739_v17 = vld [vmem:[#allocation2 + $0xc0] sm:$0xff]  ;;  %v7749_v4 = vld [vmem:[#allocation2 + $0xc8] sm:$0xff]  ;;  %v8428_v20 = vld [vmem:[#allocation11_spill] sm:$0xff]  ;;  %988 = vst.msk [vmem:[#allocation3 + $0xd8] sm:$0xff] %vm960_vm8, %v8429_v63 }
 0x2a2   : > { %v3365_v25 = vsel %vm1286_vm6, %v3349_v8, -inf  ;;  %v3381_v39 = vsel %vm1286_vm6, %v3333_v49, %v3349_v8  ;;  %3473 = vst.msk [vmem:[#allocation2 + $0xf0] sm:$0xff] %vm226_vm7, %v3441_v45  ;;  %3474 = vst.msk [vmem:[#allocation2 + $0xf8] sm:$0xff] %vm226_vm7, %v3442_v22  ;;  %v3686_v34 = vmax.f32 %v7665_v56, %v7615_v51  ;;  %v3749_v23 = vmax.f32 %v3685_v61, %v3717_v43  ;;  %v8430_v41 = vld [vmem:[#allocation24_spill] sm:$0xff] }
 0x2a3   : > { %v3411_v1 = vmax.f32 %v3317_v12, %v3381_v39  ;;  %v3412_v62 = vmax.f32 %v3301_v5, %v3365_v25  ;;  %v3251_v40 = vmax.f32 %v2733_v14, %v3219_v46  ;;  %v3252_v18 = vmax.f32 %v2734_v19, %v3220_v53  ;;  %985 = vst.msk [vmem:[#allocation3 + $0xc0] sm:$0xff] %vm960_vm8, %v8428_v20 }
 0x2a4   : > { %v8418_v8 = vmax.f32 %v7475_v58, %v7589_v35  ;;  %v3687_v45 = vmax.f32 %v7670_v50, %v3717_v43  ;;  %v3750_v21 = vmax.f32 %v3686_v34, %v7731_v16  ;;  %v2543_v56 = vmax.f32 %v7487_v47, %v7510_v29  ;;  %986 = vst.msk [vmem:[#allocation3 + $0xc8] sm:$0xff] %vm960_vm8, %v8430_v41 }
 0x2a5   : > { %v2544_v14 = vmax.f32 %v7500_v37, %v7531_v48  ;;  %v3561_v19 = vmax.f32 %v7584_v60, %v7606_v3  ;;  %v3443_v61 = vmax.f32 %v3251_v40, %v3411_v1  ;;  %v3444_v22 = vmax.f32 %v3252_v18, %v3412_v62  ;;  %v7755_v37 = vpop.f32.mrb[28].mxu0  ;;  %v7758_v48 = vld [vmem:[#allocation2 + $0x130] sm:$0xff]  ;;  %v7760_v60 = vld [vmem:[#allocation2 + $0x138] sm:$0xff]  ;;  %992 = vst.msk [vmem:[#allocation3 + $0xf8] sm:$0xff] %vm960_vm8, %v7725_v26 }
 0x2a6   : > { %v3624_v49 = vmax.f32 %v8418_v8, %v7615_v51  ;;  %v3751_v6 = vmax.f32 %v3687_v45, %v7739_v17  ;;  %v3806_v50 = vpack.c.bf16 %v3750_v21, %v3749_v23  ;;  %v2607_v5 = vmax.f32 %v2543_v56, %v7626_v44  ;;  %v7767_v53 = vpop.f32.mrb[29].mxu0  ;;  %v3721_v45 = vld [vmem:[#allocation2 + $0xd0] sm:$0xff]  ;;  %v7784_v21 = vld [vmem:[#allocation2 + $0xd8] sm:$0xff]  ;;  %990 = vst.msk [vmem:[#allocation3 + $0xe8] sm:$0xff] %vm960_vm8, %v7729_v11 }
 0x2a7   : > { %v2608_v12 = vmax.f32 %v2544_v14, %v7634_v2  ;;  %v3562_v47 = vmax.f32 %v7589_v35, %v7615_v51  ;;  %3475 = vst.msk [vmem:[#allocation2 + $0x100] sm:$0xff] %vm226_vm7, %v3443_v61  ;;  %3476 = vst.msk [vmem:[#allocation2 + $0x108] sm:$0xff] %vm226_vm7, %v3444_v22  ;;  %v3625_v46 = vmax.f32 %v3561_v19, %v3717_v43  ;;  %v7774_v62 = vpop.f32.mrb[30].mxu0 }
 0x2a8   : > { %v3688_v58 = vmax.f32 %v3624_v49, %v7731_v16  ;;  %v3563_v44 = vmax.f32 %v7606_v3, %v3717_v43  ;;  %v3564_v2 = vmax.f32 %v7615_v51, %v7731_v16  ;;  %8419 = vst [vmem:[#allocation25_spill] sm:$0xff] %v7767_v53  ;;  %4873 = vmatmul.mubr.msk.bf16.gmra.mrb[60].mxu0 %vm226_vm7, %v3806_v50  ;;  %8420 = vst [vmem:[#allocation26_spill] sm:$0xff] %v7774_v62  ;;  %v7779_v40 = vpop.f32.mrb[31].mxu0 }
 0x2a9   : > { %v2671_v35 = vmax.f32 %v2607_v5, %v7653_v15  ;;  %v2672_v25 = vmax.f32 %v2608_v12, %v7655_v42  ;;  %v3626_v39 = vmax.f32 %v3562_v47, %v7731_v16  ;;  %v3565_v1 = vmax.f32 %v3717_v43, %v7739_v17  ;;  %8421 = vst [vmem:[#allocation27_spill] sm:$0xff] %v7779_v40  ;;  %v3724_v40 = vld [vmem:[#allocation2 + $0xe8] sm:$0xff] }
 0x2aa   : > { %v3752_v29 = vmax.f32 %v3688_v58, %v7749_v4  ;;  %v3689_v3 = vmax.f32 %v3625_v46, %v7739_v17  ;;  %v3627_v23 = vmax.f32 %v3563_v44, %v7739_v17  ;;  %v3628_v51 = vmax.f32 %v3564_v2, %v7749_v4 }
 0x2ab   : > { %v2735_v18 = vmax.f32 %v2671_v35, %v7758_v48  ;;  %v2736_v8 = vmax.f32 %v2672_v25, %v7760_v60  ;;  %v3690_v49 = vmax.f32 %v3626_v39, %v7749_v4  ;;  %v3566_v43 = vmax.f32 %v7731_v16, %v7749_v4 }
 0x2ac   : > { %v3807_v34 = vpack.c.bf16 %v3752_v29, %v3751_v6  ;;  %v3753_v56 = vmax.f32 %v3689_v3, %v3721_v45  ;;  %v3691_v14 = vmax.f32 %v3627_v23, %v3721_v45  ;;  %v3692_v19 = vmax.f32 %v3628_v51, %v7784_v21 }
 0x2ad   : > { %v3629_v61 = vmax.f32 %v3565_v1, %v3721_v45  ;;  %v2784_v22 = vpack.c.bf16 %v2736_v8, %v2735_v18  ;;  %v3078_v58 = vrot.slane %v2735_v18, 7  ;;  %v3094_v6 = vrot.slane %v2736_v8, 7 }
 0x2ae   : > { %4876 = vmatprep.mubr.msk.bf16.mxu0 %vm226_vm7, %v3807_v34  ;;  %v3142_v50 = vrot.slane %v2735_v18, 1  ;;  %v3158_v5 = vrot.slane %v2736_v8, 1  ;;  %v3270_v12 = vrot.slane %v2735_v18, 6  ;;  %v3286_v47 = vrot.slane %v2736_v8, 6 }
 0x2af   : > { %v3334_v29 = vrot.slane %v2735_v18, 2  ;;  %4855 = vmatmul.mubr.msk.bf16.gmra.mrb[76].mxu1 %vm226_vm7, %v2784_v22  ;;  %v3110_v16 = vsel %vm1027_vm3, %v3078_v58, %v3094_v6  ;;  %v3126_v46 = vsel %vm1027_vm3, -inf, %v3078_v58  ;;  %v3350_v44 = vrot.slane %v2736_v8, 2  ;;  %v8443_v20 = vld [vmem:[#allocation25_spill] sm:$0xff]  ;;  %v8444_v41 = vld [vmem:[#allocation26_spill] sm:$0xff] }
 0x2b0   : > { %v3754_v2 = vmax.f32 %v3690_v49, %v7784_v21  ;;  %v3174_v35 = vsel %vm1092_vm5, %v3158_v5, -inf  ;;  %v3190_v25 = vsel %vm1092_vm5, %v3142_v50, %v3158_v5  ;;  %v3302_v39 = vsel %vm1221_vm4, %v3270_v12, %v3286_v47  ;;  %v3723_v49 = vld [vmem:[#allocation2 + $0xe0] sm:$0xff] }
 0x2b1   : > { %v3318_v1 = vsel %vm1221_vm4, -inf, %v3270_v12  ;;  %v3221_v34 = vmax.f32 %v3126_v46, %v3190_v25  ;;  %v3222_v3 = vmax.f32 %v3110_v16, %v3174_v35  ;;  %v3366_v23 = vsel %vm1286_vm6, %v3350_v44, -inf  ;;  %v7810_v16 = vld [vmem:[#allocation2 + $0xf0] sm:$0xff]  ;;  %v7812_v46 = vld [vmem:[#allocation2 + $0xf8] sm:$0xff]  ;;  %v3727_v25 = vld [vmem:[#allocation2 + $0x100] sm:$0xff] }
 0x2b2   : > { %v3382_v51 = vsel %vm1286_vm6, %v3334_v29, %v3350_v44  ;;  %v3414_v58 = vmax.f32 %v3302_v39, %v3366_v23  ;;  %v3808_v6 = vpack.c.bf16 %v3754_v2, %v3753_v56  ;;  %v3755_v50 = vmax.f32 %v3691_v14, %v3723_v49 }
 0x2b3   : > { %v3413_v22 = vmax.f32 %v3318_v1, %v3382_v51  ;;  %v3253_v5 = vmax.f32 %v2735_v18, %v3221_v34  ;;  %v3254_v62 = vmax.f32 %v2736_v8, %v3222_v3  ;;  %v3756_v47 = vmax.f32 %v3692_v19, %v3724_v40 }
 0x2b4   : > { %v3630_v53 = vmax.f32 %v3566_v43, %v7784_v21  ;;  %4877 = vmatmul.mubr.msk.bf16.gmra.mrb[64].mxu0 %vm226_vm7, %v3808_v6  ;;  %v3693_v12 = vmax.f32 %v3629_v61, %v3723_v49  ;;  %v3567_v55 = vmax.f32 %v7739_v17, %v3721_v45  ;;  %v3568_v29 = vmax.f32 %v7749_v4, %v7784_v21 }
 0x2b5   : > { %v3569_v56 = vmax.f32 %v3721_v45, %v3723_v49  ;;  %v3445_v44 = vmax.f32 %v3253_v5, %v3413_v22  ;;  %v3446_v14 = vmax.f32 %v3254_v62, %v3414_v58  ;;  %v3809_v18 = vpack.c.bf16 %v3756_v47, %v3755_v50 }
 0x2b6   : > { %v3694_v8 = vmax.f32 %v3630_v53, %v3724_v40  ;;  %v3757_v19 = vmax.f32 %v3693_v12, %v7810_v16  ;;  %v3631_v43 = vmax.f32 %v3567_v55, %v3723_v49  ;;  %v3632_v2 = vmax.f32 %v3568_v29, %v3724_v40  ;;  %v1710_v55 = vld [vmem:[#allocation3 + $0x18] sm:$0xff] }
 0x2b7   : > { %v3570_v61 = vmax.f32 %v7784_v21, %v3724_v40  ;;  %3477 = vst.msk [vmem:[#allocation2 + $0x110] sm:$0xff] %vm226_vm7, %v3445_v44  ;;  %3478 = vst.msk [vmem:[#allocation2 + $0x118] sm:$0xff] %vm226_vm7, %v3446_v14  ;;  %4880 = vmatprep.mubr.msk.bf16.mxu0 %vm226_vm7, %v3809_v18  ;;  %v3633_v4 = vmax.f32 %v3569_v56, %v7810_v16  ;;  %v3571_v62 = vmax.f32 %v3723_v49, %v7810_v16  ;;  %v3728_v21 = vld [vmem:[#allocation2 + $0x108] sm:$0xff]  ;;  %v8431_v56 = vld [vmem:[#allocation7_spill] sm:$0xff] }
 0x2b8   : > { %v3758_v17 = vmax.f32 %v3694_v8, %v7812_v46  ;;  %v3572_v53 = vmax.f32 %v3724_v40, %v7812_v46  ;;  %v3695_v45 = vmax.f32 %v3631_v43, %v7810_v16  ;;  %v3696_v35 = vmax.f32 %v3632_v2, %v7812_v46  ;;  %v8432_v14 = vld [vmem:[#allocation8_spill] sm:$0xff]  ;;  %v1708_v8 = vld [vmem:[#allocation3 + $0x8] sm:$0xff] }
 0x2b9   : > { %v3634_v39 = vmax.f32 %v3570_v61, %v7812_v46  ;;  %v3697_v23 = vmax.f32 %v3633_v4, %v3727_v25  ;;  %v3635_v22 = vmax.f32 %v3571_v62, %v3727_v25  ;;  %v3573_v40 = vmax.f32 %v7810_v16, %v3727_v25  ;;  %v1709_v16 = vld [vmem:[#allocation3 + $0x10] sm:$0xff]  ;;  %v1711_v43 = vld [vmem:[#allocation3 + $0x20] sm:$0xff] }
 0x2ba   : > { %v3810_v1 = vpack.c.bf16 %v3758_v17, %v3757_v19  ;;  %v3759_v34 = vmax.f32 %v3695_v45, %v3727_v25  ;;  %v3760_v3 = vmax.f32 %v3696_v35, %v3728_v21  ;;  %v3636_v58 = vmax.f32 %v3572_v53, %v3728_v21  ;;  %v1713_v19 = vld [vmem:[#allocation3 + $0x30] sm:$0xff]  ;;  %v8436_v62 = vld [vmem:[#allocation20_spill] sm:$0xff]  ;;  %v1714_v45 = vld [vmem:[#allocation3 + $0x38] sm:$0xff] }
 0x2bb   : > { %v3698_v51 = vmax.f32 %v3634_v39, %v3728_v21  ;;  %v3574_v6 = vmax.f32 %v7812_v46, %v3728_v21  ;;  %v7896_v13 = vpop.f32.mrb[32].mxu0  ;;  %v1707_v46 = vld [vmem:[#allocation3] sm:$0xff]  ;;  %v1971_v44 = vadd.f32 %v8431_v56, %v1709_v16  ;;  %v8435_v17 = vld [vmem:[#allocation18_spill] sm:$0xff]  ;;  %v1973_v53 = vadd.f32 %v8436_v62, %v1711_v43  ;;  %v1712_v35 = vld [vmem:[#allocation3 + $0x28] sm:$0xff] }
 0x2bc   : > { %4881 = vmatmul.mubr.msk.bf16.gmra.mrb[68].mxu0 %vm226_vm7, %v3810_v1  ;;  %v3811_v49 = vpack.c.bf16 %v3760_v3, %v3759_v34  ;;  %v7899_v36 = vpop.f32.mrb[33].mxu0  ;;  %v1969_v18 = vadd.f32 %v8432_v14, %v1707_v46  ;;  %v1975_v4 = vadd.f32 %v8435_v17, %v1713_v19  ;;  %v8437_v21 = vld [vmem:[#allocation22_spill] sm:$0xff]  ;;  %v8438_v1 = vld [vmem:[#allocation16_spill] sm:$0xff]  ;;  %v1983_v54 = vadd.f32 %v7755_v37, %v1721_v24  ;;  %v1726_v37 = vld [vmem:[#allocation3 + $0x98] sm:$0xff] }
 0x2bd   : > { %v7901_v33 = vpop.f32.mrb[34].mxu0  ;;  %2003 = vst.msk [vmem:[#allocation3 + $0x10] sm:$0xff] %vm960_vm8, %v1971_v44  ;;  %v1976_v39 = vadd.f32 %v8437_v21, %v1714_v45  ;;  %v1974_v34 = vadd.f32 %v8438_v1, %v1712_v35  ;;  %v8439_v3 = vld [vmem:[#allocation14_spill] sm:$0xff]  ;;  %2005 = vst.msk [vmem:[#allocation3 + $0x20] sm:$0xff] %vm960_vm8, %v1973_v53  ;;  %v1981_v63 = vadd.f32 %v8443_v20, %v1719_v32  ;;  %v1727_v19 = vld [vmem:[#allocation3 + $0xa0] sm:$0xff] }
 0x2be   : > { %4884 = vmatprep.mubr.msk.bf16.mxu0 %vm226_vm7, %v3811_v49  ;;  %v3729_v52 = vld [vmem:[#allocation2 + $0x110] sm:$0xff]  ;;  %v3730_v30 = vld [vmem:[#allocation2 + $0x118] sm:$0xff]  ;;  %v7903_v59 = vpop.f32.mrb[35].mxu0  ;;  %2001 = vst.msk [vmem:[#allocation3] sm:$0xff] %vm960_vm8, %v1969_v18  ;;  %2007 = vst.msk [vmem:[#allocation3 + $0x30] sm:$0xff] %vm960_vm8, %v1975_v4 }
 0x2bf   : > { %v3761_v10 = vmax.f32 %v3697_v23, %v3729_v52  ;;  %v3762_v31 = vmax.f32 %v3698_v51, %v3730_v30  ;;  %v3699_v7 = vmax.f32 %v3635_v22, %v3729_v52  ;;  %v3700_v57 = vmax.f32 %v3636_v58, %v3730_v30  ;;  %v1715_v51 = vld [vmem:[#allocation3 + $0x40] sm:$0xff]  ;;  %v1718_v22 = vld [vmem:[#allocation3 + $0x58] sm:$0xff]  ;;  %v1716_v58 = vld [vmem:[#allocation3 + $0x48] sm:$0xff]  ;;  %2008 = vst.msk [vmem:[#allocation3 + $0x38] sm:$0xff] %vm960_vm8, %v1976_v39 }
 0x2c0   : > { %v3637_v9 = vmax.f32 %v3573_v40, %v3729_v52  ;;  %v3638_v28 = vmax.f32 %v3574_v6, %v3730_v30  ;;  %v8441_v40 = vld [vmem:[#allocation6_spill] sm:$0xff]  ;;  %v1978_v38 = vadd.f32 %v8442_v27, %v1716_v58  ;;  %2006 = vst.msk [vmem:[#allocation3 + $0x28] sm:$0xff] %vm960_vm8, %v1974_v34  ;;  %v1984_v52 = vadd.f32 %v8444_v41, %v1722_v0  ;;  %v1720_v30 = vld [vmem:[#allocation3 + $0x68] sm:$0xff]  ;;  %v1734_v27 = vld [vmem:[#allocation3 + $0xd8] sm:$0xff] }
 0x2c1   : > { %v3763_v26 = vmax.f32 %v3699_v7, %v7653_v15  ;;  %v3764_v11 = vmax.f32 %v3700_v57, %v7655_v42  ;;  %v3812_v50 = vpack.c.bf16 %v3762_v31, %v3761_v10  ;;  %v1980_v6 = vadd.f32 %v8441_v40, %v1718_v22  ;;  %v1725_v10 = vld [vmem:[#allocation3 + $0x90] sm:$0xff]  ;;  %v1723_v31 = vld [vmem:[#allocation3 + $0x80] sm:$0xff]  ;;  %v8445_v7 = vld [vmem:[#allocation27_spill] sm:$0xff]  ;;  %2015 = vst.msk [vmem:[#allocation3 + $0x70] sm:$0xff] %vm960_vm8, %v1983_v54 }
 0x2c2   : > { %v3701_v5 = vmax.f32 %v3637_v9, %v7653_v15  ;;  %v3702_v47 = vmax.f32 %v3638_v28, %v7655_v42  ;;  %v8433_v15 = vld [vmem:[#allocation9_spill] sm:$0xff]  ;;  %2010 = vst.msk [vmem:[#allocation3 + $0x48] sm:$0xff] %vm960_vm8, %v1978_v38  ;;  %v1982_v57 = vadd.f32 %v8445_v7, %v1720_v30  ;;  %v1987_v9 = vadd.f32 %v7896_v13, %v1725_v10  ;;  %v1729_v14 = vld [vmem:[#allocation3 + $0xb0] sm:$0xff] }
 0x2c3   : > { %v3813_v12 = vpack.c.bf16 %v3764_v11, %v3763_v26  ;;  %v1972_v2 = vadd.f32 %v8433_v15, %v1710_v55  ;;  %v8434_v42 = vld [vmem:[#allocation5_spill] sm:$0xff]  ;;  %2012 = vst.msk [vmem:[#allocation3 + $0x58] sm:$0xff] %vm960_vm8, %v1980_v6  ;;  %v1985_v28 = vadd.f32 %v7899_v36, %v1723_v31  ;;  %2013 = vst.msk [vmem:[#allocation3 + $0x60] sm:$0xff] %vm960_vm8, %v1981_v63  ;;  %v1733_v22 = vld [vmem:[#allocation3 + $0xd0] sm:$0xff] }
 0x2c4   : > { %4885 = vmatmul.mubr.msk.bf16.gmra.mrb[72].mxu0 %vm226_vm7, %v3812_v50  ;;  %v3765_v29 = vmax.f32 %v3701_v5, %v7758_v48  ;;  %v1970_v61 = vadd.f32 %v8434_v42, %v1708_v8  ;;  %v1717_v48 = vld [vmem:[#allocation3 + $0x50] sm:$0xff]  ;;  %v3766_v25 = vmax.f32 %v3702_v47, %v7760_v60  ;;  %v8440_v60 = vld [vmem:[#allocation23_spill] sm:$0xff]  ;;  %v1724_v26 = vld [vmem:[#allocation3 + $0x88] sm:$0xff]  ;;  %2016 = vst.msk [vmem:[#allocation3 + $0x78] sm:$0xff] %vm960_vm8, %v1984_v52 }
 0x2c5   : > { %4888 = vmatprep.mubr.msk.bf16.mxu0 %vm226_vm7, %v3813_v12  ;;  %v1979_v23 = vadd.f32 %v8439_v3, %v1717_v48  ;;  %2004 = vst.msk [vmem:[#allocation3 + $0x18] sm:$0xff] %vm960_vm8, %v1972_v2  ;;  %v1977_v49 = vadd.f32 %v8440_v60, %v1715_v51  ;;  %v1988_v50 = vadd.f32 %v7901_v33, %v1726_v37  ;;  %2014 = vst.msk [vmem:[#allocation3 + $0x68] sm:$0xff] %vm960_vm8, %v1982_v57  ;;  %v2739_v13 = vld [vmem:[#allocation3 + $0x10] sm:$0xff]  ;;  %v2737_v12 = vld [vmem:[#allocation3] sm:$0xff] }
 0x2c6   : > { %2002 = vst.msk [vmem:[#allocation3 + $0x8] sm:$0xff] %vm960_vm8, %v1970_v61  ;;  %v3814_v11 = vpack.c.bf16 %v3766_v25, %v3765_v29  ;;  %v1986_v5 = vadd.f32 %v7903_v59, %v1724_v26  ;;  %2019 = vst.msk [vmem:[#allocation3 + $0x90] sm:$0xff] %vm960_vm8, %v1987_v9  ;;  %v1730_v2 = vld [vmem:[#allocation3 + $0xb8] sm:$0xff]  ;;  %v1728_v17 = vld [vmem:[#allocation3 + $0xa8] sm:$0xff] }
 0x2c7   : > { %2011 = vst.msk [vmem:[#allocation3 + $0x50] sm:$0xff] %vm960_vm8, %v1979_v23  ;;  %2009 = vst.msk [vmem:[#allocation3 + $0x40] sm:$0xff] %vm960_vm8, %v1977_v49  ;;  %v2743_v53 = vld [vmem:[#allocation3 + $0x30] sm:$0xff]  ;;  %v2741_v48 = vld [vmem:[#allocation3 + $0x20] sm:$0xff] }
 0x2c8   : > { %2017 = vst.msk [vmem:[#allocation3 + $0x80] sm:$0xff] %vm960_vm8, %v1985_v28  ;;  %2020 = vst.msk [vmem:[#allocation3 + $0x98] sm:$0xff] %vm960_vm8, %v1988_v50  ;;  %v2744_v39 = vld [vmem:[#allocation3 + $0x38] sm:$0xff]  ;;  %v2742_v3 = vld [vmem:[#allocation3 + $0x28] sm:$0xff] }
 0x2c9   : > { %2018 = vst.msk [vmem:[#allocation3 + $0x88] sm:$0xff] %vm960_vm8, %v1986_v5  ;;  %v1731_v49 = vld [vmem:[#allocation3 + $0xc0] sm:$0xff]  ;;  %v1732_v32 = vld [vmem:[#allocation3 + $0xc8] sm:$0xff]  ;;  %v1737_v26 = vld [vmem:[#allocation3 + $0xf0] sm:$0xff] }
 0x2ca   : > { %v2748_v31 = vld [vmem:[#allocation3 + $0x58] sm:$0xff]  ;;  %v2746_v9 = vld [vmem:[#allocation3 + $0x48] sm:$0xff]  ;;  %v1735_v5 = vld [vmem:[#allocation3 + $0xe0] sm:$0xff] }
 0x2cc   : > { %4889 = vmatmul.mubr.msk.bf16.gmra.mrb[76].mxu0 %vm226_vm7, %v3814_v11  ;;  %v4828_v36 = vpop.f32.mrb[48].mxu1  ;;  %v2740_v46 = vld [vmem:[#allocation3 + $0x18] sm:$0xff] }
 0x2cd   : > { %v3001_v47 = vadd.f32 %v4828_v36, %v2739_v13  ;;  %v2872_v16 = vpop.f32.mrb[49].mxu1  ;;  %v2738_v29 = vld [vmem:[#allocation3 + $0x8] sm:$0xff] }
 0x2ce   : > { %v2999_v33 = vadd.f32 %v2872_v16, %v2737_v12  ;;  %v4829_v59 = vpop.f32.mrb[50].mxu1  ;;  %v2747_v20 = vld [vmem:[#allocation3 + $0x50] sm:$0xff]  ;;  %v2745_v52 = vld [vmem:[#allocation3 + $0x40] sm:$0xff] }
 0x2cf   : > { %3033 = vst.msk [vmem:[#allocation3 + $0x10] sm:$0xff] %vm960_vm8, %v3001_v47  ;;  %v3002_v55 = vadd.f32 %v4829_v59, %v2740_v46  ;;  %v2875_v56 = vpop.f32.mrb[51].mxu1  ;;  %v1738_v47 = vld [vmem:[#allocation3 + $0xf8] sm:$0xff] }
 0x2d0   : > { %3031 = vst.msk [vmem:[#allocation3] sm:$0xff] %vm960_vm8, %v2999_v33  ;;  %v3000_v44 = vadd.f32 %v2875_v56, %v2738_v29  ;;  %v1736_v33 = vld [vmem:[#allocation3 + $0xe8] sm:$0xff] }
 0x2d1   : > { %3034 = vst.msk [vmem:[#allocation3 + $0x18] sm:$0xff] %vm960_vm8, %v3002_v55  ;;  %v2751_v55 = vld [vmem:[#allocation3 + $0x70] sm:$0xff] }
 0x2d2   : > { %3032 = vst.msk [vmem:[#allocation3 + $0x8] sm:$0xff] %vm960_vm8, %v3000_v44  ;;  %v2749_v44 = vld [vmem:[#allocation3 + $0x60] sm:$0xff] }
 0x2dc   : > { %v4814_v18 = vpop.f32.mrb[36].mxu0 }
 0x2dd   : > { %v1991_v8 = vadd.f32 %v4814_v18, %v1729_v14  ;;  %v1922_v43 = vpop.f32.mrb[37].mxu0 }
 0x2de   : > { %v1989_v15 = vadd.f32 %v1922_v43, %v1727_v19  ;;  %v4815_v42 = vpop.f32.mrb[38].mxu0 }
 0x2df   : > { %2023 = vst.msk [vmem:[#allocation3 + $0xb0] sm:$0xff] %vm960_vm8, %v1991_v8  ;;  %v1992_v61 = vadd.f32 %v4815_v42, %v1730_v2  ;;  %v1925_v4 = vpop.f32.mrb[39].mxu0  ;;  %v2752_v8 = vld [vmem:[#allocation3 + $0x78] sm:$0xff] }
 0x2e0   : > { %2021 = vst.msk [vmem:[#allocation3 + $0xa0] sm:$0xff] %vm960_vm8, %v1989_v15  ;;  %v1990_v62 = vadd.f32 %v1925_v4, %v1728_v17  ;;  %v2750_v15 = vld [vmem:[#allocation3 + $0x68] sm:$0xff] }
 0x2e1   : > { %2024 = vst.msk [vmem:[#allocation3 + $0xb8] sm:$0xff] %vm960_vm8, %v1992_v61  ;;  %v3769_v61 = vld [vmem:[#allocation3 + $0x10] sm:$0xff] }
 0x2e2   : > { %2022 = vst.msk [vmem:[#allocation3 + $0xa8] sm:$0xff] %vm960_vm8, %v1990_v62  ;;  %v3767_v62 = vld [vmem:[#allocation3] sm:$0xff] }
 0x2ed   : > { %v4832_v45 = vpop.f32.mrb[52].mxu1 }
 0x2ee   : > { %v3005_v35 = vadd.f32 %v4832_v45, %v2743_v53  ;;  %v2888_v25 = vpop.f32.mrb[53].mxu1 }
 0x2ef   : > { %v3003_v21 = vadd.f32 %v2888_v25, %v2741_v48  ;;  %v4833_v1 = vpop.f32.mrb[54].mxu1 }
 0x2f0   : > { %3037 = vst.msk [vmem:[#allocation3 + $0x30] sm:$0xff] %vm960_vm8, %v3005_v35  ;;  %v3006_v34 = vadd.f32 %v4833_v1, %v2744_v39  ;;  %v2891_v23 = vpop.f32.mrb[55].mxu1  ;;  %v3770_v35 = vld [vmem:[#allocation3 + $0x18] sm:$0xff] }
 0x2f1   : > { %3035 = vst.msk [vmem:[#allocation3 + $0x20] sm:$0xff] %vm960_vm8, %v3003_v21  ;;  %v3004_v51 = vadd.f32 %v2891_v23, %v2742_v3  ;;  %v3768_v21 = vld [vmem:[#allocation3 + $0x8] sm:$0xff] }
 0x2f2   : > { %3038 = vst.msk [vmem:[#allocation3 + $0x38] sm:$0xff] %vm960_vm8, %v3006_v34  ;;  %v2755_v34 = vld [vmem:[#allocation3 + $0x90] sm:$0xff] }
 0x2f3   : > { %3036 = vst.msk [vmem:[#allocation3 + $0x28] sm:$0xff] %vm960_vm8, %v3004_v51  ;;  %v2753_v51 = vld [vmem:[#allocation3 + $0x80] sm:$0xff] }
 0x2fd   : > { %v4818_v58 = vpop.f32.mrb[40].mxu0 }
 0x2fe   : > { %v1995_v60 = vadd.f32 %v4818_v58, %v1733_v22  ;;  %v1938_v40 = vpop.f32.mrb[41].mxu0 }
 0x2ff   : > { %v1993_v6 = vadd.f32 %v1938_v40, %v1731_v49  ;;  %v4819_v38 = vpop.f32.mrb[42].mxu0  ;;  %v7989_v40 = vld [vmem:[%s8273_s4] ss:$0 sm:$0xff] }
 0x300   : > { %2027 = vst.msk [vmem:[#allocation3 + $0xd0] sm:$0xff] %vm960_vm8, %v1995_v60  ;;  %v1996_v24 = vadd.f32 %v4819_v38, %v1734_v27  ;;  %v1941_v0 = vpop.f32.mrb[43].mxu0  ;;  %v2756_v60 = vld [vmem:[#allocation3 + $0x98] sm:$0xff]  ;;  %v2754_v27 = vld [vmem:[#allocation3 + $0x88] sm:$0xff] }
 0x301   : > { %2025 = vst.msk [vmem:[#allocation3 + $0xc0] sm:$0xff] %vm960_vm8, %v1993_v6  ;;  %v1994_v54 = vadd.f32 %v1941_v0, %v1732_v32 }
 0x302   : > { %2028 = vst.msk [vmem:[#allocation3 + $0xd8] sm:$0xff] %vm960_vm8, %v1996_v24 }
 0x303   : > { %2026 = vst.msk [vmem:[#allocation3 + $0xc8] sm:$0xff] %vm960_vm8, %v1994_v54 }
 0x30e   : > { %v4836_v63 = vpop.f32.mrb[56].mxu1 }
 0x30f   : > { %v3009_v41 = vadd.f32 %v4836_v63, %v2747_v20  ;;  %v2904_v30 = vpop.f32.mrb[57].mxu1 }
 0x310   : > { %v3007_v10 = vadd.f32 %v2904_v30, %v2745_v52  ;;  %v4837_v7 = vpop.f32.mrb[58].mxu1 }
 0x311   : > { %3041 = vst.msk [vmem:[#allocation3 + $0x50] sm:$0xff] %vm960_vm8, %v3009_v41  ;;  %v3010_v57 = vadd.f32 %v4837_v7, %v2748_v31  ;;  %v2907_v28 = vpop.f32.mrb[59].mxu1 }
 0x312   : > { %3039 = vst.msk [vmem:[#allocation3 + $0x40] sm:$0xff] %vm960_vm8, %v3007_v10  ;;  %v3008_v37 = vadd.f32 %v2907_v28, %v2746_v9  ;;  %v3773_v9 = vld [vmem:[#allocation3 + $0x30] sm:$0xff] }
 0x313   : > { %3042 = vst.msk [vmem:[#allocation3 + $0x58] sm:$0xff] %vm960_vm8, %v3010_v57 }
 0x314   : > { %3040 = vst.msk [vmem:[#allocation3 + $0x48] sm:$0xff] %vm960_vm8, %v3008_v37 }
 0x31e   : > { %v4822_v11 = vpop.f32.mrb[44].mxu0 }
 0x31f   : > { %v1999_v50 = vadd.f32 %v4822_v11, %v1737_v26  ;;  %v1954_v13 = vpop.f32.mrb[45].mxu0  ;;  %v3771_v26 = vld [vmem:[#allocation3 + $0x20] sm:$0xff] }
 0x320   : > { %v1997_v36 = vadd.f32 %v1954_v13, %v1735_v5  ;;  %v4823_v12 = vpop.f32.mrb[46].mxu0  ;;  %v3774_v5 = vld [vmem:[#allocation3 + $0x38] sm:$0xff] }
 0x321   : > { %2031 = vst.msk [vmem:[#allocation3 + $0xf0] sm:$0xff] %vm960_vm8, %v1999_v50  ;;  %v2000_v16 = vadd.f32 %v4823_v12, %v1738_v47  ;;  %v1957_v46 = vpop.f32.mrb[47].mxu0  ;;  %v3772_v47 = vld [vmem:[#allocation3 + $0x28] sm:$0xff] }
 0x322   : > { %2029 = vst.msk [vmem:[#allocation3 + $0xe0] sm:$0xff] %vm960_vm8, %v1997_v36  ;;  %v1998_v59 = vadd.f32 %v1957_v46, %v1736_v33 }
 0x323   : > { %2032 = vst.msk [vmem:[#allocation3 + $0xf8] sm:$0xff] %vm960_vm8, %v2000_v16 }
 0x324   : > { %2030 = vst.msk [vmem:[#allocation3 + $0xe8] sm:$0xff] %vm960_vm8, %v1998_v59 }
 0x32b   : > { %v4840_v29 = vpop.f32.mrb[60].mxu1 }
 0x32c   : > { %v3013_v56 = vadd.f32 %v4840_v29, %v2751_v55  ;;  %v2920_v14 = vpop.f32.mrb[61].mxu1  ;;  %v2759_v55 = vld [vmem:[#allocation3 + $0xb0] sm:$0xff] }
 0x32d   : > { %v3011_v18 = vadd.f32 %v2920_v14, %v2749_v44  ;;  %v4841_v19 = vpop.f32.mrb[62].mxu1 }
 0x32e   : > { %3045 = vst.msk [vmem:[#allocation3 + $0x70] sm:$0xff] %vm960_vm8, %v3013_v56  ;;  %v3014_v43 = vadd.f32 %v4841_v19, %v2752_v8  ;;  %v2923_v2 = vpop.f32.mrb[63].mxu1 }
 0x32f   : > { %3043 = vst.msk [vmem:[#allocation3 + $0x60] sm:$0xff] %vm960_vm8, %v3011_v18  ;;  %v3012_v42 = vadd.f32 %v2923_v2, %v2750_v15  ;;  %v2757_v18 = vld [vmem:[#allocation3 + $0xa0] sm:$0xff]  ;;  %v2760_v2 = vld [vmem:[#allocation3 + $0xb8] sm:$0xff] }
 0x330   : > { %3046 = vst.msk [vmem:[#allocation3 + $0x78] sm:$0xff] %vm960_vm8, %v3014_v43 }
 0x331   : > { %3044 = vst.msk [vmem:[#allocation3 + $0x68] sm:$0xff] %vm960_vm8, %v3012_v42 }
 0x33c   : > { %v4862_v17 = vpop.f32.mrb[48].mxu0 }
 0x33d   : > { %v4031_v4 = vadd.f32 %v4862_v17, %v3769_v61  ;;  %v3902_v53 = vpop.f32.mrb[49].mxu0 }
 0x33e   : > { %v4029_v45 = vadd.f32 %v3902_v53, %v3767_v62  ;;  %v4863_v48 = vpop.f32.mrb[50].mxu0  ;;  %v2758_v62 = vld [vmem:[#allocation3 + $0xa8] sm:$0xff] }
 0x33f   : > { %4063 = vst.msk [vmem:[#allocation3 + $0x10] sm:$0xff] %vm960_vm8, %v4031_v4  ;;  %v4032_v25 = vadd.f32 %v4863_v48, %v3770_v35  ;;  %v3905_v39 = vpop.f32.mrb[51].mxu0 }
 0x340   : > { %4061 = vst.msk [vmem:[#allocation3] sm:$0xff] %vm960_vm8, %v4029_v45  ;;  %v4030_v1 = vadd.f32 %v3905_v39, %v3768_v21 }
 0x341   : > { %4064 = vst.msk [vmem:[#allocation3 + $0x18] sm:$0xff] %vm960_vm8, %v4032_v25  ;;  %v4844_v3 = vpop.f32.mrb[64].mxu1 }
 0x342   : > { %4062 = vst.msk [vmem:[#allocation3 + $0x8] sm:$0xff] %vm960_vm8, %v4030_v1  ;;  %v3017_v23 = vadd.f32 %v4844_v3, %v2755_v34  ;;  %v2936_v22 = vpop.f32.mrb[65].mxu1 }
 0x343   : > { %v3015_v58 = vadd.f32 %v2936_v22, %v2753_v51  ;;  %v4845_v49 = vpop.f32.mrb[66].mxu1 }
 0x344   : > { %3049 = vst.msk [vmem:[#allocation3 + $0x90] sm:$0xff] %vm960_vm8, %v3017_v23  ;;  %v3018_v6 = vadd.f32 %v4845_v49, %v2756_v60  ;;  %v2939_v38 = vpop.f32.mrb[67].mxu1 }
 0x345   : > { %3047 = vst.msk [vmem:[#allocation3 + $0x80] sm:$0xff] %vm960_vm8, %v3015_v58  ;;  %v3016_v24 = vadd.f32 %v2939_v38, %v2754_v27 }
 0x346   : > { %v4095_v32 = vld [vmem:[#allocation3 + $0x10] sm:$0xff]  ;;  %3050 = vst.msk [vmem:[#allocation3 + $0x98] sm:$0xff] %vm960_vm8, %v3018_v6 }
 0x347   : > { %v7995_v0 = vadd.f32 %v7989_v40, %v4095_v32  ;;  %v4093_v54 = vld [vmem:[#allocation3] sm:$0xff]  ;;  %3048 = vst.msk [vmem:[#allocation3 + $0x88] sm:$0xff] %vm960_vm8, %v3016_v24  ;;  %v3777_v6 = vld [vmem:[#allocation3 + $0x50] sm:$0xff] }
 0x348   : > { %v7999_v20 = vadd.f32 %v7989_v40, %v4093_v54  ;;  %v4096_v63 = vld [vmem:[#allocation3 + $0x18] sm:$0xff]  ;;  %v3775_v54 = vld [vmem:[#allocation3 + $0x40] sm:$0xff] }
 0x349   : > { %v4603_v41 = vmul.f32 -1.442695, %v7995_v0  ;;  %v8003_v52 = vadd.f32 %v7989_v40, %v4096_v63  ;;  %v4094_v30 = vld [vmem:[#allocation3 + $0x8] sm:$0xff] }
 0x34a   : > { %v4601_v10 = vmul.f32 -1.442695, %v7999_v20  ;;  %v8007_v31 = vadd.f32 %v7989_v40, %v4094_v30 }
 0x34b   : > { %5037 = vpow2.f32 %v4603_v41  ;;  %v4604_v7 = vmul.f32 -1.442695, %v8003_v52 }
 0x34c   : > { %5039 = vpow2.f32 %v4601_v10  ;;  %v4602_v57 = vmul.f32 -1.442695, %v8007_v31 }
 0x34d   : > { %5041 = vpow2.f32 %v4604_v7  ;;  %v3778_v7 = vld [vmem:[#allocation3 + $0x58] sm:$0xff] }
 0x34e   : > { %5043 = vpow2.f32 %v4602_v57 }
 0x350   : > { %v4866_v28 = vpop.f32.mrb[52].mxu0 }
 0x351   : > { %v4035_v37 = vadd.f32 %v4866_v28, %v3773_v9  ;;  %v3918_v11 = vpop.f32.mrb[53].mxu0  ;;  %v3776_v9 = vld [vmem:[#allocation3 + $0x48] sm:$0xff] }
 0x352   : > { %v4033_v50 = vadd.f32 %v3918_v11, %v3771_v26  ;;  %v4867_v13 = vpop.f32.mrb[54].mxu0 }
 0x353   : > { %4067 = vst.msk [vmem:[#allocation3 + $0x30] sm:$0xff] %vm960_vm8, %v4035_v37  ;;  %v4036_v36 = vadd.f32 %v4867_v13, %v3774_v5  ;;  %v3921_v12 = vpop.f32.mrb[55].mxu0 }
 0x354   : > { %4065 = vst.msk [vmem:[#allocation3 + $0x20] sm:$0xff] %vm960_vm8, %v4033_v50  ;;  %v4034_v16 = vadd.f32 %v3921_v12, %v3772_v47  ;;  %v2763_v47 = vld [vmem:[#allocation3 + $0xd0] sm:$0xff] }
 0x355   : > { %4068 = vst.msk [vmem:[#allocation3 + $0x38] sm:$0xff] %vm960_vm8, %v4036_v36  ;;  %v5038_v33 = vpop.eup %5037 }
 0x356   : > { %4066 = vst.msk [vmem:[#allocation3 + $0x28] sm:$0xff] %vm960_vm8, %v4034_v16  ;;  %v5040_v46 = vpop.eup %5039  ;;  %v4262_v59 = vadd.f32 1.0, %v5038_v33 }
 0x357   : > { %v4848_v29 = vpop.f32.mrb[68].mxu1  ;;  %v5042_v56 = vpop.eup %5041  ;;  %v4260_v44 = vadd.f32 1.0, %v5040_v46  ;;  %v2761_v46 = vld [vmem:[#allocation3 + $0xc0] sm:$0xff] }
 0x358   : > { %v3021_v14 = vadd.f32 %v4848_v29, %v2759_v55  ;;  %v2952_v8 = vpop.f32.mrb[69].mxu1  ;;  %v5044_v19 = vpop.eup %5043  ;;  %5045 = vrcp.f32 %v4262_v59  ;;  %v4263_v43 = vadd.f32 1.0, %v5042_v56 }
 0x359   : > { %v3019_v15 = vadd.f32 %v2952_v8, %v2757_v18  ;;  %v4849_v42 = vpop.f32.mrb[70].mxu1  ;;  %5047 = vrcp.f32 %v4260_v44  ;;  %v4261_v61 = vadd.f32 1.0, %v5044_v19  ;;  %v2764_v44 = vld [vmem:[#allocation3 + $0xd8] sm:$0xff] }
 0x35a   : > { %v4099_v17 = vld [vmem:[#allocation3 + $0x30] sm:$0xff]  ;;  %3053 = vst.msk [vmem:[#allocation3 + $0xb0] sm:$0xff] %vm960_vm8, %v3021_v14  ;;  %v3022_v4 = vadd.f32 %v4849_v42, %v2760_v2  ;;  %v2955_v53 = vpop.f32.mrb[71].mxu1  ;;  %5049 = vrcp.f32 %v4263_v43  ;;  %v2762_v43 = vld [vmem:[#allocation3 + $0xc8] sm:$0xff] }
 0x35b   : > { %v8017_v45 = vadd.f32 %v7989_v40, %v4099_v17  ;;  %v4097_v35 = vld [vmem:[#allocation3 + $0x20] sm:$0xff]  ;;  %3051 = vst.msk [vmem:[#allocation3 + $0xa0] sm:$0xff] %vm960_vm8, %v3019_v15  ;;  %v3020_v48 = vadd.f32 %v2955_v53, %v2758_v62  ;;  %5051 = vrcp.f32 %v4261_v61 }
 0x35c   : > { %v8021_v25 = vadd.f32 %v7989_v40, %v4097_v35  ;;  %v4100_v21 = vld [vmem:[#allocation3 + $0x38] sm:$0xff]  ;;  %3054 = vst.msk [vmem:[#allocation3 + $0xb8] sm:$0xff] %vm960_vm8, %v3022_v4 }
 0x35d   : > { %v4607_v39 = vmul.f32 -1.442695, %v8017_v45  ;;  %v8026_v1 = vadd.f32 %v7989_v40, %v4100_v21  ;;  %v4098_v34 = vld [vmem:[#allocation3 + $0x28] sm:$0xff]  ;;  %3052 = vst.msk [vmem:[#allocation3 + $0xa8] sm:$0xff] %vm960_vm8, %v3020_v48 }
 0x35e   : > { %v4605_v3 = vmul.f32 -1.442695, %v8021_v25  ;;  %v8031_v23 = vadd.f32 %v7989_v40, %v4098_v34 }
 0x35f   : > { %5053 = vpow2.f32 %v4607_v39  ;;  %v4608_v51 = vmul.f32 -1.442695, %v8026_v1 }
 0x360   : > { %5055 = vpow2.f32 %v4605_v3  ;;  %v4606_v22 = vmul.f32 -1.442695, %v8031_v23 }
 0x361   : > { %5057 = vpow2.f32 %v4608_v51 }
 0x362   : > { %5059 = vpow2.f32 %v4606_v22  ;;  %v5046_v58 = vpop.eup %5045 }
 0x363   : > { %v5048_v60 = vpop.eup %5047  ;;  %v4358_v49 = vmul.f32 %v5046_v58, %v7995_v0 }
 0x364   : > { %v4870_v27 = vpop.f32.mrb[56].mxu0  ;;  %v5050_v38 = vpop.eup %5049  ;;  %v4356_v24 = vmul.f32 %v5048_v60, %v7999_v20  ;;  %v3781_v60 = vld [vmem:[#allocation3 + $0x70] sm:$0xff] }
 0x365   : > { %v4039_v32 = vadd.f32 %v4870_v27, %v3777_v6  ;;  %v3934_v63 = vpop.f32.mrb[57].mxu0  ;;  %v5052_v41 = vpop.eup %5051  ;;  %4390 = vst.msk [vmem:[%s8040_s15 + $0x10] sm:$0xff] %vm960_vm8, %v4358_v49  ;;  %v4359_v30 = vmul.f32 %v5050_v38, %v8003_v52 }
 0x366   : > { %v4037_v10 = vadd.f32 %v3934_v63, %v3775_v54  ;;  %v4871_v57 = vpop.f32.mrb[58].mxu0  ;;  %4388 = vst.msk [vmem:[%s8040_s15] sm:$0xff] %vm960_vm8, %v4356_v24  ;;  %v4357_v0 = vmul.f32 %v5052_v41, %v8007_v31  ;;  %v3782_v24 = vld [vmem:[#allocation3 + $0x78] sm:$0xff]  ;;  %v3780_v41 = vld [vmem:[#allocation3 + $0x68] sm:$0xff] }
 0x367   : > { %4071 = vst.msk [vmem:[#allocation3 + $0x50] sm:$0xff] %vm960_vm8, %v4039_v32  ;;  %v4040_v20 = vadd.f32 %v4871_v57, %v3778_v7  ;;  %v3937_v28 = vpop.f32.mrb[59].mxu0  ;;  %4391 = vst.msk [vmem:[%s8040_s15 + $0x18] sm:$0xff] %vm960_vm8, %v4359_v30 }
 0x368   : > { %4069 = vst.msk [vmem:[#allocation3 + $0x40] sm:$0xff] %vm960_vm8, %v4037_v10  ;;  %v4038_v37 = vadd.f32 %v3937_v28, %v3776_v9  ;;  %4389 = vst.msk [vmem:[%s8040_s15 + $0x8] sm:$0xff] %vm960_vm8, %v4357_v0  ;;  %v2767_v9 = vld [vmem:[#allocation3 + $0xf0] sm:$0xff] }
 0x369   : > { %v5054_v26 = vpop.eup %5053  ;;  %4072 = vst.msk [vmem:[#allocation3 + $0x58] sm:$0xff] %vm960_vm8, %v4040_v20 }
 0x36a   : > { %v5056_v52 = vpop.eup %5055  ;;  %v4266_v11 = vadd.f32 1.0, %v5054_v26  ;;  %4070 = vst.msk [vmem:[#allocation3 + $0x48] sm:$0xff] %vm960_vm8, %v4038_v37  ;;  %v2765_v26 = vld [vmem:[#allocation3 + $0xe0] sm:$0xff] }
 0x36b   : > { %v5058_v31 = vpop.eup %5057  ;;  %v4264_v50 = vadd.f32 1.0, %v5056_v52 }
 0x36c   : > { %v5060_v5 = vpop.eup %5059  ;;  %5061 = vrcp.f32 %v4266_v11  ;;  %v4267_v13 = vadd.f32 1.0, %v5058_v31  ;;  %v2768_v31 = vld [vmem:[#allocation3 + $0xf8] sm:$0xff] }
 0x36d   : > { %5063 = vrcp.f32 %v4264_v50  ;;  %v4265_v36 = vadd.f32 1.0, %v5060_v5  ;;  %v4852_v12 = vpop.f32.mrb[72].mxu1 }
 0x36e   : > { %5065 = vrcp.f32 %v4267_v13  ;;  %v4103_v16 = vld [vmem:[#allocation3 + $0x50] sm:$0xff]  ;;  %v3025_v33 = vadd.f32 %v4852_v12, %v2763_v47  ;;  %v2968_v59 = vpop.f32.mrb[73].mxu1  ;;  %v2766_v13 = vld [vmem:[#allocation3 + $0xe8] sm:$0xff] }
 0x36f   : > { %5067 = vrcp.f32 %v4265_v36  ;;  %v8059_v55 = vadd.f32 %v7989_v40, %v4103_v16  ;;  %v4101_v29 = vld [vmem:[#allocation3 + $0x40] sm:$0xff]  ;;  %v3023_v56 = vadd.f32 %v2968_v59, %v2761_v46  ;;  %v4853_v14 = vpop.f32.mrb[74].mxu1  ;;  %v3785_v46 = vld [vmem:[#allocation3 + $0x90] sm:$0xff] }
 0x370   : > { %v8062_v18 = vadd.f32 %v7989_v40, %v4101_v29  ;;  %v4104_v8 = vld [vmem:[#allocation3 + $0x58] sm:$0xff]  ;;  %3057 = vst.msk [vmem:[#allocation3 + $0xd0] sm:$0xff] %vm960_vm8, %v3025_v33  ;;  %v3026_v19 = vadd.f32 %v4853_v14, %v2764_v44  ;;  %v2971_v15 = vpop.f32.mrb[75].mxu1  ;;  %v3783_v14 = vld [vmem:[#allocation3 + $0x80] sm:$0xff] }
 0x371   : > { %v4611_v2 = vmul.f32 -1.442695, %v8059_v55  ;;  %v8067_v42 = vadd.f32 %v7989_v40, %v4104_v8  ;;  %v4102_v61 = vld [vmem:[#allocation3 + $0x48] sm:$0xff]  ;;  %3055 = vst.msk [vmem:[#allocation3 + $0xc0] sm:$0xff] %vm960_vm8, %v3023_v56  ;;  %v3024_v17 = vadd.f32 %v2971_v15, %v2762_v43 }
 0x372   : > { %v4609_v4 = vmul.f32 -1.442695, %v8062_v18  ;;  %v8072_v62 = vadd.f32 %v7989_v40, %v4102_v61  ;;  %3058 = vst.msk [vmem:[#allocation3 + $0xd8] sm:$0xff] %vm960_vm8, %v3026_v19  ;;  %v3786_v61 = vld [vmem:[#allocation3 + $0x98] sm:$0xff] }
 0x373   : > { %5069 = vpow2.f32 %v4611_v2  ;;  %v4612_v53 = vmul.f32 -1.442695, %v8067_v42  ;;  %3056 = vst.msk [vmem:[#allocation3 + $0xc8] sm:$0xff] %vm960_vm8, %v3024_v17 }
 0x374   : > { %5071 = vpow2.f32 %v4609_v4  ;;  %v4610_v35 = vmul.f32 -1.442695, %v8072_v62 }
 0x375   : > { %5073 = vpow2.f32 %v4612_v53 }
 0x376   : > { %v5062_v48 = vpop.eup %5061  ;;  %5075 = vpow2.f32 %v4610_v35 }
 0x377   : > { %v5064_v21 = vpop.eup %5063  ;;  %v4362_v39 = vmul.f32 %v5062_v48, %v8017_v45  ;;  %v3779_v45 = vld [vmem:[#allocation3 + $0x60] sm:$0xff]  ;;  %v3784_v48 = vld [vmem:[#allocation3 + $0x88] sm:$0xff] }
 0x378   : > { %v5066_v34 = vpop.eup %5065  ;;  %v4360_v3 = vmul.f32 %v5064_v21, %v8021_v25 }
 0x379   : > { %v5068_v51 = vpop.eup %5067  ;;  %4394 = vst.msk [vmem:[%s8040_s15 + $0x30] sm:$0xff] %vm960_vm8, %v4362_v39  ;;  %v4363_v22 = vmul.f32 %v5066_v34, %v8026_v1 }
 0x37a   : > { %4392 = vst.msk [vmem:[%s8040_s15 + $0x20] sm:$0xff] %vm960_vm8, %v4360_v3  ;;  %v4361_v58 = vmul.f32 %v5068_v51, %v8031_v23 }
 0x37b   : > { %4395 = vst.msk [vmem:[%s8040_s15 + $0x38] sm:$0xff] %vm960_vm8, %v4363_v22  ;;  %v4874_v49 = vpop.f32.mrb[60].mxu0 }
 0x37c   : > { %4393 = vst.msk [vmem:[%s8040_s15 + $0x28] sm:$0xff] %vm960_vm8, %v4361_v58  ;;  %v4043_v6 = vadd.f32 %v4874_v49, %v3781_v60  ;;  %v3950_v27 = vpop.f32.mrb[61].mxu0 }
 0x37d   : > { %v5070_v38 = vpop.eup %5069  ;;  %v4041_v25 = vadd.f32 %v3950_v27, %v3779_v45  ;;  %v4875_v32 = vpop.f32.mrb[62].mxu0  ;;  %v3789_v27 = vld [vmem:[#allocation3 + $0xb0] sm:$0xff] }
 0x37e   : > { %v5072_v54 = vpop.eup %5071  ;;  %v4270_v63 = vadd.f32 1.0, %v5070_v38  ;;  %4075 = vst.msk [vmem:[#allocation3 + $0x70] sm:$0xff] %vm960_vm8, %v4043_v6  ;;  %v4044_v1 = vadd.f32 %v4875_v32, %v3782_v24  ;;  %v3953_v23 = vpop.f32.mrb[63].mxu0  ;;  %v3787_v24 = vld [vmem:[#allocation3 + $0xa0] sm:$0xff] }
 0x37f   : > { %v5074_v30 = vpop.eup %5073  ;;  %v4268_v10 = vadd.f32 1.0, %v5072_v54  ;;  %4073 = vst.msk [vmem:[#allocation3 + $0x60] sm:$0xff] %vm960_vm8, %v4041_v25  ;;  %v4042_v7 = vadd.f32 %v3953_v23, %v3780_v41  ;;  %v3788_v23 = vld [vmem:[#allocation3 + $0xa8] sm:$0xff] }
 0x380   : > { %v5076_v57 = vpop.eup %5075  ;;  %5077 = vrcp.f32 %v4270_v63  ;;  %v4271_v0 = vadd.f32 1.0, %v5074_v30  ;;  %4076 = vst.msk [vmem:[#allocation3 + $0x78] sm:$0xff] %vm960_vm8, %v4044_v1  ;;  %v3790_v63 = vld [vmem:[#allocation3 + $0xb8] sm:$0xff] }
 0x381   : > { %5079 = vrcp.f32 %v4268_v10  ;;  %v4269_v20 = vadd.f32 1.0, %v5076_v57  ;;  %4074 = vst.msk [vmem:[#allocation3 + $0x68] sm:$0xff] %vm960_vm8, %v4042_v7 }
 0x382   : > { %v4856_v28 = vpop.f32.mrb[76].mxu1  ;;  %5081 = vrcp.f32 %v4271_v0 }
 0x383   : > { %v3029_v37 = vadd.f32 %v4856_v28, %v2767_v9  ;;  %v2984_v52 = vpop.f32.mrb[77].mxu1  ;;  %5083 = vrcp.f32 %v4269_v20 }
 0x384   : > { %v3027_v11 = vadd.f32 %v2984_v52, %v2765_v26  ;;  %v4857_v50 = vpop.f32.mrb[78].mxu1 }
 0x385   : > { %3061 = vst.msk [vmem:[#allocation3 + $0xf0] sm:$0xff] %vm960_vm8, %v3029_v37  ;;  %v3030_v5 = vadd.f32 %v4857_v50, %v2768_v31  ;;  %v2987_v36 = vpop.f32.mrb[79].mxu1  ;;  %v4107_v47 = vld [vmem:[#allocation3 + $0x70] sm:$0xff] }
 0x386   : > { %3059 = vst.msk [vmem:[#allocation3 + $0xe0] sm:$0xff] %vm960_vm8, %v3027_v11  ;;  %v3028_v12 = vadd.f32 %v2987_v36, %v2766_v13  ;;  %v8097_v16 = vadd.f32 %v7989_v40, %v4107_v47  ;;  %v4105_v33 = vld [vmem:[#allocation3 + $0x60] sm:$0xff] }
 0x387   : > { %3062 = vst.msk [vmem:[#allocation3 + $0xf8] sm:$0xff] %vm960_vm8, %v3030_v5  ;;  %v4878_v59 = vpop.f32.mrb[64].mxu0  ;;  %v8101_v29 = vadd.f32 %v7989_v40, %v4105_v33  ;;  %v4108_v56 = vld [vmem:[#allocation3 + $0x78] sm:$0xff]  ;;  %v3793_v5 = vld [vmem:[#allocation3 + $0xd0] sm:$0xff] }
 0x388   : > { %3060 = vst.msk [vmem:[#allocation3 + $0xe8] sm:$0xff] %vm960_vm8, %v3028_v12  ;;  %v4047_v44 = vadd.f32 %v4878_v59, %v3785_v46  ;;  %v3966_v8 = vpop.f32.mrb[65].mxu0  ;;  %v4615_v19 = vmul.f32 -1.442695, %v8097_v16  ;;  %v8106_v43 = vadd.f32 %v7989_v40, %v4108_v56  ;;  %v4106_v15 = vld [vmem:[#allocation3 + $0x68] sm:$0xff]  ;;  %v3791_v46 = vld [vmem:[#allocation3 + $0xc0] sm:$0xff] }
 0x389   : > { %v4045_v2 = vadd.f32 %v3966_v8, %v3783_v14  ;;  %v4879_v17 = vpop.f32.mrb[66].mxu0  ;;  %v4613_v4 = vmul.f32 -1.442695, %v8101_v29  ;;  %v8110_v53 = vadd.f32 %v7989_v40, %v4106_v15 }
 0x38a   : > { %4079 = vst.msk [vmem:[#allocation3 + $0x90] sm:$0xff] %vm960_vm8, %v4047_v44  ;;  %v4048_v35 = vadd.f32 %v4879_v17, %v3786_v61  ;;  %v3969_v21 = vpop.f32.mrb[67].mxu0  ;;  %v5078_v39 = vpop.eup %5077  ;;  %5085 = vpow2.f32 %v4615_v19  ;;  %v4616_v34 = vmul.f32 -1.442695, %v8106_v43  ;;  %v3794_v19 = vld [vmem:[#allocation3 + $0xd8] sm:$0xff] }
 0x38b   : > { %4077 = vst.msk [vmem:[#allocation3 + $0x80] sm:$0xff] %vm960_vm8, %v4045_v2  ;;  %v4046_v3 = vadd.f32 %v3969_v21, %v3784_v48  ;;  %v5080_v51 = vpop.eup %5079  ;;  %v4366_v22 = vmul.f32 %v5078_v39, %v8059_v55  ;;  %5087 = vpow2.f32 %v4613_v4  ;;  %v4614_v58 = vmul.f32 -1.442695, %v8110_v53  ;;  %v3792_v4 = vld [vmem:[#allocation3 + $0xc8] sm:$0xff] }
 0x38c   : > { %4080 = vst.msk [vmem:[#allocation3 + $0x98] sm:$0xff] %vm960_vm8, %v4048_v35  ;;  %v5082_v60 = vpop.eup %5081  ;;  %v4364_v49 = vmul.f32 %v5080_v51, %v8062_v18  ;;  %5089 = vpow2.f32 %v4616_v34 }
 0x38d   : > { %4078 = vst.msk [vmem:[#allocation3 + $0x88] sm:$0xff] %vm960_vm8, %v4046_v3  ;;  %v5084_v6 = vpop.eup %5083  ;;  %4398 = vst.msk [vmem:[%s8040_s15 + $0x50] sm:$0xff] %vm960_vm8, %v4366_v22  ;;  %v4367_v45 = vmul.f32 %v5082_v60, %v8067_v42  ;;  %5091 = vpow2.f32 %v4614_v58 }
 0x38e   : > { %4396 = vst.msk [vmem:[%s8040_s15 + $0x40] sm:$0xff] %vm960_vm8, %v4364_v49  ;;  %v4365_v55 = vmul.f32 %v5084_v6, %v8072_v62  ;;  %v3797_v6 = vld [vmem:[#allocation3 + $0xf0] sm:$0xff] }
 0x38f   : > { %v4882_v38 = vpop.f32.mrb[68].mxu0  ;;  %4399 = vst.msk [vmem:[%s8040_s15 + $0x58] sm:$0xff] %vm960_vm8, %v4367_v45 }
 0x390   : > { %v4051_v25 = vadd.f32 %v4882_v38, %v3789_v27  ;;  %v3982_v18 = vpop.f32.mrb[69].mxu0  ;;  %4397 = vst.msk [vmem:[%s8040_s15 + $0x48] sm:$0xff] %vm960_vm8, %v4365_v55  ;;  %v3795_v38 = vld [vmem:[#allocation3 + $0xe0] sm:$0xff] }
 0x391   : > { %v4111_v32 = vld [vmem:[#allocation3 + $0x90] sm:$0xff]  ;;  %v4049_v54 = vadd.f32 %v3982_v18, %v3787_v24  ;;  %v4883_v1 = vpop.f32.mrb[70].mxu0 }
 0x392   : > { %v8131_v42 = vadd.f32 %v7989_v40, %v4111_v32  ;;  %v4109_v41 = vld [vmem:[#allocation3 + $0x80] sm:$0xff]  ;;  %4083 = vst.msk [vmem:[#allocation3 + $0xb0] sm:$0xff] %vm960_vm8, %v4051_v25  ;;  %v4052_v62 = vadd.f32 %v4883_v1, %v3790_v63  ;;  %v3985_v30 = vpop.f32.mrb[71].mxu0  ;;  %v3798_v63 = vld [vmem:[#allocation3 + $0xf8] sm:$0xff] }
 0x393   : > { %v8135_v10 = vadd.f32 %v7989_v40, %v4109_v41  ;;  %v4112_v7 = vld [vmem:[#allocation3 + $0x98] sm:$0xff]  ;;  %4081 = vst.msk [vmem:[#allocation3 + $0xa0] sm:$0xff] %vm960_vm8, %v4049_v54  ;;  %v4050_v57 = vadd.f32 %v3985_v30, %v3788_v23 }
 0x394   : > { %v4619_v0 = vmul.f32 -1.442695, %v8131_v42  ;;  %v8140_v20 = vadd.f32 %v7989_v40, %v4112_v7  ;;  %v4110_v9 = vld [vmem:[#allocation3 + $0x88] sm:$0xff]  ;;  %4084 = vst.msk [vmem:[#allocation3 + $0xb8] sm:$0xff] %vm960_vm8, %v4052_v62  ;;  %v5086_v28 = vpop.eup %5085 }
 0x395   : > { %v4617_v37 = vmul.f32 -1.442695, %v8135_v10  ;;  %v8145_v26 = vadd.f32 %v7989_v40, %v4110_v9  ;;  %4082 = vst.msk [vmem:[#allocation3 + $0xa8] sm:$0xff] %vm960_vm8, %v4050_v57  ;;  %v5088_v52 = vpop.eup %5087  ;;  %v4274_v11 = vadd.f32 1.0, %v5086_v28  ;;  %v3796_v57 = vld [vmem:[#allocation3 + $0xe8] sm:$0xff] }
 0x396   : > { %5093 = vpow2.f32 %v4619_v0  ;;  %v5090_v31 = vpop.eup %5089  ;;  %v4272_v50 = vadd.f32 1.0, %v5088_v52  ;;  %v4620_v12 = vmul.f32 -1.442695, %v8140_v20 }
 0x397   : > { %5095 = vpow2.f32 %v4617_v37  ;;  %v4886_v13 = vpop.f32.mrb[72].mxu0  ;;  %v5092_v36 = vpop.eup %5091  ;;  %v4275_v47 = vadd.f32 1.0, %v5090_v31  ;;  %v4618_v44 = vmul.f32 -1.442695, %v8145_v26 }
 0x398   : > { %5097 = vrcp.f32 %v4274_v11  ;;  %v4055_v33 = vadd.f32 %v4886_v13, %v3793_v5  ;;  %v3998_v59 = vpop.f32.mrb[73].mxu0  ;;  %v4273_v56 = vadd.f32 1.0, %v5092_v36 }
 0x399   : > { %5099 = vrcp.f32 %v4272_v50  ;;  %v4115_v14 = vld [vmem:[#allocation3 + $0xb0] sm:$0xff]  ;;  %v4053_v8 = vadd.f32 %v3998_v59, %v3791_v46  ;;  %v4887_v15 = vpop.f32.mrb[74].mxu0 }
 0x39a   : > { %5101 = vrcp.f32 %v4275_v47  ;;  %v8151_v2 = vadd.f32 %v7989_v40, %v4115_v14  ;;  %v4113_v61 = vld [vmem:[#allocation3 + $0xa0] sm:$0xff]  ;;  %4087 = vst.msk [vmem:[#allocation3 + $0xd0] sm:$0xff] %vm960_vm8, %v4055_v33  ;;  %v4056_v17 = vadd.f32 %v4887_v15, %v3794_v19  ;;  %v4001_v35 = vpop.f32.mrb[75].mxu0 }
 0x39b   : > { %5103 = vrcp.f32 %v4273_v56  ;;  %v8155_v48 = vadd.f32 %v7989_v40, %v4113_v61  ;;  %v4116_v21 = vld [vmem:[#allocation3 + $0xb8] sm:$0xff]  ;;  %4085 = vst.msk [vmem:[#allocation3 + $0xc0] sm:$0xff] %vm960_vm8, %v4053_v8  ;;  %v4054_v39 = vadd.f32 %v4001_v35, %v3792_v4 }
 0x39c   : > { %5105 = vpow2.f32 %v4620_v12  ;;  %v4623_v34 = vmul.f32 -1.442695, %v8151_v2  ;;  %v8160_v3 = vadd.f32 %v7989_v40, %v4116_v21  ;;  %v4114_v51 = vld [vmem:[#allocation3 + $0xa8] sm:$0xff]  ;;  %4088 = vst.msk [vmem:[#allocation3 + $0xd8] sm:$0xff] %vm960_vm8, %v4056_v17 }
 0x39d   : > { %5107 = vpow2.f32 %v4618_v44  ;;  %v4621_v22 = vmul.f32 -1.442695, %v8155_v48  ;;  %v8165_v58 = vadd.f32 %v7989_v40, %v4114_v51  ;;  %4086 = vst.msk [vmem:[#allocation3 + $0xc8] sm:$0xff] %vm960_vm8, %v4054_v39 }
 0x39e   : > { %5109 = vpow2.f32 %v4623_v34  ;;  %v4624_v60 = vmul.f32 -1.442695, %v8160_v3 }
 0x39f   : > { %5111 = vpow2.f32 %v4621_v22  ;;  %v4622_v49 = vmul.f32 -1.442695, %v8165_v58  ;;  %v4890_v45 = vpop.f32.mrb[76].mxu0 }
 0x3a0   : > { %v5094_v55 = vpop.eup %5093  ;;  %5113 = vpow2.f32 %v4624_v60  ;;  %v4059_v27 = vadd.f32 %v4890_v45, %v3797_v6  ;;  %v4014_v25 = vpop.f32.mrb[77].mxu0 }
 0x3a1   : > { %v5096_v24 = vpop.eup %5095  ;;  %v4278_v18 = vadd.f32 1.0, %v5094_v55  ;;  %5115 = vpow2.f32 %v4622_v49  ;;  %v4119_v32 = vld [vmem:[#allocation3 + $0xd0] sm:$0xff]  ;;  %v4057_v54 = vadd.f32 %v4014_v25, %v3795_v38  ;;  %v4891_v1 = vpop.f32.mrb[78].mxu0 }
 0x3a2   : > { %v5098_v41 = vpop.eup %5097  ;;  %v4276_v62 = vadd.f32 1.0, %v5096_v24  ;;  %v8171_v23 = vadd.f32 %v7989_v40, %v4119_v32  ;;  %v4117_v30 = vld [vmem:[#allocation3 + $0xc0] sm:$0xff]  ;;  %4091 = vst.msk [vmem:[#allocation3 + $0xf0] sm:$0xff] %vm960_vm8, %v4059_v27  ;;  %v4060_v7 = vadd.f32 %v4891_v1, %v3798_v63  ;;  %v4017_v0 = vpop.f32.mrb[79].mxu0 }
 0x3a3   : > { %v5100_v9 = vpop.eup %5099  ;;  %v4370_v28 = vmul.f32 %v5098_v41, %v8097_v16  ;;  %5117 = vrcp.f32 %v4278_v18  ;;  %v8176_v37 = vadd.f32 %v7989_v40, %v4117_v30  ;;  %v4120_v52 = vld [vmem:[#allocation3 + $0xd8] sm:$0xff]  ;;  %4089 = vst.msk [vmem:[#allocation3 + $0xe0] sm:$0xff] %vm960_vm8, %v4057_v54  ;;  %v4058_v11 = vadd.f32 %v4017_v0, %v3796_v57 }
 0x3a4   : > { %v5102_v31 = vpop.eup %5101  ;;  %v4368_v50 = vmul.f32 %v5100_v9, %v8101_v29  ;;  %5119 = vrcp.f32 %v4276_v62  ;;  %v4627_v5 = vmul.f32 -1.442695, %v8171_v23  ;;  %v8182_v13 = vadd.f32 %v7989_v40, %v4120_v52  ;;  %v4118_v16 = vld [vmem:[#allocation3 + $0xc8] sm:$0xff]  ;;  %4092 = vst.msk [vmem:[#allocation3 + $0xf8] sm:$0xff] %vm960_vm8, %v4060_v7 }
 0x3a5   : > { %v5104_v36 = vpop.eup %5103  ;;  %4402 = vst.msk [vmem:[%s8040_s15 + $0x70] sm:$0xff] %vm960_vm8, %v4370_v28  ;;  %v4371_v47 = vmul.f32 %v5102_v31, %v8106_v43  ;;  %v4625_v12 = vmul.f32 -1.442695, %v8176_v37  ;;  %4090 = vst.msk [vmem:[#allocation3 + $0xe8] sm:$0xff] %vm960_vm8, %v4058_v11  ;;  %v8197_v44 = vadd.f32 %v7989_v40, %v4118_v16 }
 0x3a6   : > { %v5106_v29 = vpop.eup %5105  ;;  %4400 = vst.msk [vmem:[%s8040_s15 + $0x60] sm:$0xff] %vm960_vm8, %v4368_v50  ;;  %v4369_v33 = vmul.f32 %v5104_v36, %v8110_v53  ;;  %5121 = vpow2.f32 %v4627_v5  ;;  %v4628_v46 = vmul.f32 -1.442695, %v8182_v13 }
 0x3a7   : > { %v5108_v59 = vpop.eup %5107  ;;  %4403 = vst.msk [vmem:[%s8040_s15 + $0x78] sm:$0xff] %vm960_vm8, %v4371_v47  ;;  %v4279_v56 = vadd.f32 1.0, %v5106_v29  ;;  %5123 = vpow2.f32 %v4625_v12  ;;  %v4626_v39 = vmul.f32 -1.442695, %v8197_v44 }
 0x3a8   : > { %v5110_v43 = vpop.eup %5109  ;;  %4401 = vst.msk [vmem:[%s8040_s15 + $0x68] sm:$0xff] %vm960_vm8, %v4369_v33  ;;  %v4277_v14 = vadd.f32 1.0, %v5108_v59  ;;  %5125 = vpow2.f32 %v4628_v46 }
 0x3a9   : > { %v5112_v8 = vpop.eup %5111  ;;  %5127 = vrcp.f32 %v4279_v56  ;;  %v4282_v19 = vadd.f32 1.0, %v5110_v43  ;;  %v4123_v53 = vld [vmem:[#allocation3 + $0xf0] sm:$0xff] }
 0x3aa   : > { %v5114_v15 = vpop.eup %5113  ;;  %5129 = vrcp.f32 %v4277_v14  ;;  %v4280_v61 = vadd.f32 1.0, %v5112_v8  ;;  %v8202_v17 = vadd.f32 %v7989_v40, %v4123_v53  ;;  %v4121_v4 = vld [vmem:[#allocation3 + $0xe0] sm:$0xff] }
 0x3ab   : > { %v5116_v35 = vpop.eup %5115  ;;  %5131 = vrcp.f32 %v4282_v19  ;;  %v4283_v21 = vadd.f32 1.0, %v5114_v15  ;;  %v8206_v34 = vadd.f32 %v7989_v40, %v4121_v4  ;;  %v4124_v51 = vld [vmem:[#allocation3 + $0xf8] sm:$0xff] }
 0x3ac   : > { %5133 = vrcp.f32 %v4280_v61  ;;  %v4281_v22 = vadd.f32 1.0, %v5116_v35  ;;  %v4631_v60 = vmul.f32 -1.442695, %v8202_v17  ;;  %v8210_v49 = vadd.f32 %v7989_v40, %v4124_v51  ;;  %v4122_v6 = vld [vmem:[#allocation3 + $0xe8] sm:$0xff] }
 0x3ad   : > { %v5118_v45 = vpop.eup %5117  ;;  %5135 = vrcp.f32 %v4283_v21  ;;  %v4629_v55 = vmul.f32 -1.442695, %v8206_v34  ;;  %v8216_v24 = vadd.f32 %v7989_v40, %v4122_v6 }
 0x3ae   : > { %v5120_v27 = vpop.eup %5119  ;;  %v4374_v38 = vmul.f32 %v5118_v45, %v8131_v42  ;;  %5137 = vrcp.f32 %v4281_v22  ;;  %v4632_v25 = vmul.f32 -1.442695, %v8210_v49 }
 0x3af   : > { %v4372_v18 = vmul.f32 %v5120_v27, %v8135_v10  ;;  %5139 = vpow2.f32 %v4626_v39  ;;  %v4630_v40 = vmul.f32 -1.442695, %v8216_v24 }
 0x3b0   : > { %v5122_v32 = vpop.eup %5121  ;;  %4406 = vst.msk [vmem:[%s8040_s15 + $0x90] sm:$0xff] %vm960_vm8, %v4374_v38  ;;  %5141 = vpow2.f32 %v4631_v60 }
 0x3b1   : > { %v5124_v54 = vpop.eup %5123  ;;  %4404 = vst.msk [vmem:[%s8040_s15 + $0x80] sm:$0xff] %vm960_vm8, %v4372_v18  ;;  %v4286_v63 = vadd.f32 1.0, %v5122_v32  ;;  %5143 = vpow2.f32 %v4629_v55 }
 0x3b2   : > { %v5126_v42 = vpop.eup %5125  ;;  %v4284_v1 = vadd.f32 1.0, %v5124_v54  ;;  %5145 = vpow2.f32 %v4632_v25 }
 0x3b3   : > { %v5128_v41 = vpop.eup %5127  ;;  %5147 = vrcp.f32 %v4286_v63  ;;  %v4287_v10 = vadd.f32 1.0, %v5126_v42 }
 0x3b4   : > { %v5130_v62 = vpop.eup %5129  ;;  %v4375_v30 = vmul.f32 %v5128_v41, %v8140_v20  ;;  %5149 = vrcp.f32 %v4284_v1 }
 0x3b5   : > { %v5132_v7 = vpop.eup %5131  ;;  %v4373_v57 = vmul.f32 %v5130_v62, %v8145_v26  ;;  %5151 = vrcp.f32 %v4287_v10 }
 0x3b6   : > { %v5134_v0 = vpop.eup %5133  ;;  %4407 = vst.msk [vmem:[%s8040_s15 + $0x98] sm:$0xff] %vm960_vm8, %v4375_v30  ;;  %v4378_v9 = vmul.f32 %v5132_v7, %v8151_v2  ;;  %5153 = vpow2.f32 %v4630_v40 }
 0x3b7   : > { %v5136_v28 = vpop.eup %5135  ;;  %4405 = vst.msk [vmem:[%s8040_s15 + $0x88] sm:$0xff] %vm960_vm8, %v4373_v57  ;;  %v4376_v52 = vmul.f32 %v5134_v0, %v8155_v48 }
 0x3b8   : > { %v5138_v20 = vpop.eup %5137  ;;  %4410 = vst.msk [vmem:[%s8040_s15 + $0xb0] sm:$0xff] %vm960_vm8, %v4378_v9  ;;  %v4379_v11 = vmul.f32 %v5136_v28, %v8160_v3 }
 0x3b9   : > { %v5140_v26 = vpop.eup %5139  ;;  %4408 = vst.msk [vmem:[%s8040_s15 + $0xa0] sm:$0xff] %vm960_vm8, %v4376_v52  ;;  %v4377_v31 = vmul.f32 %v5138_v20, %v8165_v58 }
 0x3ba   : > { %v5142_v50 = vpop.eup %5141  ;;  %4411 = vst.msk [vmem:[%s8040_s15 + $0xb8] sm:$0xff] %vm960_vm8, %v4379_v11  ;;  %v4285_v2 = vadd.f32 1.0, %v5140_v26 }
 0x3bb   : > { %v5144_v5 = vpop.eup %5143  ;;  %4409 = vst.msk [vmem:[%s8040_s15 + $0xa8] sm:$0xff] %vm960_vm8, %v4377_v31  ;;  %v4290_v16 = vadd.f32 1.0, %v5142_v50 }
 0x3bc   : > { %v5146_v48 = vpop.eup %5145  ;;  %5155 = vrcp.f32 %v4285_v2  ;;  %v4288_v36 = vadd.f32 1.0, %v5144_v5 }
 0x3bd   : > { %v5148_v3 = vpop.eup %5147  ;;  %5157 = vrcp.f32 %v4290_v16  ;;  %v4291_v47 = vadd.f32 1.0, %v5146_v48 }
 0x3be   : > { %v5150_v12 = vpop.eup %5149  ;;  %v4382_v58 = vmul.f32 %v5148_v3, %v8171_v23  ;;  %5159 = vrcp.f32 %v4288_v36 }
 0x3bf   : > { %v5152_v29 = vpop.eup %5151  ;;  %v4380_v33 = vmul.f32 %v5150_v12, %v8176_v37  ;;  %5161 = vrcp.f32 %v4291_v47 }
 0x3c0   : > { %v5154_v46 = vpop.eup %5153  ;;  %4414 = vst.msk [vmem:[%s8040_s15 + $0xd0] sm:$0xff] %vm960_vm8, %v4382_v58  ;;  %v4383_v59 = vmul.f32 %v5152_v29, %v8182_v13 }
 0x3c1   : > { %4412 = vst.msk [vmem:[%s8040_s15 + $0xc0] sm:$0xff] %vm960_vm8, %v4380_v33  ;;  %v4289_v56 = vadd.f32 1.0, %v5154_v46 }
 0x3c2   : > { %4415 = vst.msk [vmem:[%s8040_s15 + $0xd8] sm:$0xff] %vm960_vm8, %v4383_v59 }
 0x3c3   : > { %5163 = vrcp.f32 %v4289_v56 }
 0x3c6   : > { %v5156_v23 = vpop.eup %5155 }
 0x3c7   : > { %v5158_v43 = vpop.eup %5157  ;;  %v4381_v37 = vmul.f32 %v5156_v23, %v8197_v44 }
 0x3c8   : > { %v5160_v14 = vpop.eup %5159  ;;  %v4386_v8 = vmul.f32 %v5158_v43, %v8202_v17 }
 0x3c9   : > { %v5162_v19 = vpop.eup %5161  ;;  %4413 = vst.msk [vmem:[%s8040_s15 + $0xc8] sm:$0xff] %vm960_vm8, %v4381_v37  ;;  %v4384_v13 = vmul.f32 %v5160_v14, %v8206_v34 }
 0x3ca   : > { %4418 = vst.msk [vmem:[%s8040_s15 + $0xf0] sm:$0xff] %vm960_vm8, %v4386_v8  ;;  %v4387_v53 = vmul.f32 %v5162_v19, %v8210_v49 }
 0x3cb   : > { %4416 = vst.msk [vmem:[%s8040_s15 + $0xe0] sm:$0xff] %vm960_vm8, %v4384_v13 }
 0x3cc   : > { %4419 = vst.msk [vmem:[%s8040_s15 + $0xf8] sm:$0xff] %vm960_vm8, %v4387_v53 }
 0x3cd   : > { %v5164_v15 = vpop.eup %5163 }
 0x3ce   : > { %v4385_v61 = vmul.f32 %v5164_v15, %v8216_v24 }
 0x3d0   : > { %4417 = vst.msk [vmem:[%s8040_s15 + $0xe8] sm:$0xff] %vm960_vm8, %v4385_v61 }
 0x3d1 PF: > { %s15_s18 = sadd.s32 1, %s5171_s18  }
 0x3d2   : > { %p12_p4 = scmp.ge.s32.totalorder %s15_s18, 4  }
 0x3d4   :  { %14 = sbr.rel (!%p12_p4) target bundleno = 1 (0x1), region = 78 }

</bundles_post_ra>
